<compile_context>
chip_gen: v7x
topology: tpu7x:2x2x1
jax: 0.10.0
libtpu: 0.0.40
codegen_flags: <defaults>
</compile_context>

<pallas_src>
import jax
import jax.numpy as jnp
from jax import lax
from jax.experimental import pallas as pl
from jax.experimental.pallas import tpu as pltpu


def clip_embedding_kernel(tok_ref,   # (N, 1) int32 token ids, N = B*S   (VMEM)
                          emb_ref,   # (V, D) token-embedding table      (VMEM)
                          pos_ref,   # (S, D) position embedding         (VMEM)
                          o_ref):    # (N, D) output slab                (VMEM)
    N, D = o_ref.shape
    V = emb_ref.shape[0]
    S = pos_ref.shape[0]
    B = N // S                                    # static int

    toks = tok_ref[...]                                           # (N, 1)
    vocab_iota = lax.broadcasted_iota(jnp.int32, (N, V), 1)       # lane iota
    onehot = (vocab_iota == toks).astype(emb_ref.dtype)           # (N, V)

    # Gather = one-hot @ table on the MXU.  HIGHEST precision keeps the result
    # bit-exact (one-hot entries are exact in bf16, so hi+lo passes reproduce
    # the selected f32 rows exactly).
    gathered = jnp.dot(onehot, emb_ref[...],
                       preferred_element_type=jnp.float32,
                       precision=lax.Precision.HIGHEST)           # (N, D) f32

    # x = token_embedding[tokens] + position_embedding  (pos repeated per batch)
    pos = jnp.concatenate([pos_ref[...].astype(jnp.float32)] * B, axis=0)
    o_ref[...] = (gathered + pos).astype(o_ref.dtype)


def clip_embedding(tokens, token_emb, pos_emb):
    B, S = tokens.shape
    V, D = token_emb.shape
    assert pos_emb.shape == (S, D)
    N = B * S

    toks_flat = tokens.reshape(N, 1).astype(jnp.int32)

    out_flat = pl.pallas_call(
        clip_embedding_kernel,
        out_shape=jax.ShapeDtypeStruct((N, D), token_emb.dtype),
        grid_spec=pl.GridSpec(
            grid=(1,),
            in_specs=[
                pl.BlockSpec((N, 1), lambda i: (0, 0)),   # token ids
                pl.BlockSpec((V, D), lambda i: (0, 0)),   # full table, VMEM-resident
                pl.BlockSpec((S, D), lambda i: (0, 0)),   # position embedding
            ],
            out_specs=pl.BlockSpec((N, D), lambda i: (0, 0)),
        ),
        compiler_params=pltpu.CompilerParams(
            dimension_semantics=("arbitrary",)),
    )(toks_flat, token_emb, pos_emb)

    return out_flat.reshape(B, S, D)


# ---------------- pure-JAX reference for verification ----------------
def clip_embedding_ref(tokens, token_emb, pos_emb):
    return jnp.take(token_emb, tokens, axis=0) + pos_emb[None, :, :]


if __name__ == "__main__":
    # Small shapes consistent with the module: batch=2, seq (n_token)=8,
    # n_embd=32, n_vocab=1000.
    BATCH, N_TOKEN, N_EMBD, N_VOCAB = 2, 8, 32, 1000

    key = jax.random.PRNGKey(0)
    k_tok, k_emb, k_pos = jax.random.split(key, 3)
    tokens    = jax.random.randint(k_tok, (BATCH, N_TOKEN), 0, N_VOCAB,
                                   dtype=jnp.int32)
    token_emb = 0.02 * jax.random.normal(k_emb, (N_VOCAB, N_EMBD), jnp.float32)
    pos_emb   = 0.02 * jax.random.normal(k_pos, (N_TOKEN, N_EMBD), jnp.float32)

    out = clip_embedding(tokens, token_emb, pos_emb)
    out = jax.block_until_ready(out)

    ref = clip_embedding_ref(tokens, token_emb, pos_emb)
    assert out.shape == (BATCH, N_TOKEN, N_EMBD)
    assert bool(jnp.all(jnp.isfinite(out)))
    assert jnp.allclose(out, ref, atol=1e-5, rtol=1e-5), "mismatch vs reference"

    print("KERNEL_OK")
</pallas_src>

<mosaic_0001>
module attributes {stable_mosaic.version = 11 : i64} {
  func.func @clip_embedding_kernel(%arg0: i32, %arg1: memref<16x1xi32, #tpu.memory_space<vmem>>, %arg2: memref<1000x32xf32, #tpu.memory_space<vmem>>, %arg3: memref<8x32xf32, #tpu.memory_space<vmem>>, %arg4: memref<16x32xf32, #tpu.memory_space<vmem>>) attributes {dimension_semantics = [#tpu.dimension_semantics<arbitrary>], iteration_bounds = array<i64: 1>, scalar_prefetch = 0 : i64, scratch_operands = 0 : i64, tpu.core_type = #tpu.core_type<tc>, window_params = [{pipeline_mode = #tpu.pipeline_mode<synchronous>, transform_indices = @transform_0, window_bounds = array<i64: 16, 1>}, {pipeline_mode = #tpu.pipeline_mode<synchronous>, transform_indices = @transform_1, window_bounds = array<i64: 1000, 32>}, {pipeline_mode = #tpu.pipeline_mode<synchronous>, transform_indices = @transform_2, window_bounds = array<i64: 8, 32>}, {pipeline_mode = #tpu.pipeline_mode<synchronous>, transform_indices = @transform_3, window_bounds = array<i64: 16, 32>}]} {
    %c0 = arith.constant 0 : index
    %c0_0 = arith.constant 0 : index
    %0 = vector.load %arg1[%c0, %c0_0] : memref<16x1xi32, #tpu.memory_space<vmem>>, vector<16x1xi32>
    %1 = tpu.iota {dimensions = array<i32: 1>} : vector<16x1000xi32>
    %2 = vector.broadcast %0 : vector<16x1xi32> to vector<16x1000xi32>
    %3 = arith.cmpi eq, %1, %2 : vector<16x1000xi32>
    %4 = arith.extui %3 : vector<16x1000xi1> to vector<16x1000xi32>
    %5 = arith.sitofp %4 : vector<16x1000xi32> to vector<16x1000xf32>
    %c0_1 = arith.constant 0 : index
    %c0_2 = arith.constant 0 : index
    %6 = vector.load %arg2[%c0_1, %c0_2] : memref<1000x32xf32, #tpu.memory_space<vmem>>, vector<1000x32xf32>
    %cst = arith.constant dense<0.000000e+00> : vector<16x32xf32>
    %7 = tpu.matmul %5, %6, %cst {dimension_numbers = #tpu.dot_dimension_numbers<[1], [0], [0], [1], [0, 0, 1, 1], [], []>, precision = #tpu.contract_precision<fp32>} : vector<16x1000xf32>, vector<1000x32xf32>, vector<16x32xf32> -> vector<16x32xf32>
    %c0_3 = arith.constant 0 : index
    %c0_4 = arith.constant 0 : index
    %8 = vector.load %arg3[%c0_3, %c0_4] : memref<8x32xf32, #tpu.memory_space<vmem>>, vector<8x32xf32>
    %9 = tpu.concatenate %8, %8 in 0 : vector<8x32xf32>, vector<8x32xf32> -> vector<16x32xf32>
    %10 = arith.addf %7, %9 : vector<16x32xf32>
    %c0_5 = arith.constant 0 : index
    %c0_6 = arith.constant 0 : index
    %11 = vector.load %arg4[%c0_5, %c0_6] : memref<16x32xf32, #tpu.memory_space<vmem>>, vector<16x32xf32>
    tpu.vector_store %arg4[%c0_5, %c0_6], %10 {strides = array<i32>} : memref<16x32xf32, #tpu.memory_space<vmem>>, vector<16x32xf32>,
    return
  }
  func.func @transform_0(%arg0: i32) -> (i32, i32) {
    %c0_i32 = arith.constant 0 : i32
    %c0_i32_0 = arith.constant 0 : i32
    %c0_i32_1 = arith.constant 0 : i32
    return %c0_i32, %c0_i32_0 : i32, i32
  }
  func.func @transform_1(%arg0: i32) -> (i32, i32) {
    %c0_i32 = arith.constant 0 : i32
    %c0_i32_0 = arith.constant 0 : i32
    %c0_i32_1 = arith.constant 0 : i32
    return %c0_i32, %c0_i32_0 : i32, i32
  }
  func.func @transform_2(%arg0: i32) -> (i32, i32) {
    %c0_i32 = arith.constant 0 : i32
    %c0_i32_0 = arith.constant 0 : i32
    %c0_i32_1 = arith.constant 0 : i32
    return %c0_i32, %c0_i32_0 : i32, i32
  }
  func.func @transform_3(%arg0: i32) -> (i32, i32) {
    %c0_i32 = arith.constant 0 : i32
    %c0_i32_0 = arith.constant 0 : i32
    %c0_i32_1 = arith.constant 0 : i32
    return %c0_i32, %c0_i32_0 : i32, i32
  }
}

</mosaic_0001>

<bundles_post_ra>
// kernel: tpu_custom_call.1
= control target key start
LH: loop header
LB: loop body
LE: loop exit
PB: predicated region body
PF: predicated region fallthrough
CT: control target
= control target key end

     0   :  { %v5493_v2 = vmov 0   ;;  %s8795_s0 = inlined_call_operand.vmem [shape: s32[16,1], index: 0, kind: input, shape index: {}]   ;;  %s8796_s1 = inlined_call_operand.vmem [shape: f32[1000,32], index: 1, kind: input, shape index: {}]   ;;  %s8797_s2 = inlined_call_operand.vmem [shape: f32[8,32], index: 2, kind: input, shape index: {}]   ;;  %s8798_s3 = inlined_call_operand.hbm [shape: f32[16,32], index: 3, kind: output, shape index: {}]  }
   0x1   :  { %v15_v0 = vld [vmem:[%s8795_s0] sm:$0xff]  ;;  %5468 = vset.pattern.permute.xlu0 %v5493_v2  ;;  %v5531_v3 = vld [vmem:[%s8796_s1 + $0x88] sm:$0xff]  ;;  %v5550_v10 = vld [vmem:[%s8796_s1 + $0x90] sm:$0xff] }
   0x2   :  { %v5526_v1 = vld [vmem:[%s8796_s1 + $0x80] sm:$0xff]  ;;  %v5542_v6 = vld [vmem:[%s8796_s1 + $0x8] sm:$0xff]  ;;  %27 = vperm.xlu0 %5468, %v15_v0   ;;  %v265_v7 = vand.u32 4294901760, %v5531_v3  ;;  %v5555_v11 = vld [vmem:[%s8796_s1 + $0x98] sm:$0xff]  ;;  %v268_v15 = vand.u32 4294901760, %v5550_v10 }
   0x3   :  { %v262_v4 = vand.u32 4294901760, %v5526_v1  ;;  %v5537_v5 = vld [vmem:[%s8796_s1] sm:$0xff]  ;;  %v217_v9 = vand.u32 4294901760, %v5542_v6  ;;  %v5560_v12 = vld [vmem:[%s8796_s1 + $0x10] sm:$0xff]  ;;  %v16_v13 = vld [vmem:[%s8795_s0 + $0x8] sm:$0xff]  ;;  %v271_v16 = vand.u32 4294901760, %v5555_v11 }
   0x4   :  { %v214_v8 = vand.u32 4294901760, %v5537_v5  ;;  %v5573_v17 = vld [vmem:[%s8796_s1 + $0x18] sm:$0xff]  ;;  %v220_v18 = vand.u32 4294901760, %v5560_v12  ;;  %v5577_v19 = vsub.f32 %v5531_v3, %v265_v7  ;;  %v5594_v24 = vsub.f32 %v5550_v10, %v268_v15  ;;  %v5633_v39 = vld [vmem:[%s8796_s1 + $0xa0] sm:$0xff]  ;;  %v5647_v44 = vld [vmem:[%s8796_s1 + $0xa8] sm:$0xff] }
   0x5   :  { %v5566_v14 = vsub.f32 %v5526_v1, %v262_v4  ;;  %v5587_v21 = vsub.f32 %v5542_v6, %v217_v9  ;;  %v223_v22 = vand.u32 4294901760, %v5573_v17  ;;  %v5599_v25 = vsub.f32 %v5555_v11, %v271_v16  ;;  %v5655_v49 = vld [vmem:[%s8796_s1 + $0x20] sm:$0xff]  ;;  %v5661_v54 = vld [vmem:[%s8796_s1 + $0x28] sm:$0xff]  ;;  %v5667_v59 = vld [vmem:[%s8796_s1 + $0xb0] sm:$0xff] }
   0x6   :  { %v5582_v20 = vsub.f32 %v5537_v5, %v214_v8  ;;  %v5604_v26 = vsub.f32 %v5560_v12, %v220_v18  ;;  %30 = vperm.xlu0 %5468, %v16_v13   ;;  %v8818_v27 = vand.u32 4294901760, %v5577_v19  ;;  %v8812_v32 = vand.u32 4294901760, %v5594_v24  ;;  %v5672_v60 = vld [vmem:[%s8796_s1 + $0xb8] sm:$0xff] }
   0x7   :  { %v8819_v23 = vand.u32 4294901760, %v5566_v14  ;;  %v8813_v29 = vand.u32 4294901760, %v5587_v21  ;;  %v5612_v30 = vsub.f32 %v5573_v17, %v223_v22  ;;  %v8811_v33 = vand.u32 4294901760, %v5599_v25 }
   0x8   :  { %v8817_v28 = vand.u32 4294901760, %v5582_v20  ;;  %v8810_v34 = vand.u32 4294901760, %v5604_v26  ;;  %v463_v35 = vsub.f32 %v5577_v19, %v8818_v27  ;;  %v470_v41 = vsub.f32 %v5594_v24, %v8812_v32 }
   0x9   :  { %v456_v31 = vsub.f32 %v5566_v14, %v8819_v23  ;;  %v351_v37 = vsub.f32 %v5587_v21, %v8813_v29  ;;  %v8807_v38 = vand.u32 4294901760, %v5612_v30  ;;  %v477_v42 = vsub.f32 %v5599_v25, %v8811_v33 }
   0xa   :  { %v344_v36 = vsub.f32 %v5582_v20, %v8817_v28  ;;  %v358_v43 = vsub.f32 %v5604_v26, %v8810_v34  ;;  %v464_v45 = vand.u32 4294901760, %v463_v35  ;;  %v471_v50 = vand.u32 4294901760, %v470_v41 }
   0xb   :  { %v457_v40 = vand.u32 4294901760, %v456_v31  ;;  %v352_v47 = vand.u32 4294901760, %v351_v37  ;;  %v365_v48 = vsub.f32 %v5612_v30, %v8807_v38  ;;  %v478_v51 = vand.u32 4294901760, %v477_v42 }
   0xc   :  { %v345_v46 = vand.u32 4294901760, %v344_v36  ;;  %v359_v52 = vand.u32 4294901760, %v358_v43  ;;  %v274_v53 = vand.u32 4294901760, %v5633_v39  ;;  %v277_v58 = vand.u32 4294901760, %v5647_v44 }
   0xd   :  { %v4645_v55 = vpack.c.bf16 %v464_v45, %v457_v40  ;;  %v366_v57 = vand.u32 4294901760, %v365_v48 }
   0xe   :  { %v4647_v56 = vpack.c.bf16 %v352_v47, %v345_v46 }
   0xf   :  { %8 = vsyncpa [#allocation3], 0  ;;  %v4649_v61 = vpack.c.bf16 %v478_v51, %v471_v50  ;;  %v5677_v62 = vsub.f32 %v5633_v39, %v274_v53  ;;  %v5679_v63 = vpack.c.bf16 %v265_v7, %v262_v4  ;;  %v226_v0 = vand.u32 4294901760, %v5655_v49  ;;  %v5685_v1 = vld [vmem:[%s8796_s1 + $0x30] sm:$0xff]  ;;  %4646 = vmatprep.subr.bf16.mxu1 %v4645_v55  ;;  %v5711_v5 = vld [vmem:[%s8796_s1 + $0x38] sm:$0xff] }
  0x10   :  { %v4651_v2 = vpack.c.bf16 %v366_v57, %v359_v52  ;;  %v5690_v3 = vsub.f32 %v5647_v44, %v277_v58  ;;  %v229_v13 = vand.u32 4294901760, %v5661_v54  ;;  %v5697_v4 = vpack.c.bf16 %v217_v9, %v214_v8  ;;  %4648 = vmatpush3.bf16.msra.mxu1 %v4647_v56  ;;  %v5769_v56 = vld [vmem:[%s8796_s1 + $0xc0] sm:$0xff]  ;;  %v5774_v57 = vld [vmem:[%s8796_s1 + $0xc8] sm:$0xff] }
  0x11   :  { %v8804_v7 = vand.u32 4294901760, %v5677_v62  ;;  %4614 = vmatprep.subr.bf16.mxu0 %v5679_v63  ;;  %v5704_v31 = vsub.f32 %v5655_v49, %v226_v0  ;;  %v280_v35 = vand.u32 4294901760, %v5667_v59  ;;  %v283_v36 = vand.u32 4294901760, %v5672_v60  ;;  %4650 = vmatprep.subr.bf16.mxu1 %v4649_v61  ;;  %v5855_v49 = vld [vmem:[%s8796_s1 + $0x50] sm:$0xff]  ;;  %v5938_v23 = vld [vmem:[%s8796_s1 + $0x60] sm:$0xff] }
  0x12   :  { %v8801_v6 = vand.u32 4294901760, %v5690_v3  ;;  %v5717_v8 = vsub.f32 %v5661_v54, %v229_v13  ;;  %4616 = vmatpush3.bf16.msra.mxu0 %v5697_v4  ;;  %v5724_v9 = vpack.c.bf16 %v271_v16, %v268_v15  ;;  %v232_v37 = vand.u32 4294901760, %v5685_v1  ;;  %v5860_v54 = vld [vmem:[%s8796_s1 + $0x58] sm:$0xff] }
  0x13   :  { %v484_v40 = vsub.f32 %v5677_v62, %v8804_v7  ;;  %v8800_v41 = vand.u32 4294901760, %v5704_v31  ;;  %v5734_v42 = vsub.f32 %v5667_v59, %v280_v35  ;;  %v5739_v10 = vsub.f32 %v5672_v60, %v283_v36 }
  0x14   :  { %v491_v11 = vsub.f32 %v5690_v3, %v8801_v6  ;;  %v8799_v15 = vand.u32 4294901760, %v5717_v8  ;;  %4618 = vmatprep.subr.bf16.mxu0 %v5724_v9  ;;  %v235_v16 = vand.u32 4294901760, %v5711_v5  ;;  %v5750_v43 = vsub.f32 %v5685_v1, %v232_v37  ;;  %4652 = vmatpush3.bf16.msra.mxu1 %v4651_v2 }
  0x15   :  { %v485_v45 = vand.u32 4294901760, %v484_v40  ;;  %v372_v46 = vsub.f32 %v5704_v31, %v8800_v41  ;;  %v8802_v47 = vand.u32 4294901760, %v5734_v42  ;;  %v8803_v48 = vand.u32 4294901760, %v5739_v10 }
  0x16   :  { %v492_v50 = vand.u32 4294901760, %v491_v11  ;;  %v379_v51 = vsub.f32 %v5717_v8, %v8799_v15  ;;  %v8805_v52 = vand.u32 4294901760, %v5750_v43  ;;  %v5764_v55 = vsub.f32 %v5711_v5, %v235_v16 }
  0x17   :  { %v373_v61 = vand.u32 4294901760, %v372_v46  ;;  %v498_v2 = vsub.f32 %v5734_v42, %v8802_v47  ;;  %v505_v40 = vsub.f32 %v5739_v10, %v8803_v48  ;;  %v5786_v11 = vpack.c.bf16 %v223_v22, %v220_v18  ;;  %v5795_v47 = vld [vmem:[%s8796_s1 + $0x40] sm:$0xff]  ;;  %v5803_v18 = vld [vmem:[%s8796_s1 + $0x48] sm:$0xff]  ;;  %v5808_v22 = vld [vmem:[%s8796_s1 + $0xd0] sm:$0xff] }
  0x18   :  { %v4653_v15 = vpack.c.bf16 %v492_v50, %v485_v45  ;;  %v380_v41 = vand.u32 4294901760, %v379_v51  ;;  %v386_v46 = vsub.f32 %v5750_v43, %v8805_v52  ;;  %v8806_v6 = vand.u32 4294901760, %v5764_v55 }
  0x19   :  { %v499_v48 = vand.u32 4294901760, %v498_v2  ;;  %v506_v7 = vand.u32 4294901760, %v505_v40  ;;  %4620 = vmatpush3.bf16.msra.mxu0 %v5786_v11  ;;  %v286_v12 = vand.u32 4294901760, %v5769_v56  ;;  %v289_v17 = vand.u32 4294901760, %v5774_v57  ;;  %v5822_v40 = vld [vmem:[%s8796_s1 + $0xd8] sm:$0xff] }
  0x1a   :  { %4654 = vmatprep.subr.bf16.mxu1 %v4653_v15  ;;  %v4655_v45 = vpack.c.bf16 %v380_v41, %v373_v61  ;;  %v387_v50 = vand.u32 4294901760, %v386_v46  ;;  %v393_v51 = vsub.f32 %v5764_v55, %v8806_v6  ;;  %v5817_v2 = vpack.c.bf16 %v277_v58, %v274_v53 }
  0x1b   :  { %v4657_v52 = vpack.c.bf16 %v506_v7, %v499_v48  ;;  %v5827_v41 = vsub.f32 %v5769_v56, %v286_v12  ;;  %v5832_v15 = vsub.f32 %v5774_v57, %v289_v17  ;;  %v238_v39 = vand.u32 4294901760, %v5795_v47 }
  0x1c   :  { %4656 = vmatpush3.bf16.msra.mxu1 %v4655_v45  ;;  %v394_v44 = vand.u32 4294901760, %v393_v51  ;;  %4622 = vmatprep.subr.bf16.mxu0 %v5817_v2  ;;  %v241_v53 = vand.u32 4294901760, %v5803_v18  ;;  %v5841_v58 = vpack.c.bf16 %v229_v13, %v226_v0  ;;  %v292_v7 = vand.u32 4294901760, %v5808_v22 }
  0x1d   :  { %4658 = vmatprep.subr.bf16.mxu1 %v4657_v52  ;;  %v8808_v48 = vand.u32 4294901760, %v5827_v41  ;;  %v8809_v61 = vand.u32 4294901760, %v5832_v15  ;;  %v5849_v46 = vsub.f32 %v5795_v47, %v238_v39  ;;  %v295_v45 = vand.u32 4294901760, %v5822_v40  ;;  %v95_v47 = vld [vmem:[%s8796_s1 + $0x78] sm:$0xff] }
  0x1e   :  { %v4659_v0 = vpack.c.bf16 %v394_v44, %v387_v50  ;;  %v5865_v13 = vsub.f32 %v5803_v18, %v241_v53  ;;  %4624 = vmatpush3.bf16.msra.mxu0 %v5841_v58  ;;  %v5871_v52 = vsub.f32 %v5808_v22, %v292_v7  ;;  %v5877_v51 = vpack.c.bf16 %v283_v36, %v280_v35 }
  0x1f   :  { %v512_v50 = vsub.f32 %v5827_v41, %v8808_v48  ;;  %v519_v44 = vsub.f32 %v5832_v15, %v8809_v61  ;;  %v8816_v6 = vand.u32 4294901760, %v5849_v46  ;;  %v5889_v38 = vsub.f32 %v5822_v40, %v295_v45 }
  0x20   :  { %9058 = vst [vmem:[#allocation5_spill] sm:$0xff] %v5877_v51  ;;  %4660 = vmatpush3.bf16.msra.mxu1 %v4659_v0  ;;  %v8814_v59 = vand.u32 4294901760, %v5865_v13  ;;  %v8815_v60 = vand.u32 4294901760, %v5871_v52  ;;  %4626 = vmatprep.subr.bf16.mxu0 %v5877_v51  ;;  %v8821_v35 = vand.u32 4294901760, %v5855_v49  ;;  %v8820_v36 = vand.u32 4294901760, %v5860_v54 }
  0x21   :  { %v513_v48 = vand.u32 4294901760, %v512_v50  ;;  %v520_v61 = vand.u32 4294901760, %v519_v44  ;;  %v400_v34 = vsub.f32 %v5849_v46, %v8816_v6  ;;  %v8822_v33 = vand.u32 4294901760, %v5889_v38  ;;  %v5919_v44 = vld [vmem:[%s8796_s1 + $0xe0] sm:$0xff] }
  0x22   :  { %v407_v0 = vsub.f32 %v5865_v13, %v8814_v59  ;;  %v526_v32 = vsub.f32 %v5871_v52, %v8815_v60  ;;  %v5909_v29 = vsub.f32 %v5855_v49, %v8821_v35  ;;  %v5914_v50 = vsub.f32 %v5860_v54, %v8820_v36  ;;  %v5924_v59 = vld [vmem:[%s8796_s1 + $0xe8] sm:$0xff] }
  0x23   :  { %v4661_v60 = vpack.c.bf16 %v520_v61, %v513_v48  ;;  %v401_v6 = vand.u32 4294901760, %v400_v34  ;;  %v533_v28 = vsub.f32 %v5889_v38, %v8822_v33  ;;  %v5933_v27 = vpack.c.bf16 %v235_v16, %v232_v37  ;;  %v5945_v61 = vld [vmem:[%s8796_s1 + $0x68] sm:$0xff]  ;;  %v110_v33 = vld [vmem:[%s8796_s1 + $0xf0] sm:$0xff] }
  0x24   :  { %v408_v36 = vand.u32 4294901760, %v407_v0  ;;  %v527_v35 = vand.u32 4294901760, %v526_v32  ;;  %v8824_v48 = vand.u32 4294901760, %v5909_v29  ;;  %v8823_v34 = vand.u32 4294901760, %v5914_v50 }
  0x25   :  { %9059 = vst [vmem:[#allocation6_spill] sm:$0xff] %v5933_v27  ;;  %4662 = vmatprep.subr.bf16.mxu1 %v4661_v60  ;;  %v534_v1 = vand.u32 4294901760, %v533_v28  ;;  %4628 = vmatpush3.bf16.msra.mxu0 %v5933_v27  ;;  %v8826_v5 = vand.u32 4294901760, %v5919_v44  ;;  %v8825_v37 = vand.u32 4294901760, %v5924_v59  ;;  %v5954_v32 = vpack.c.bf16 %v289_v17, %v286_v12  ;;  %v111_v17 = vld [vmem:[%s8796_s1 + $0xf8] sm:$0xff] }
  0x26   :  { %v4663_v16 = vpack.c.bf16 %v408_v36, %v401_v6  ;;  %v414_v0 = vsub.f32 %v5909_v29, %v8824_v48  ;;  %v421_v28 = vsub.f32 %v5914_v50, %v8823_v34  ;;  %v250_v60 = vand.u32 4294901760, %v5938_v23 }
  0x27   :  { %9060 = vst [vmem:[#allocation7_spill] sm:$0xff] %v5954_v32  ;;  %v4665_v56 = vpack.c.bf16 %v534_v1, %v527_v35  ;;  %v5969_v57 = vsub.f32 %v5919_v44, %v8826_v5  ;;  %v5974_v6 = vsub.f32 %v5924_v59, %v8825_v37  ;;  %4630 = vmatprep.subr.bf16.mxu0 %v5954_v32  ;;  %v253_v12 = vand.u32 4294901760, %v5945_v61 }
  0x28   :  { %4664 = vmatpush3.bf16.msra.mxu1 %v4663_v16  ;;  %v415_v35 = vand.u32 4294901760, %v414_v0  ;;  %v422_v36 = vand.u32 4294901760, %v421_v28  ;;  %v5982_v1 = vsub.f32 %v5938_v23, %v250_v60  ;;  %v5988_v34 = vpack.c.bf16 %v241_v53, %v238_v39  ;;  %v94_v23 = vld [vmem:[%s8796_s1 + $0x70] sm:$0xff] }
  0x29   :  { %4666 = vmatprep.subr.bf16.mxu1 %v4665_v56  ;;  %v8827_v48 = vand.u32 4294901760, %v5969_v57  ;;  %v8828_v37 = vand.u32 4294901760, %v5974_v6  ;;  %v5993_v5 = vsub.f32 %v5945_v61, %v253_v12  ;;  %v304_v16 = vand.u32 4294901760, %v110_v33 }
  0x2a   :  { %9061 = vst [vmem:[#allocation8_spill] sm:$0xff] %v5988_v34  ;;  %v4667_v18 = vpack.c.bf16 %v422_v36, %v415_v35  ;;  %v8833_v39 = vand.u32 4294901760, %v5982_v1  ;;  %4632 = vmatpush3.bf16.msra.mxu0 %v5988_v34  ;;  %v307_v53 = vand.u32 4294901760, %v111_v17  ;;  %v6007_v61 = vpack.c.bf16 %v295_v45, %v292_v7 }
  0x2b   :  { %v540_v0 = vsub.f32 %v5969_v57, %v8827_v48  ;;  %v547_v28 = vsub.f32 %v5974_v6, %v8828_v37  ;;  %v8838_v56 = vand.u32 4294901760, %v5993_v5  ;;  %v6016_v35 = vsub.f32 %v110_v33, %v304_v16 }
  0x2c   :  { %9062 = vst [vmem:[#allocation9_spill] sm:$0xff] %v6007_v61  ;;  %4668 = vmatpush3.bf16.msra.mxu1 %v4667_v18  ;;  %v428_v22 = vsub.f32 %v5982_v1, %v8833_v39  ;;  %v6021_v40 = vsub.f32 %v111_v17, %v307_v53  ;;  %4634 = vmatprep.subr.bf16.mxu0 %v6007_v61  ;;  %v256_v7 = vand.u32 4294901760, %v94_v23  ;;  %v259_v45 = vand.u32 4294901760, %v95_v47 }
  0x2d   :  { %v541_v36 = vand.u32 4294901760, %v540_v0  ;;  %v548_v48 = vand.u32 4294901760, %v547_v28  ;;  %v435_v37 = vsub.f32 %v5993_v5, %v8838_v56  ;;  %v8840_v33 = vand.u32 4294901760, %v6016_v35 }
  0x2e   :  { %v429_v34 = vand.u32 4294901760, %v428_v22  ;;  %v8839_v18 = vand.u32 4294901760, %v6021_v40  ;;  %v6029_v32 = vsub.f32 %v94_v23, %v256_v7  ;;  %v6031_v39 = vsub.f32 %v95_v47, %v259_v45 }
  0x2f   :  { %v4669_v17 = vpack.c.bf16 %v548_v48, %v541_v36  ;;  %v436_v27 = vand.u32 4294901760, %v435_v37  ;;  %v554_v0 = vsub.f32 %v6016_v35, %v8840_v33  ;;  %v9063_v28 = vand.u32 4294901760, %v5855_v49 }
  0x30   :  { %v9064_v61 = vand.u32 4294901760, %v5860_v54  ;;  %v561_v22 = vsub.f32 %v6021_v40, %v8839_v18  ;;  %v441_v23 = vand.u32 4294901760, %v6029_v32  ;;  %v448_v47 = vand.u32 4294901760, %v6031_v39 }
  0x31   :  { %4670 = vmatprep.subr.bf16.mxu1 %v4669_v17  ;;  %v4671_v48 = vpack.c.bf16 %v436_v27, %v429_v34  ;;  %v555_v37 = vand.u32 4294901760, %v554_v0  ;;  %v6056_v33 = vpack.c.bf16 %v253_v12, %v250_v60  ;;  %v6058_v51 = vpack.c.bf16 %v307_v53, %v304_v16 }
  0x32   :  { %v6040_v56 = vpack.c.bf16 %v9064_v61, %v9063_v28  ;;  %v562_v36 = vand.u32 4294901760, %v561_v22  ;;  %v442_v49 = vsub.f32 %v6029_v32, %v441_v23  ;;  %v449_v54 = vsub.f32 %v6031_v39, %v448_v47 }
  0x33   :  { %4672 = vmatpush3.bf16.msra.mxu1 %v4671_v48  ;;  %v9065_v61 = vand.u32 4294901760, %v5919_v44  ;;  %v9066_v28 = vand.u32 4294901760, %v5924_v59  ;;  %v6060_v0 = vpack.c.bf16 %v259_v45, %v256_v7  ;;  %v4677_v22 = vpack.c.bf16 %v5577_v19, %v5566_v14 }
  0x34   :  { %4636 = vmatpush3.bf16.msra.mxu0 %v6040_v56  ;;  %v4673_v27 = vpack.c.bf16 %v562_v36, %v555_v37  ;;  %v443_v34 = vand.u32 4294901760, %v442_v49  ;;  %v450_v17 = vand.u32 4294901760, %v449_v54  ;;  %v9069_v49 = vand.u32 4294901760, %v5582_v20 }
  0x35   :  { %v6054_v18 = vpack.c.bf16 %v9066_v28, %v9065_v61  ;;  %v9070_v54 = vand.u32 4294901760, %v5587_v21  ;;  %v9071_v61 = vand.u32 4294901760, %v5594_v24  ;;  %v9072_v28 = vand.u32 4294901760, %v5599_v25 }
  0x36   :  { %4674 = vmatprep.subr.bf16.mxu1 %v4673_v27  ;;  %v4675_v12 = vpack.c.bf16 %v450_v17, %v443_v34  ;;  %v9067_v34 = vand.u32 4294901760, %v5566_v14  ;;  %v9068_v17 = vand.u32 4294901760, %v5577_v19  ;;  %v9073_v14 = vand.u32 4294901760, %v5604_v26 }
  0x37   :  { %4638 = vmatprep.subr.bf16.mxu0 %v6054_v18  ;;  %v6108_v36 = vpack.c.bf16 %v9070_v54, %v9069_v49  ;;  %v6115_v37 = vpack.c.bf16 %v9072_v28, %v9071_v61  ;;  %v9074_v19 = vand.u32 4294901760, %v5612_v30  ;;  %v9076_v27 = vand.u32 4294901760, %v5690_v3 }
  0x38   :  { %4640 = vmatpush3.bf16.msra.mxu0 %v6056_v33  ;;  %4676 = vmatpush3.bf16.msra.mxu1 %v4675_v12  ;;  %v6102_v12 = vpack.c.bf16 %v9068_v17, %v9067_v34  ;;  %v9075_v17 = vand.u32 4294901760, %v5677_v62  ;;  %v9077_v54 = vand.u32 4294901760, %v5704_v31  ;;  %v9078_v48 = vand.u32 4294901760, %v5717_v8 }
  0x39   :  { %4642 = vmatprep.subr.bf16.mxu0 %v6058_v51  ;;  %4710 = vmatprep.subr.bf16.mxu1 %v5679_v63  ;;  %v6121_v34 = vpack.c.bf16 %v9074_v19, %v9073_v14  ;;  %v9079_v61 = vand.u32 4294901760, %v5734_v42  ;;  %v9080_v28 = vand.u32 4294901760, %v5739_v10  ;;  %v9082_v14 = vand.u32 4294901760, %v5750_v43 }
  0x3a   :  { %v6127_v49 = vpack.c.bf16 %v9076_v27, %v9075_v17  ;;  %v6133_v45 = vpack.c.bf16 %v9078_v48, %v9077_v54  ;;  %v9083_v19 = vand.u32 4294901760, %v5764_v55  ;;  %v9085_v27 = vand.u32 4294901760, %v5827_v41 }
  0x3b   :  { %v6139_v7 = vpack.c.bf16 %v9080_v28, %v9079_v61  ;;  %v9086_v17 = vand.u32 4294901760, %v5832_v15  ;;  %v9089_v48 = vand.u32 4294901760, %v5865_v13  ;;  %v9091_v61 = vand.u32 4294901760, %v5871_v52 }
  0x3c   :  { %4644 = vmatpush3.bf16.msra.mxu0 %v6060_v0  ;;  %v6145_v53 = vpack.c.bf16 %v9083_v19, %v9082_v14  ;;  %v9092_v28 = vand.u32 4294901760, %v5889_v38  ;;  %v9094_v14 = vand.u32 4294901760, %v5909_v29  ;;  %v9095_v19 = vand.u32 4294901760, %v5914_v50 }
  0x3d   :  { %4678 = vmatprep.subr.bf16.mxu0 %v4677_v22  ;;  %9081 = vst [vmem:[#allocation10_spill] sm:$0xff] %v6139_v7  ;;  %v6151_v16 = vpack.c.bf16 %v9086_v17, %v9085_v27  ;;  %v9088_v22 = vand.u32 4294901760, %v5849_v46  ;;  %v9097_v27 = vand.u32 4294901760, %v5969_v57  ;;  %v9098_v17 = vand.u32 4294901760, %v5974_v6 }
  0x3e   :  { %9084 = vst [vmem:[#allocation11_spill] sm:$0xff] %v6145_v53  ;;  %v6163_v60 = vpack.c.bf16 %v9092_v28, %v9091_v61  ;;  %v6169_v59 = vpack.c.bf16 %v9095_v19, %v9094_v14  ;;  %v9103_v61 = vand.u32 4294901760, %v6016_v35  ;;  %v9104_v28 = vand.u32 4294901760, %v6021_v40 }
  0x3f   :  { %9087 = vst [vmem:[#allocation12_spill] sm:$0xff] %v6151_v16  ;;  %v6157_v54 = vpack.c.bf16 %v9089_v48, %v9088_v22  ;;  %v6175_v44 = vpack.c.bf16 %v9098_v17, %v9097_v27  ;;  %v9100_v22 = vand.u32 4294901760, %v5982_v1  ;;  %v9101_v48 = vand.u32 4294901760, %v5993_v5 }
  0x40   :  { %9093 = vst [vmem:[#allocation14_spill] sm:$0xff] %v6163_v60  ;;  %9096 = vst [vmem:[#allocation15_spill] sm:$0xff] %v6169_v59  ;;  %v6187_v60 = vpack.c.bf16 %v9104_v28, %v9103_v61  ;;  %v6189_v14 = vpack.c.bf16 %v448_v47, %v441_v23  ;;  %v17_v19 = vlaneseq  ;;  %v8843_v47 = vmov 1.0  }
  0x41   :  { %9090 = vst [vmem:[#allocation13_spill] sm:$0xff] %v6157_v54  ;;  %9099 = vst [vmem:[#allocation16_spill] sm:$0xff] %v6175_v44  ;;  %v6181_v54 = vpack.c.bf16 %v9101_v48, %v9100_v22  ;;  %v8845_v22 = vmov 0.0   ;;  %vm206_vm13 = vcmask 850944  }
  0x42   :  { %9105 = vst [vmem:[#allocation18_spill] sm:$0xff] %v6187_v60  ;;  %9106 = vst [vmem:[#allocation19_spill] sm:$0xff] %v6189_v14  ;;  %v6191_v59 = vand.u32 127, %v17_v19  ;;  %v9109_v14 = vmov 1.0  }
  0x43   :  { %9102 = vst [vmem:[#allocation17_spill] sm:$0xff] %v6181_v54 }
  0x44   :  { %9107 = vst [vmem:[#allocation20_spill] sm:$0xff] %v6191_v59  ;;  %v6194_v27 = vadd.s32 128, %v6191_v59 }
  0x81   :  { %v6196_v17 = vpop.permute.xlu0 %27 }
  0x82   :  { %vm33_vm0 = vcmp.eq.s32.totalorder %v6194_v27, %v6196_v17  ;;  %vm32_vm1 = vcmp.eq.s32.totalorder %v6191_v59, %v6196_v17 }
  0x83   :  { %v3866_v23 = vsel %vm33_vm0, 1.0, %v8845_v22  ;;  %3881 = vmatprep.mubr.msk.f32.mxu1 %vm33_vm0, %v8843_v47  ;;  %v3865_v48 = vsel %vm32_vm1, 1.0, %v8845_v22 }
  0x84   :  { %v310_v61 = vsub.f32 %v3866_v23, %v3866_v23  ;;  %v6214_v28 = vsub.f32 %v3865_v48, %v3865_v48  ;;  %3882 = vmatmul.mubr.msk.f32.vlgmr.msra.gmra.mrb[0].mxu1 %vm32_vm1, %v8843_v47 }
  0x85   :  { %4712 = vmatpush3.bf16.msra.mxu1 %v5697_v4  ;;  %v6221_v19 = vpop.permute.xlu0 %30 }
  0x86   :  { %9108 = vst [vmem:[#allocation21_spill] sm:$0xff] %v6221_v19  ;;  %vm41_vm2 = vcmp.eq.s32.totalorder %v6194_v27, %v6221_v19  ;;  %4714 = vmatprep.subr.bf16.mxu1 %v5724_v9  ;;  %vm40_vm3 = vcmp.eq.s32.totalorder %v6191_v59, %v6221_v19  ;;  %v311_v23 = vand.u32 4294901760, %v310_v61  ;;  %v9110_v16 = vand.u32 4294901760, %v6214_v28 }
  0x87   :  { %v3874_v47 = vsel %vm41_vm2, 1.0, %v8845_v22  ;;  %3883 = vmatprep.mubr.msk.f32.mxu1 %vm41_vm2, %v9109_v14  ;;  %v3873_v60 = vsel %vm40_vm3, 1.0, %v8845_v22 }
  0x88   :  { %v6241_v54 = vsub.f32 %v3874_v47, %v3874_v47  ;;  %v6243_v44 = vsub.f32 %v3873_v60, %v3873_v60  ;;  %3884 = vmatmul.mubr.msk.f32.gmra.mrb[2].mxu1 %vm40_vm3, %v9109_v14  ;;  %v312_v48 = vsub.f32 %v310_v61, %v311_v23  ;;  %v318_v53 = vsub.f32 %v6214_v28, %v9110_v16 }
  0x89   :  { %4716 = vmatpush3.bf16.msra.mxu1 %v5786_v11  ;;  %825 = vmatprep.mubr.f32.mxu1 %v311_v23  ;;  %v9111_v23 = vpack.c.bf16 %v5587_v21, %v5582_v20  ;;  %v9117_v20 = vpack.c.bf16 %v5690_v3, %v5677_v62  ;;  %v9118_v21 = vld [vmem:[#allocation8_spill] sm:$0xff]  ;;  %v6297_v62 = vld [vmem:[%s8796_s1 + $0x1f0] sm:$0xff]  ;;  %v6302_v3 = vld [vmem:[%s8796_s1 + $0x1f8] sm:$0xff] }
  0x8a   :  { %4718 = vmatprep.subr.bf16.mxu1 %v5817_v2  ;;  %v313_v22 = vand.u32 4294901760, %v312_v48  ;;  %v319_v47 = vand.u32 4294901760, %v318_v53  ;;  %v8851_v60 = vand.u32 4294901760, %v6241_v54  ;;  %v8852_v7 = vand.u32 4294901760, %v6243_v44  ;;  %v9112_v53 = vld [vmem:[#allocation5_spill] sm:$0xff] }
  0x8b   :  { %9124 = vst [vmem:[#allocation5_spill] sm:$0xff] %v6297_v62 }
  0x8c   :  { %314 = vmatprep.mubr.f32.mxu0 %v313_v22  ;;  %v327_v19 = vsub.f32 %v6241_v54, %v8851_v60  ;;  %v333_v16 = vsub.f32 %v6243_v44, %v8852_v7  ;;  %v9113_v22 = vpack.c.bf16 %v5599_v25, %v5594_v24  ;;  %v9114_v60 = vld [vmem:[#allocation6_spill] sm:$0xff]  ;;  %v9115_v7 = vpack.c.bf16 %v5612_v30, %v5604_v26  ;;  %v9120_v25 = vld [vmem:[#allocation9_spill] sm:$0xff] }
  0x8d   :  { %4720 = vmatpush3.bf16.msra.mxu1 %v5841_v58  ;;  %320 = vmatmul.mubr.f32.vlgmr.msra.gmra.mrb[0].mxu0 %v319_v47  ;;  %v9116_v47 = vld [vmem:[#allocation7_spill] sm:$0xff]  ;;  %v9119_v24 = vpack.c.bf16 %v5717_v8, %v5704_v31  ;;  %v9122_v26 = vpack.c.bf16 %v5764_v55, %v5750_v43  ;;  %v9123_v30 = vpack.c.bf16 %v5832_v15, %v5827_v41  ;;  %v6307_v31 = vld [vmem:[%s8796_s1 + $0x170] sm:$0xff]  ;;  %v6312_v8 = vld [vmem:[%s8796_s1 + $0x178] sm:$0xff]  ;;  %v8856_v55 = vand.u32 4294901760, %v6297_v62 }
  0x8e   :  { %4680 = vmatpush3.bf16.msra.mxu0 %v9111_v23  ;;  %4722 = vmatprep.subr.bf16.mxu1 %v9112_v53  ;;  %v328_v48 = vand.u32 4294901760, %v327_v19  ;;  %v334_v59 = vand.u32 4294901760, %v333_v16  ;;  %9125 = vst [vmem:[#allocation6_spill] sm:$0xff] %v6302_v3  ;;  %9126 = vst [vmem:[#allocation7_spill] sm:$0xff] %v6307_v31  ;;  %v6327_v43 = vld [vmem:[%s8796_s1 + $0x188] sm:$0xff]  ;;  %v8855_v41 = vand.u32 4294901760, %v6302_v3  ;;  %v9129_v15 = vpack.c.bf16 %v5889_v38, %v5871_v52 }
  0x8f   :  { %4682 = vmatprep.subr.bf16.mxu0 %v9113_v22  ;;  %9127 = vst [vmem:[#allocation8_spill] sm:$0xff] %v6312_v8  ;;  %v6349_v19 = vld [vmem:[%s8796_s1 + $0x190] sm:$0xff]  ;;  %v6354_v38 = vld [vmem:[%s8796_s1 + $0x198] sm:$0xff]  ;;  %v8867_v16 = vand.u32 4294901760, %v6327_v43  ;;  %v9130_v22 = vpack.c.bf16 %v5914_v50, %v5909_v29  ;;  %v9131_v29 = vpack.c.bf16 %v5974_v6, %v5969_v57 }
  0x90   :  { %329 = vmatprep.mubr.f32.mxu0 %v328_v48  ;;  %v6362_v23 = vld [vmem:[%s8796_s1 + $0x110] sm:$0xff]  ;;  %v6367_v48 = vld [vmem:[%s8796_s1 + $0x118] sm:$0xff]  ;;  %v8862_v50 = vand.u32 4294901760, %v6354_v38 }
  0x91   :  { %4724 = vmatpush3.bf16.msra.mxu1 %v9114_v60  ;;  %335 = vmatmul.mubr.f32.gmra.mrb[2].mxu0 %v334_v59  ;;  %v9121_v59 = vpack.c.bf16 %v5739_v10, %v5734_v42  ;;  %v9128_v42 = vpack.c.bf16 %v5865_v13, %v5849_v46  ;;  %v6322_v10 = vld [vmem:[%s8796_s1 + $0x180] sm:$0xff]  ;;  %v6342_v13 = vld [vmem:[%s8796_s1 + $0x108] sm:$0xff]  ;;  %v8861_v57 = vand.u32 4294901760, %v6362_v23  ;;  %v8858_v6 = vand.u32 4294901760, %v6367_v48 }
  0x92   :  { %4684 = vmatpush3.bf16.msra.mxu0 %v9115_v7  ;;  %709 = vmatprep.mubr.f32.mxu0 %v310_v61  ;;  %v6337_v46 = vld [vmem:[%s8796_s1 + $0x100] sm:$0xff]  ;;  %v8854_v7 = vand.u32 4294901760, %v6307_v31  ;;  %v8853_v61 = vand.u32 4294901760, %v6312_v8  ;;  %v8868_v52 = vand.u32 4294901760, %v6322_v10 }
  0x93   :  { %4726 = vmatprep.subr.bf16.mxu1 %v9116_v47  ;;  %4686 = vmatprep.subr.bf16.mxu0 %v9117_v20  ;;  %v8866_v20 = vand.u32 4294901760, %v6337_v46 }
  0x95   :  { %4728 = vmatpush3.bf16.msra.mxu1 %v9118_v21 }
  0x96   :  { %4688 = vmatpush3.bf16.msra.mxu0 %v9119_v24  ;;  %4730 = vmatprep.subr.bf16.mxu1 %v9120_v25  ;;  %v8857_v24 = vand.u32 4294901760, %v6342_v13 }
  0x97   :  { %4690 = vmatprep.subr.bf16.mxu0 %v9121_v59  ;;  %v6378_v59 = vsub.f32 %v6297_v62, %v8856_v55 }
  0x99   :  { %4732 = vmatpush3.bf16.msra.mxu1 %v6040_v56 }
  0x9a   :  { %4692 = vmatpush3.bf16.msra.mxu0 %v9122_v26  ;;  %4734 = vmatprep.subr.bf16.mxu1 %v6054_v18  ;;  %v6383_v26 = vsub.f32 %v6302_v3, %v8855_v41 }
  0x9b   :  { %4694 = vmatprep.subr.bf16.mxu0 %v9123_v30  ;;  %v6393_v30 = vsub.f32 %v6307_v31, %v8854_v7  ;;  %v8860_v7 = vand.u32 4294901760, %v6378_v59 }
  0x9c   :  { %v8859_v41 = vand.u32 4294901760, %v6383_v26 }
  0x9d   :  { %4736 = vmatpush3.bf16.msra.mxu1 %v6056_v33 }
  0x9e   :  { %4696 = vmatpush3.bf16.msra.mxu0 %v9128_v42  ;;  %4738 = vmatprep.subr.bf16.mxu1 %v6058_v51  ;;  %v6398_v42 = vsub.f32 %v6312_v8, %v8853_v61  ;;  %v6415_v61 = vsub.f32 %v6327_v43, %v8867_v16  ;;  %v9201_v8 = vld [vmem:[#allocation17_spill] sm:$0xff] }
  0x9f   :  { %4698 = vmatprep.subr.bf16.mxu0 %v9129_v15  ;;  %v9132_v15 = vand.u32 4294901760, %v6214_v28 }
  0xa0   :  { %9135 = vst [vmem:[#allocation22_spill] sm:$0xff] %v6415_v61  ;;  %v8864_v55 = vand.u32 4294901760, %v6398_v42 }
  0xa1   :  { %4740 = vmatpush3.bf16.msra.mxu1 %v6060_v0 }
  0xa2   :  { %4700 = vmatpush3.bf16.msra.mxu0 %v9130_v22  ;;  %4774 = vmatprep.subr.bf16.mxu1 %v5679_v63  ;;  %v8863_v63 = vand.u32 4294901760, %v6349_v19  ;;  %v9133_v22 = vand.u32 4294901760, %v6241_v54 }
  0xa3   :  { %4702 = vmatprep.subr.bf16.mxu0 %v9131_v29  ;;  %v6410_v29 = vsub.f32 %v6322_v10, %v8868_v52 }
  0xa4   :  { %829 = vmatmul.mubr.f32.vlgmr.msra.gmra.mrb[4].mxu1 %v9132_v15  ;;  %v9136_v15 = vpack.c.bf16 %v5993_v5, %v5982_v1  ;;  %v9139_v5 = vpack.c.bf16 %v6021_v40, %v6016_v35  ;;  %v6444_v1 = vsub.f32 %v6354_v38, %v8862_v50  ;;  %v6453_v35 = vsub.f32 %v6362_v23, %v8861_v57 }
  0xa5   :  { %836 = vmatprep.mubr.f32.mxu1 %v9133_v22  ;;  %4776 = vmatpush3.bf16.msra.mxu1 %v5697_v4  ;;  %9134 = vst [vmem:[#allocation9_spill] sm:$0xff] %v6410_v29  ;;  %v6424_v4 = vsub.f32 %v6337_v46, %v8866_v20  ;;  %v6429_v22 = vsub.f32 %v6342_v13, %v8857_v24  ;;  %v9142_v24 = vand.u32 4294901760, %v6243_v44  ;;  %v8869_v57 = vand.u32 4294901760, %v6415_v61 }
  0xa6   :  { %4704 = vmatpush3.bf16.msra.mxu0 %v9136_v15  ;;  %4778 = vmatprep.subr.bf16.mxu1 %v5724_v9  ;;  %v6439_v9 = vsub.f32 %v6349_v19, %v8863_v63  ;;  %9141 = vst [vmem:[#allocation26_spill] sm:$0xff] %v6444_v1  ;;  %v8865_v15 = vand.u32 4294901760, %v6393_v30  ;;  %9143 = vst [vmem:[#allocation27_spill] sm:$0xff] %v6453_v35  ;;  %v6458_v40 = vsub.f32 %v6367_v48, %v8858_v6  ;;  %v6479_v6 = vld [vmem:[%s8796_s1 + $0x1a8] sm:$0xff]  ;;  %v6497_v63 = vld [vmem:[%s8796_s1 + $0x120] sm:$0xff] }
  0xa7   :  { %9137 = vst [vmem:[#allocation23_spill] sm:$0xff] %v6424_v4  ;;  %9138 = vst [vmem:[#allocation24_spill] sm:$0xff] %v6429_v22  ;;  %4706 = vmatprep.subr.bf16.mxu0 %v9139_v5  ;;  %v6464_v5 = vpack.c.bf16 %v8859_v41, %v8860_v7  ;;  %v9147_v41 = vpack.c.bf16 %v6031_v39, %v6029_v32  ;;  %v8870_v7 = vand.u32 4294901760, %v6410_v29  ;;  %v8871_v50 = vand.u32 4294901760, %v6424_v4 }
  0xa8   :  { %9140 = vst [vmem:[#allocation25_spill] sm:$0xff] %v6439_v9  ;;  %840 = vmatmul.mubr.f32.gmra.mrb[6].mxu1 %v9142_v24  ;;  %9144 = vst [vmem:[#allocation28_spill] sm:$0xff] %v6458_v40  ;;  %v6474_v24 = vld [vmem:[%s8796_s1 + $0x1a0] sm:$0xff]  ;;  %v8873_v32 = vand.u32 4294901760, %v6439_v9  ;;  %v1381_v52 = vsub.f32 %v6415_v61, %v8869_v57  ;;  %v9148_v57 = vand.u32 4294901760, %v6444_v1 }
  0xa9   :  { %9145 = vst [vmem:[#allocation29_spill] sm:$0xff] %v6464_v5  ;;  %4780 = vmatpush3.bf16.msra.mxu1 %v5786_v11  ;;  %3889 = vmatprep.mubr.msk.f32.mxu1 %vm33_vm0, %v9109_v14  ;;  %v6485_v11 = vpack.c.bf16 %v8864_v55, %v8865_v15  ;;  %v6502_v55 = vld [vmem:[%s8796_s1 + $0x128] sm:$0xff]  ;;  %v8874_v15 = vand.u32 4294901760, %v6453_v35  ;;  %v8877_v16 = vand.u32 4294901760, %v6474_v24  ;;  %v1374_v20 = vsub.f32 %v6410_v29, %v8870_v7 }
  0xaa   :  { %4708 = vmatpush3.bf16.msra.mxu0 %v9147_v41  ;;  %4782 = vmatprep.subr.bf16.mxu1 %v5817_v2  ;;  %v8872_v2 = vand.u32 4294901760, %v6429_v22  ;;  %v6511_v41 = vld [vmem:[%s8796_s1 + $0x1b0] sm:$0xff]  ;;  %v8876_v39 = vand.u32 4294901760, %v6502_v55  ;;  %v1395_v7 = vsub.f32 %v6444_v1, %v9148_v57 }
  0xab   :  { %9146 = vst [vmem:[#allocation30_spill] sm:$0xff] %v6485_v11  ;;  %4742 = vmatprep.subr.bf16.mxu0 %v6102_v12  ;;  %v8875_v12 = vand.u32 4294901760, %v6497_v63 }
  0xac   :  { %v1396_v11 = vand.u32 4294901760, %v1395_v7 }
  0xad   :  { %712 = vmatmul.mubr.f32.vlgmr.msra.gmra.mrb[4].mxu0 %v6214_v28  ;;  %4784 = vmatpush3.bf16.msra.mxu1 %v5841_v58  ;;  %v1262_v58 = vsub.f32 %v6424_v4, %v8871_v50  ;;  %v1276_v50 = vsub.f32 %v6453_v35, %v8874_v15  ;;  %v9151_v28 = vand.u32 4294901760, %v6479_v6  ;;  %v6565_v57 = vsub.f32 %v6497_v63, %v8875_v12 }
  0xae   :  { %718 = vmatprep.mubr.f32.mxu0 %v6241_v54  ;;  %4744 = vmatpush3.bf16.msra.mxu0 %v6108_v36  ;;  %v1269_v36 = vsub.f32 %v6429_v22, %v8872_v2  ;;  %v1388_v54 = vsub.f32 %v6439_v9, %v8873_v32  ;;  %v6553_v2 = vsub.f32 %v6474_v24, %v8877_v16  ;;  %v9155_v15 = vand.u32 4294901760, %v6511_v41 }
  0xaf   :  { %4786 = vmatprep.subr.bf16.mxu1 %v9112_v53  ;;  %4746 = vmatprep.subr.bf16.mxu0 %v6115_v37  ;;  %v9149_v53 = vand.u32 4294901760, %v6458_v40  ;;  %v6558_v32 = vsub.f32 %v6479_v6, %v9151_v28  ;;  %9153 = vst [vmem:[#allocation33_spill] sm:$0xff] %v6565_v57  ;;  %v1382_v28 = vand.u32 4294901760, %v1381_v52  ;;  %v6592_v52 = vld [vmem:[%s8796_s1 + $0x130] sm:$0xff]  ;;  %v8878_v7 = vand.u32 4294901760, %v6565_v57 }
  0xb0   :  { %9150 = vst [vmem:[#allocation31_spill] sm:$0xff] %v6553_v2  ;;  %v6585_v12 = vsub.f32 %v6511_v41, %v9155_v15  ;;  %v1389_v16 = vand.u32 4294901760, %v1388_v54  ;;  %v1277_v15 = vand.u32 4294901760, %v1276_v50  ;;  %v9174_v35 = vand.u32 4294901760, %v6342_v13  ;;  %v9175_v13 = vld [vmem:[#allocation13_spill] sm:$0xff] }
  0xb1   :  { %v1283_v37 = vsub.f32 %v6458_v40, %v9149_v53  ;;  %9152 = vst [vmem:[#allocation32_spill] sm:$0xff] %v6558_v32  ;;  %721 = vmatmul.mubr.f32.gmra.mrb[6].mxu0 %v6243_v44  ;;  %4788 = vmatpush3.bf16.msra.mxu1 %v9114_v60  ;;  %v6570_v53 = vsub.f32 %v6502_v55, %v8876_v39  ;;  %v1375_v44 = vand.u32 4294901760, %v1374_v20  ;;  %v6580_v60 = vld [vmem:[%s8796_s1 + $0x1b8] sm:$0xff]  ;;  %v1270_v39 = vand.u32 4294901760, %v1269_v36 }
  0xb2   :  { %4748 = vmatpush3.bf16.msra.mxu0 %v6121_v34  ;;  %3885 = vmatprep.mubr.msk.f32.mxu0 %vm33_vm0, %v9109_v14  ;;  %9156 = vst [vmem:[#allocation35_spill] sm:$0xff] %v6585_v12  ;;  %v1263_v34 = vand.u32 4294901760, %v1262_v58  ;;  %v6597_v20 = vld [vmem:[%s8796_s1 + $0x138] sm:$0xff]  ;;  %v6616_v58 = vld [vmem:[%s8796_s1 + $0x1c0] sm:$0xff]  ;;  %v6618_v36 = vpack.c.bf16 %v1396_v11, %v1389_v16  ;;  %v9160_v11 = vand.u32 4294901760, %v6322_v10 }
  0xb3   :  { %9154 = vst [vmem:[#allocation34_spill] sm:$0xff] %v6570_v53  ;;  %4790 = vmatprep.subr.bf16.mxu1 %v9116_v47  ;;  %4750 = vmatprep.subr.bf16.mxu0 %v6127_v49  ;;  %v1284_v5 = vand.u32 4294901760, %v1283_v37  ;;  %v9157_v47 = vld [vmem:[#allocation10_spill] sm:$0xff]  ;;  %v4837_v49 = vpack.c.bf16 %v1382_v28, %v1375_v44  ;;  %v9159_v37 = vand.u32 4294901760, %v6558_v32  ;;  %v6636_v16 = vld [vmem:[%s8796_s1 + $0x140] sm:$0xff]  ;;  %v9161_v44 = vand.u32 4294901760, %v6327_v43 }
  0xb4   :  { %v9165_v10 = vld [vmem:[#allocation11_spill] sm:$0xff]  ;;  %v9166_v43 = vld [vmem:[#allocation20_spill] sm:$0xff] }
  0xb5   :  { %4792 = vmatpush3.bf16.msra.mxu1 %v9118_v21  ;;  %v6611_v21 = vpack.c.bf16 %v1270_v39, %v1263_v34  ;;  %v6631_v39 = vld [vmem:[%s8796_s1 + $0x1c8] sm:$0xff]  ;;  %v6648_v28 = vpack.c.bf16 %v9161_v44, %v9160_v11  ;;  %v1290_v34 = vsub.f32 %v6565_v57, %v8878_v7  ;;  %v6669_v11 = vadd.s32 384, %v9166_v43 }
  0xb6   :  { %4752 = vmatpush3.bf16.msra.mxu0 %v6133_v45  ;;  %4794 = vmatprep.subr.bf16.mxu1 %v9120_v25  ;;  %v6620_v45 = vpack.c.bf16 %v1284_v5, %v1277_v15  ;;  %v9158_v25 = vand.u32 4294901760, %v6553_v2  ;;  %v6641_v5 = vld [vmem:[%s8796_s1 + $0x148] sm:$0xff]  ;;  %v9162_v15 = vand.u32 4294901760, %v6570_v53  ;;  %v9167_v44 = vand.u32 4294901760, %v6585_v12 }
  0xb7   :  { %4754 = vmatprep.subr.bf16.mxu0 %v9157_v47  ;;  %v1409_v47 = vsub.f32 %v6558_v32, %v9159_v37  ;;  %vm35_vm4 = vcmp.eq.s32.totalorder %v6669_v11, %v6196_v17  ;;  %v9181_v32 = vand.u32 4294901760, %v6636_v16 }
  0xb8   :  { %v1402_v50 = vsub.f32 %v6553_v2, %v9158_v25  ;;  %v1297_v37 = vsub.f32 %v6570_v53, %v9162_v15  ;;  %v9163_v25 = vand.u32 4294901760, %v6580_v60  ;;  %v6674_v15 = vsub.f32 %v6585_v12, %v9167_v44 }
  0xb9   :  { %4796 = vmatpush3.bf16.msra.mxu1 %v6040_v56  ;;  %v6664_v56 = vld [vmem:[%s8796_s1 + $0x1d0] sm:$0xff]  ;;  %v9170_v53 = vand.u32 4294901760, %v6597_v20  ;;  %v1410_v40 = vand.u32 4294901760, %v1409_v47  ;;  %v9186_v12 = vmov 0.0  }
  0xba   :  { %v6659_v54 = vsub.f32 %v6580_v60, %v9163_v25  ;;  %4756 = vmatpush3.bf16.msra.mxu0 %v9165_v10  ;;  %4798 = vmatprep.subr.bf16.mxu1 %v6054_v18  ;;  %v9168_v25 = vand.u32 4294901760, %v6592_v52  ;;  %v6689_v18 = vld [vmem:[%s8796_s1 + $0x1d8] sm:$0xff]  ;;  %v9172_v10 = vld [vmem:[#allocation12_spill] sm:$0xff]  ;;  %v1403_v2 = vand.u32 4294901760, %v1402_v50  ;;  %v8902_v9 = vand.u32 4294901760, %v6664_v56  ;;  %v6709_v50 = vld [vmem:[%s8796_s1 + $0x150] sm:$0xff] }
  0xbb   :  { %v6684_v57 = vsub.f32 %v6597_v20, %v9170_v53  ;;  %4758 = vmatprep.subr.bf16.mxu0 %v9172_v10  ;;  %v9173_v53 = vand.u32 4294901760, %v6337_v46  ;;  %v1291_v10 = vand.u32 4294901760, %v1290_v34  ;;  %v1298_v44 = vand.u32 4294901760, %v1297_v37  ;;  %v6714_v46 = vld [vmem:[%s8796_s1 + $0x158] sm:$0xff] }
  0xbc   :  { %9164 = vst [vmem:[#allocation10_spill] sm:$0xff] %v6659_v54  ;;  %v6679_v7 = vsub.f32 %v6592_v52, %v9168_v25  ;;  %v8897_v25 = vand.u32 4294901760, %v6641_v5  ;;  %v9176_v34 = vld [vmem:[#allocation14_spill] sm:$0xff]  ;;  %v9177_v37 = vand.u32 4294901760, %v6616_v58  ;;  %v3868_v22 = vsel %vm35_vm4, 1.0, %v9186_v12 }
  0xbd   :  { %9171 = vst [vmem:[#allocation36_spill] sm:$0xff] %v6684_v57  ;;  %v6700_v1 = vpack.c.bf16 %v9174_v35, %v9173_v53  ;;  %4800 = vmatpush3.bf16.msra.mxu1 %v6056_v33  ;;  %v6737_v33 = vsub.f32 %v6636_v16, %v9181_v32  ;;  %v6757_v32 = vsub.f32 %v6664_v56, %v8902_v9  ;;  %v9188_v9 = vand.u32 4294901760, %v6689_v18  ;;  %v9190_v35 = vld [vmem:[#allocation15_spill] sm:$0xff] }
  0xbe   :  { %9169 = vst [vmem:[#allocation11_spill] sm:$0xff] %v6679_v7  ;;  %4760 = vmatpush3.bf16.msra.mxu0 %v9175_v13  ;;  %4802 = vmatprep.subr.bf16.mxu1 %v6058_v51  ;;  %v6727_v53 = vsub.f32 %v6616_v58, %v9177_v37  ;;  %v9179_v13 = vand.u32 4294901760, %v6631_v39  ;;  %v6742_v47 = vsub.f32 %v6641_v5, %v8897_v25  ;;  %v6752_v37 = vld [vmem:[%s8796_s1 + $0x1e8] sm:$0xff]  ;;  %v9192_v29 = vand.u32 4294901760, %v6684_v57 }
  0xbf   :  { %4762 = vmatprep.subr.bf16.mxu0 %v9176_v34  ;;  %9182 = vst [vmem:[#allocation14_spill] sm:$0xff] %v6737_v33  ;;  %v6747_v34 = vld [vmem:[%s8796_s1 + $0x1e0] sm:$0xff]  ;;  %9185 = vst [vmem:[#allocation39_spill] sm:$0xff] %v6757_v32  ;;  %v6766_v4 = vpack.c.bf16 %v1298_v44, %v1291_v10  ;;  %v6774_v61 = vsub.f32 %v6689_v18, %v9188_v9 }
  0xc0   :  { %9178 = vst [vmem:[#allocation12_spill] sm:$0xff] %v6727_v53  ;;  %v6732_v51 = vsub.f32 %v6631_v39, %v9179_v13  ;;  %9183 = vst [vmem:[#allocation37_spill] sm:$0xff] %v6742_v47  ;;  %v4845_v13 = vpack.c.bf16 %v1410_v40, %v1403_v2  ;;  %v9187_v40 = vand.u32 4294901760, %v6659_v54  ;;  %v1311_v44 = vsub.f32 %v6684_v57, %v9192_v29  ;;  %v6788_v9 = vld [vmem:[%s8796_s1 + $0x160] sm:$0xff] }
  0xc1   :  { %9184 = vst [vmem:[#allocation38_spill] sm:$0xff] %v6747_v34  ;;  %4804 = vmatpush3.bf16.msra.mxu1 %v6060_v0  ;;  %9189 = vst [vmem:[#allocation40_spill] sm:$0xff] %v6774_v61  ;;  %v9191_v0 = vand.u32 4294901760, %v6679_v7  ;;  %v6804_v57 = vsub.f32 %v3868_v22, %v3868_v22  ;;  %v9198_v29 = vand.u32 4294901760, %v6714_v46  ;;  %v9202_v3 = vand.u32 4294901760, %v6747_v34 }
  0xc2   :  { %9180 = vst [vmem:[#allocation13_spill] sm:$0xff] %v6732_v51  ;;  %v1423_v2 = vsub.f32 %v6659_v54, %v9187_v40  ;;  %4764 = vmatpush3.bf16.msra.mxu0 %v9190_v35  ;;  %4838 = vmatprep.subr.bf16.mxu1 %v4837_v49  ;;  %9193 = vst [vmem:[#allocation15_spill] sm:$0xff] %v6788_v9  ;;  %v6793_v49 = vld [vmem:[%s8796_s1 + $0x168] sm:$0xff]  ;;  %v9196_v54 = vand.u32 4294901760, %v6709_v50  ;;  %v9200_v40 = vld [vmem:[#allocation21_spill] sm:$0xff]  ;;  %v1312_v31 = vand.u32 4294901760, %v1311_v44 }
  0xc3   :  { %v1304_v25 = vsub.f32 %v6679_v7, %v9191_v0  ;;  %9194 = vst [vmem:[#allocation41_spill] sm:$0xff] %v6793_v49  ;;  %v9195_v35 = vld [vmem:[#allocation16_spill] sm:$0xff]  ;;  %v6815_v10 = vsub.f32 %v6714_v46, %v9198_v29  ;;  %v6830_v62 = vsub.f32 %v6747_v34, %v9202_v3  ;;  %v9204_v7 = vld [vmem:[#allocation18_spill] sm:$0xff]  ;;  %v9207_v44 = vand.u32 4294901760, %v6737_v33 }
  0xc4   :  { %4766 = vmatprep.subr.bf16.mxu0 %v9195_v35  ;;  %3890 = vmatmul.mubr.msk.f32.vlgmr.msra.gmra.mrb[8].mxu1 %vm32_vm1, %v9109_v14  ;;  %v6810_v35 = vsub.f32 %v6709_v50, %v9196_v54  ;;  %v1424_v22 = vand.u32 4294901760, %v1423_v2  ;;  %v9205_v54 = vand.u32 4294901760, %v6727_v53  ;;  %v9208_v0 = vand.u32 4294901760, %v6742_v47 }
  0xc5   :  { %9199 = vst [vmem:[#allocation42_spill] sm:$0xff] %v6815_v10  ;;  %3891 = vmatprep.mubr.msk.f32.mxu1 %vm41_vm2, %v9109_v14  ;;  %4840 = vmatpush3.bf16.msra.mxu1 %v6611_v21  ;;  %v1305_v29 = vand.u32 4294901760, %v1304_v25  ;;  %v9203_v21 = vand.u32 4294901760, %v6752_v37  ;;  %v1318_v3 = vsub.f32 %v6737_v33, %v9207_v44  ;;  %v9215_v33 = vand.u32 4294901760, %v6349_v19 }
  0xc6   :  { %9197 = vst [vmem:[#allocation16_spill] sm:$0xff] %v6810_v35  ;;  %4768 = vmatpush3.bf16.msra.mxu0 %v9201_v8  ;;  %4842 = vmatprep.subr.bf16.mxu1 %v6618_v36  ;;  %v1430_v8 = vsub.f32 %v6727_v53, %v9205_v54  ;;  %v9206_v36 = vand.u32 4294901760, %v6732_v51  ;;  %v1325_v34 = vsub.f32 %v6742_v47, %v9208_v0  ;;  %v9209_v54 = vand.u32 4294901760, %v6757_v32 }
  0xc7   :  { %v6835_v2 = vsub.f32 %v6752_v37, %v9203_v21  ;;  %4770 = vmatprep.subr.bf16.mxu0 %v9204_v7  ;;  %v9210_v0 = vand.u32 4294901760, %v6774_v61  ;;  %v9211_v7 = vand.u32 4294901760, %v6788_v9  ;;  %v9218_v19 = vand.u32 4294901760, %v6810_v35 }
  0xc8   :  { %v1437_v25 = vsub.f32 %v6732_v51, %v9206_v36  ;;  %3892 = vmatmul.mubr.msk.f32.gmra.mrb[10].mxu1 %vm40_vm3, %v9109_v14  ;;  %v1444_v21 = vsub.f32 %v6757_v32, %v9209_v54  ;;  %v9212_v54 = vand.u32 4294901760, %v6793_v49  ;;  %v9214_v36 = vand.u32 4294901760, %v6674_v15 }
  0xc9   :  { %4844 = vmatpush3.bf16.msra.mxu1 %v6620_v45  ;;  %3893 = vmatprep.mubr.msk.f32.mxu1 %vm35_vm4, %v9109_v14  ;;  %v1451_v44 = vsub.f32 %v6774_v61, %v9210_v0  ;;  %v6871_v47 = vsub.f32 %v6788_v9, %v9211_v7  ;;  %v9213_v45 = vld [vmem:[#allocation19_spill] sm:$0xff]  ;;  %v9216_v0 = vand.u32 4294901760, %v6354_v38  ;;  %v8932_v7 = vand.u32 4294901760, %v6830_v62 }
  0xca   :  { %v6876_v51 = vsub.f32 %v6793_v49, %v9212_v54  ;;  %4772 = vmatpush3.bf16.msra.mxu0 %v9213_v45  ;;  %4846 = vmatprep.subr.bf16.mxu1 %v4845_v13  ;;  %v4849_v32 = vpack.c.bf16 %v1424_v22, %v9214_v36  ;;  %v8933_v53 = vand.u32 4294901760, %v6835_v2  ;;  %v4851_v54 = vpack.c.bf16 %v1312_v31, %v1305_v29 }
  0xcb   :  { %v6885_v61 = vpack.c.bf16 %v9216_v0, %v9215_v33  ;;  %4806 = vmatprep.subr.bf16.mxu0 %v6648_v28  ;;  %v1431_v49 = vand.u32 4294901760, %v1430_v8  ;;  %v1438_v9 = vand.u32 4294901760, %v1437_v25  ;;  %v1319_v45 = vand.u32 4294901760, %v1318_v3 }
  0xcc   :  { %v9217_v13 = vand.u32 4294901760, %v6804_v57  ;;  %v1326_v22 = vand.u32 4294901760, %v1325_v34  ;;  %v1332_v38 = vsub.f32 %v6810_v35, %v9218_v19  ;;  %v9219_v33 = vand.u32 4294901760, %v6815_v10 }
  0xcd   :  { %3886 = vmatmul.mubr.msk.f32.vlgmr.msra.gmra.mrb[8].mxu0 %vm32_vm1, %v9109_v14  ;;  %4848 = vmatpush3.bf16.msra.mxu1 %v6766_v4  ;;  %v1445_v31 = vand.u32 4294901760, %v1444_v21  ;;  %v1452_v29 = vand.u32 4294901760, %v1451_v44  ;;  %v8935_v8 = vand.u32 4294901760, %v6871_v47  ;;  %v8934_v34 = vand.u32 4294901760, %v6876_v51 }
  0xce   :  { %v1230_v15 = vsub.f32 %v6804_v57, %v9217_v13  ;;  %v1339_v36 = vsub.f32 %v6815_v10, %v9219_v33  ;;  %3887 = vmatprep.mubr.msk.f32.mxu0 %vm41_vm2, %v9109_v14  ;;  %4808 = vmatpush3.bf16.msra.mxu0 %v6700_v1  ;;  %v9220_v25 = vand.u32 4294901760, %v6362_v23  ;;  %v9221_v3 = vand.u32 4294901760, %v6367_v48 }
  0xcf   :  { %v1458_v4 = vsub.f32 %v6830_v62, %v8932_v7  ;;  %v1465_v21 = vsub.f32 %v6835_v2, %v8933_v53  ;;  %4850 = vmatprep.subr.bf16.mxu1 %v4849_v32  ;;  %4810 = vmatprep.subr.bf16.mxu0 %v6885_v61  ;;  %v4853_v27 = vpack.c.bf16 %v1438_v9, %v1431_v49  ;;  %v9222_v44 = vand.u32 4294901760, %v6474_v24 }
  0xd0   :  { %v6915_v0 = vpack.c.bf16 %v9221_v3, %v9220_v25  ;;  %v9223_v23 = vand.u32 4294901760, %v6479_v6  ;;  %v9224_v48 = vand.u32 4294901760, %v6497_v63  ;;  %v9225_v19 = vand.u32 4294901760, %v6502_v55 }
  0xd1   :  { %v1231_v25 = vand.u32 4294901760, %v1230_v15  ;;  %v4855_v3 = vpack.c.bf16 %v1326_v22, %v1319_v45  ;;  %v1333_v7 = vand.u32 4294901760, %v1332_v38  ;;  %v1340_v53 = vand.u32 4294901760, %v1339_v36  ;;  %3888 = vmatmul.mubr.msk.f32.gmra.mrb[10].mxu0 %vm40_vm3, %v9109_v14  ;;  %4852 = vmatpush3.bf16.msra.mxu1 %v4851_v54 }
  0xd2   :  { %v6928_v13 = vpack.c.bf16 %v9223_v23, %v9222_v44  ;;  %v6934_v33 = vpack.c.bf16 %v9225_v19, %v9224_v48  ;;  %v4857_v24 = vpack.c.bf16 %v1452_v29, %v1445_v31  ;;  %v1346_v6 = vsub.f32 %v6871_v47, %v8935_v8  ;;  %4812 = vmatpush3.bf16.msra.mxu0 %v6915_v0  ;;  %v9284_v8 = vld [vmem:[#allocation12_spill] sm:$0xff] }
  0xd3   :  { %v1353_v55 = vsub.f32 %v6876_v51, %v8934_v34  ;;  %1232 = vmatprep.mubr.f32.mxu0 %v1231_v25  ;;  %v1459_v63 = vand.u32 4294901760, %v1458_v4  ;;  %v1466_v32 = vand.u32 4294901760, %v1465_v21  ;;  %v9226_v9 = vand.u32 4294901760, %v6378_v59  ;;  %4854 = vmatprep.subr.bf16.mxu1 %v4853_v27 }
  0xd4   :  { %v9227_v54 = vand.u32 4294901760, %v6383_v26  ;;  %4814 = vmatprep.subr.bf16.mxu0 %v6928_v13  ;;  %v9228_v15 = vand.u32 4294901760, %v6511_v41  ;;  %v9229_v22 = vand.u32 4294901760, %v6580_v60  ;;  %v4859_v36 = vpack.c.bf16 %v1340_v53, %v1333_v7 }
  0xd5   :  { %v1472_v49 = vsub.f32 %v6378_v59, %v9226_v9  ;;  %v6961_v31 = vadd.s32 256, %v9166_v43  ;;  %4856 = vmatpush3.bf16.msra.mxu1 %v4855_v3  ;;  %v1347_v29 = vand.u32 4294901760, %v1346_v6  ;;  %v1354_v4 = vand.u32 4294901760, %v1353_v55 }
  0xd6   :  { %v1479_v45 = vsub.f32 %v6383_v26, %v9227_v54  ;;  %v6958_v38 = vpack.c.bf16 %v9229_v22, %v9228_v15  ;;  %v9231_v21 = vand.u32 4294901760, %v6393_v30  ;;  %v9232_v27 = vand.u32 4294901760, %v6398_v42  ;;  %4816 = vmatpush3.bf16.msra.mxu0 %v6934_v33  ;;  %4858 = vmatprep.subr.bf16.mxu1 %v4857_v24  ;;  %v9248_v22 = vld [vmem:[#allocation38_spill] sm:$0xff] }
  0xd7   :  { %9230 = vst [vmem:[#allocation17_spill] sm:$0xff] %v6961_v31  ;;  %v9233_v41 = vand.u32 4294901760, %v6592_v52  ;;  %v9234_v60 = vand.u32 4294901760, %v6597_v20  ;;  %v4861_v7 = vpack.c.bf16 %v1466_v32, %v1459_v63  ;;  %v1473_v48 = vand.u32 4294901760, %v1472_v49 }
  0xd8   :  { %v1360_v44 = vsub.f32 %v6393_v30, %v9231_v21  ;;  %v1367_v23 = vsub.f32 %v6398_v42, %v9232_v27  ;;  %v1480_v19 = vand.u32 4294901760, %v1479_v45  ;;  %4818 = vmatprep.subr.bf16.mxu0 %v6958_v38  ;;  %v9236_v25 = vand.u32 4294901760, %v6616_v58  ;;  %v9254_v27 = vld [vmem:[#allocation41_spill] sm:$0xff] }
  0xd9   :  { %v6974_v53 = vpack.c.bf16 %v9234_v60, %v9233_v41  ;;  %v9237_v3 = vand.u32 4294901760, %v6631_v39  ;;  %4860 = vmatpush3.bf16.msra.mxu1 %v4859_v36  ;;  %v4863_v55 = vpack.c.bf16 %v1354_v4, %v1347_v29  ;;  %vm34_vm5 = vcmp.eq.s32.totalorder %v6961_v31, %v6196_v17  ;;  %v9256_v60 = vld [vmem:[#allocation5_spill] sm:$0xff] }
  0xda   :  { %v1361_v24 = vand.u32 4294901760, %v1360_v44  ;;  %v1368_v9 = vand.u32 4294901760, %v1367_v23  ;;  %4862 = vmatprep.subr.bf16.mxu1 %v4861_v7  ;;  %v9239_v52 = vand.u32 4294901760, %v6636_v16  ;;  %v9240_v20 = vand.u32 4294901760, %v6641_v5 }
  0xdb   :  { %9235 = vst [vmem:[#allocation18_spill] sm:$0xff] %v6974_v53  ;;  %v6981_v6 = vpack.c.bf16 %v9237_v3, %v9236_v25  ;;  %4820 = vmatpush3.bf16.msra.mxu0 %v6974_v53  ;;  %v4865_v58 = vpack.c.bf16 %v1480_v19, %v1473_v48  ;;  %vm43_vm6 = vcmp.eq.s32.totalorder %v6669_v11, %v9200_v40  ;;  %v9242_v39 = vand.u32 4294901760, %v6664_v56  ;;  %v9258_v48 = vld [vmem:[#allocation6_spill] sm:$0xff] }
  0xdc   :  { %v6990_v63 = vpack.c.bf16 %v9240_v20, %v9239_v52  ;;  %v9243_v32 = vand.u32 4294901760, %v6689_v18  ;;  %v3867_v16 = vsel %vm34_vm5, 1.0, %v9186_v12  ;;  %v4867_v5 = vpack.c.bf16 %v1368_v9, %v1361_v24  ;;  %v9260_v24 = vld [vmem:[#allocation7_spill] sm:$0xff]  ;;  %v9262_v52 = vld [vmem:[#allocation8_spill] sm:$0xff] }
  0xdd   :  { %9238 = vst [vmem:[#allocation19_spill] sm:$0xff] %v6981_v6  ;;  %4822 = vmatprep.subr.bf16.mxu0 %v6981_v6  ;;  %4864 = vmatpush3.bf16.msra.mxu1 %v4863_v55  ;;  %v3876_v54 = vsel %vm43_vm6, 1.0, %v9186_v12  ;;  %vm42_vm7 = vcmp.eq.s32.totalorder %v6961_v31, %v9200_v40  ;;  %v9245_v56 = vand.u32 4294901760, %v6709_v50  ;;  %v9246_v18 = vand.u32 4294901760, %v6714_v46  ;;  %v9252_v46 = vld [vmem:[#allocation15_spill] sm:$0xff]  ;;  %v9289_v31 = vld [vmem:[#allocation14_spill] sm:$0xff] }
  0xde   :  { %9241 = vst [vmem:[#allocation43_spill] sm:$0xff] %v6990_v63  ;;  %v6999_v49 = vpack.c.bf16 %v9243_v32, %v9242_v39  ;;  %4866 = vmatprep.subr.bf16.mxu1 %v4865_v58  ;;  %v7019_v15 = vsub.f32 %v3867_v16, %v3867_v16  ;;  %v9249_v36 = vand.u32 4294901760, %v9248_v22  ;;  %v9250_v29 = vand.u32 4294901760, %v6752_v37  ;;  %v9264_v32 = vld [vmem:[#allocation9_spill] sm:$0xff]  ;;  %v9265_v16 = vld [vmem:[#allocation22_spill] sm:$0xff]  ;;  %v9267_v22 = vld [vmem:[#allocation23_spill] sm:$0xff] }
  0xdf   :  { %4824 = vmatpush3.bf16.msra.mxu0 %v6990_v63  ;;  %v7016_v45 = vpack.c.bf16 %v9246_v18, %v9245_v56  ;;  %v7027_v21 = vsub.f32 %v3876_v54, %v3876_v54  ;;  %v3875_v50 = vsel %vm42_vm7, 1.0, %v9186_v12  ;;  %v9253_v44 = vand.u32 4294901760, %v9252_v46 }
  0xe0   :  { %9244 = vst [vmem:[#allocation44_spill] sm:$0xff] %v6999_v49  ;;  %4826 = vmatprep.subr.bf16.mxu0 %v6999_v49  ;;  %v7025_v4 = vpack.c.bf16 %v9250_v29, %v9249_v36  ;;  %v9255_v23 = vand.u32 4294901760, %v9254_v27  ;;  %v7042_v37 = vsub.f32 %v3875_v50, %v3875_v50  ;;  %v9257_v7 = vand.u32 4294901760, %v9256_v60  ;;  %v9268_v36 = vld [vmem:[#allocation24_spill] sm:$0xff]  ;;  %v9270_v27 = vld [vmem:[#allocation26_spill] sm:$0xff] }
  0xe1   :  { %9247 = vst [vmem:[#allocation45_spill] sm:$0xff] %v7016_v45  ;;  %4868 = vmatpush3.bf16.msra.mxu1 %v4867_v5  ;;  %v9259_v19 = vand.u32 4294901760, %v9258_v48  ;;  %v8938_v3 = vand.u32 4294901760, %v7019_v15  ;;  %v8937_v55 = vand.u32 4294901760, %v7027_v21  ;;  %v9261_v9 = vand.u32 4294901760, %v9260_v24  ;;  %v9272_v48 = vld [vmem:[#allocation28_spill] sm:$0xff] }
  0xe2   :  { %9251 = vst [vmem:[#allocation38_spill] sm:$0xff] %v7025_v4  ;;  %4902 = vmatprep.subr.bf16.mxu1 %v6648_v28  ;;  %v7039_v41 = vpack.c.bf16 %v9255_v23, %v9253_v44  ;;  %v9263_v20 = vand.u32 4294901760, %v9262_v52  ;;  %v4869_v5 = vpack.c.bf16 %v9265_v16, %v9264_v32  ;;  %v8936_v54 = vand.u32 4294901760, %v7042_v37  ;;  %v9269_v44 = vld [vmem:[#allocation25_spill] sm:$0xff]  ;;  %v9274_v52 = vld [vmem:[#allocation32_spill] sm:$0xff] }
  0xe3   :  { %4828 = vmatpush3.bf16.msra.mxu0 %v7016_v45  ;;  %v7048_v25 = vpack.c.bf16 %v9259_v19, %v9257_v7  ;;  %v1236_v39 = vsub.f32 %v7019_v15, %v8938_v3  ;;  %v1245_v56 = vsub.f32 %v7027_v21, %v8937_v55  ;;  %v9266_v18 = vand.u32 4294901760, %v6804_v57  ;;  %v9271_v7 = vld [vmem:[#allocation27_spill] sm:$0xff] }
  0xe4   :  { %4830 = vmatprep.subr.bf16.mxu0 %v7025_v4  ;;  %3894 = vmatmul.mubr.msk.f32.vlgmr.msra.gmra.mrb[12].mxu1 %vm34_vm5, %v9109_v14  ;;  %v7067_v58 = vpack.c.bf16 %v9263_v20, %v9261_v9  ;;  %v4871_v29 = vpack.c.bf16 %v9268_v36, %v9267_v22  ;;  %v1251_v46 = vsub.f32 %v7042_v37, %v8936_v54  ;;  %v9273_v9 = vld [vmem:[#allocation31_spill] sm:$0xff]  ;;  %v9285_v54 = vld [vmem:[#allocation13_spill] sm:$0xff]  ;;  %vm3846_vm1 = vcmask 261120  }
  0xe5   :  { %3895 = vmatprep.mubr.msk.f32.mxu1 %vm43_vm6, %v9109_v14  ;;  %4904 = vmatpush3.bf16.msra.mxu1 %v6700_v1  ;;  %v1237_v50 = vand.u32 4294901760, %v1236_v39  ;;  %v4873_v23 = vpack.c.bf16 %v9270_v27, %v9269_v44  ;;  %v1246_v60 = vand.u32 4294901760, %v1245_v56  ;;  %v4875_v19 = vpack.c.bf16 %v9272_v48, %v9271_v7  ;;  %v7104_v39 = vld [vmem:[%s8796_s1 + $0x240] sm:$0xff]  ;;  %v9277_v56 = vld [vmem:[#allocation33_spill] sm:$0xff] }
  0xe6   :  { %4906 = vmatprep.subr.bf16.mxu1 %v6885_v61  ;;  %v1252_v24 = vand.u32 4294901760, %v1251_v46  ;;  %v4877_v20 = vpack.c.bf16 %v9274_v52, %v9273_v9  ;;  %9275 = vst [vmem:[#allocation15_spill] sm:$0xff] %v7104_v39  ;;  %v9280_v46 = vld [vmem:[#allocation10_spill] sm:$0xff]  ;;  %v4885_v55 = vpack.c.bf16 %v9285_v54, %v9284_v8 }
  0xe7   :  { %4832 = vmatpush3.bf16.msra.mxu0 %v7039_v41  ;;  %v7201_v54 = vld [vmem:[%s8796_s1 + $0x278] sm:$0xff] }
  0xe8   :  { %4834 = vmatprep.subr.bf16.mxu0 %v7048_v25  ;;  %3896 = vmatmul.mubr.msk.f32.gmra.mrb[14].mxu1 %vm42_vm7, %v9109_v14  ;;  %9301 = vst [vmem:[#allocation28_spill] sm:$0xff] %v7201_v54 }
  0xe9   :  { %4908 = vmatpush3.bf16.msra.mxu1 %v6915_v0  ;;  %1743 = vmatprep.mubr.f32.mxu1 %v9266_v18  ;;  %v9278_v18 = vld [vmem:[#allocation34_spill] sm:$0xff] }
  0xea   :  { %4910 = vmatprep.subr.bf16.mxu1 %v6928_v13 }
  0xeb   :  { %4836 = vmatpush3.bf16.msra.mxu0 %v7067_v58 }
  0xec   :  { %4870 = vmatprep.subr.bf16.mxu0 %v4869_v5  ;;  %v7109_v5 = vld [vmem:[%s8796_s1 + $0x248] sm:$0xff] }
  0xed   :  { %4912 = vmatpush3.bf16.msra.mxu1 %v6934_v33  ;;  %9276 = vst [vmem:[#allocation41_spill] sm:$0xff] %v7109_v5  ;;  %v8945_v34 = vand.u32 4294901760, %v7109_v5 }
  0xee   :  { %1238 = vmatmul.mubr.f32.vlgmr.msra.gmra.mrb[12].mxu0 %v1237_v50  ;;  %4914 = vmatprep.subr.bf16.mxu1 %v6958_v38  ;;  %v9279_v50 = vld [vmem:[#allocation35_spill] sm:$0xff] }
  0xef   :  { %1247 = vmatprep.mubr.f32.mxu0 %v1246_v60  ;;  %4872 = vmatpush3.bf16.msra.mxu0 %v4871_v29  ;;  %v4879_v29 = vpack.c.bf16 %v9278_v18, %v9277_v56  ;;  %v8942_v60 = vand.u32 4294901760, %v7104_v39  ;;  %v7139_v40 = vsub.f32 %v7109_v5, %v8945_v34  ;;  %v7155_v34 = vld [vmem:[%s8796_s1 + $0x2e0] sm:$0xff]  ;;  %v7160_v5 = vld [vmem:[%s8796_s1 + $0x2e8] sm:$0xff] }
  0xf0   :  { %4874 = vmatprep.subr.bf16.mxu0 %v4873_v23  ;;  %v4881_v23 = vpack.c.bf16 %v9280_v46, %v9279_v50  ;;  %9291 = vst [vmem:[#allocation9_spill] sm:$0xff] %v7155_v34  ;;  %9292 = vst [vmem:[#allocation22_spill] sm:$0xff] %v7160_v5 }
  0xf1   :  { %4916 = vmatpush3.bf16.msra.mxu1 %v6974_v53  ;;  %v7134_v3 = vsub.f32 %v7104_v39, %v8942_v60  ;;  %9287 = vst [vmem:[#allocation7_spill] sm:$0xff] %v7139_v40  ;;  %v9290_v60 = vld [vmem:[#allocation37_spill] sm:$0xff] }
  0xf2   :  { %1253 = vmatmul.mubr.f32.gmra.mrb[14].mxu0 %v1252_v24  ;;  %4918 = vmatprep.subr.bf16.mxu1 %v6981_v6  ;;  %v9283_v24 = vld [vmem:[#allocation36_spill] sm:$0xff]  ;;  %v4887_v39 = vpack.c.bf16 %v9290_v60, %v9289_v31  ;;  %v7179_v31 = vld [vmem:[%s8796_s1 + $0x2f0] sm:$0xff] }
  0xf3   :  { %4876 = vmatpush3.bf16.msra.mxu0 %v4875_v19  ;;  %1627 = vmatprep.mubr.f32.mxu0 %v6804_v57  ;;  %v7124_v19 = vld [vmem:[%s8796_s1 + $0x250] sm:$0xff]  ;;  %v9282_v57 = vld [vmem:[#allocation11_spill] sm:$0xff]  ;;  %9286 = vst [vmem:[#allocation6_spill] sm:$0xff] %v7134_v3  ;;  %v7174_v60 = vld [vmem:[%s8796_s1 + $0x268] sm:$0xff] }
  0xf4   :  { %4878 = vmatprep.subr.bf16.mxu0 %v4877_v20  ;;  %9281 = vst [vmem:[#allocation5_spill] sm:$0xff] %v7124_v19  ;;  %v4883_v20 = vpack.c.bf16 %v9283_v24, %v9282_v57  ;;  %9296 = vst [vmem:[#allocation24_spill] sm:$0xff] %v7174_v60 }
  0xf5   :  { %4920 = vmatpush3.bf16.msra.mxu1 %v6990_v63  ;;  %9297 = vst [vmem:[#allocation25_spill] sm:$0xff] %v7179_v31  ;;  %v9299_v63 = vand.u32 4294901760, %v7124_v19 }
  0xf6   :  { %4922 = vmatprep.subr.bf16.mxu1 %v6999_v49  ;;  %v4891_v49 = vpack.c.bf16 %v6815_v10, %v6810_v35  ;;  %v9307_v10 = vand.u32 4294901760, %v7160_v5  ;;  %v7259_v35 = vld [vmem:[%s8796_s1 + $0x200] sm:$0xff] }
  0xf7   :  { %4880 = vmatpush3.bf16.msra.mxu0 %v4879_v29  ;;  %v7144_v29 = vld [vmem:[%s8796_s1 + $0x258] sm:$0xff] }
  0xf8   :  { %4882 = vmatprep.subr.bf16.mxu0 %v4881_v23  ;;  %9288 = vst [vmem:[#allocation8_spill] sm:$0xff] %v7144_v29  ;;  %v9294_v23 = vld [vmem:[#allocation39_spill] sm:$0xff]  ;;  %v9305_v53 = vand.u32 4294901760, %v7144_v29  ;;  %v7248_v8 = vsub.f32 %v7160_v5, %v9307_v10  ;;  %v9309_v5 = vand.u32 4294901760, %v7174_v60  ;;  %v7285_v10 = vadd.s32 640, %v9166_v43 }
  0xf9   :  { %4924 = vmatpush3.bf16.msra.mxu1 %v7016_v45  ;;  %v9321_v43 = vand.u32 4294901760, %v7027_v21 }
  0xfa   :  { %4926 = vmatprep.subr.bf16.mxu1 %v7025_v4  ;;  %v9295_v4 = vld [vmem:[#allocation40_spill] sm:$0xff]  ;;  %v7217_v24 = vsub.f32 %v7144_v29, %v9305_v53  ;;  %v7232_v53 = vld [vmem:[%s8796_s1 + $0x280] sm:$0xff]  ;;  %vm37_vm8 = vcmp.eq.s32.totalorder %v7285_v10, %v6196_v17 }
  0xfb   :  { %4884 = vmatpush3.bf16.msra.mxu0 %v4883_v20  ;;  %v7165_v20 = vld [vmem:[%s8796_s1 + $0x260] sm:$0xff]  ;;  %v4889_v45 = vpack.c.bf16 %v9295_v4, %v9294_v23  ;;  %v7191_v4 = vsub.f32 %v7124_v19, %v9299_v63  ;;  %v7196_v23 = vld [vmem:[%s8796_s1 + $0x270] sm:$0xff]  ;;  %v9302_v63 = vand.u32 4294901760, %v7134_v3  ;;  %v9303_v19 = vand.u32 4294901760, %v7139_v40 }
  0xfc   :  { %9293 = vst [vmem:[#allocation23_spill] sm:$0xff] %v7165_v20  ;;  %4886 = vmatprep.subr.bf16.mxu0 %v4885_v55  ;;  %v7184_v55 = vld [vmem:[%s8796_s1 + $0x2f8] sm:$0xff]  ;;  %9300 = vst [vmem:[#allocation27_spill] sm:$0xff] %v7196_v23  ;;  %v4893_v40 = vpack.c.bf16 %v6835_v2, %v6830_v62  ;;  %v4897_v3 = vpack.c.bf16 %v6383_v26, %v6378_v59  ;;  %v8972_v59 = vand.u32 4294901760, %v7232_v53  ;;  %v9324_v26 = vand.u32 4294901760, %v7042_v37 }
  0xfd   :  { %9298 = vst [vmem:[#allocation26_spill] sm:$0xff] %v7184_v55  ;;  %4928 = vmatpush3.bf16.msra.mxu1 %v7039_v41  ;;  %v7211_v6 = vpack.c.bf16 %v9303_v19, %v9302_v63  ;;  %v4895_v63 = vpack.c.bf16 %v6876_v51, %v6871_v47  ;;  %v9306_v19 = vand.u32 4294901760, %v7155_v34 }
  0xfe   :  { %4930 = vmatprep.subr.bf16.mxu1 %v7048_v25 }
  0xff   :  { %9304 = vst [vmem:[#allocation31_spill] sm:$0xff] %v7211_v6  ;;  %4888 = vmatpush3.bf16.msra.mxu0 %v4887_v39  ;;  %v7243_v39 = vsub.f32 %v7155_v34, %v9306_v19  ;;  %v9308_v6 = vand.u32 4294901760, %v7165_v20  ;;  %v7264_v19 = vld [vmem:[%s8796_s1 + $0x208] sm:$0xff] }
 0x100   :  { %4890 = vmatprep.subr.bf16.mxu0 %v4889_v45  ;;  %v7237_v45 = vld [vmem:[%s8796_s1 + $0x288] sm:$0xff] }
 0x101   :  { %4932 = vmatpush3.bf16.msra.mxu1 %v7067_v58  ;;  %v7253_v29 = vsub.f32 %v7165_v20, %v9308_v6  ;;  %v7270_v6 = vsub.f32 %v7174_v60, %v9309_v5  ;;  %v9311_v20 = vand.u32 4294901760, %v7184_v55  ;;  %v9313_v5 = vand.u32 4294901760, %v7196_v23 }
 0x102   :  { %4966 = vmatprep.subr.bf16.mxu1 %v6648_v28 }
 0x103   :  { %4892 = vmatpush3.bf16.msra.mxu0 %v4891_v49  ;;  %v9310_v49 = vand.u32 4294901760, %v7179_v31  ;;  %v7280_v34 = vsub.f32 %v7184_v55, %v9311_v20  ;;  %v7290_v60 = vsub.f32 %v7196_v23, %v9313_v5  ;;  %v9317_v20 = vand.u32 4294901760, %v7019_v15 }
 0x104   :  { %4894 = vmatprep.subr.bf16.mxu0 %v4893_v40  ;;  %v4899_v40 = vpack.c.bf16 %v6398_v42, %v6393_v30  ;;  %v9318_v55 = vand.u32 4294901760, %v7191_v4  ;;  %v9319_v5 = vand.u32 4294901760, %v7217_v24  ;;  %v8971_v30 = vand.u32 4294901760, %v7243_v39 }
 0x105   :  { %v7275_v28 = vsub.f32 %v7179_v31, %v9310_v49  ;;  %9312 = vst [vmem:[#allocation32_spill] sm:$0xff] %v7280_v34  ;;  %9314 = vst [vmem:[#allocation33_spill] sm:$0xff] %v7290_v60  ;;  %v9315_v49 = vand.u32 4294901760, %v7201_v54  ;;  %1747 = vmatmul.mubr.f32.vlgmr.msra.gmra.mrb[16].mxu1 %v9317_v20  ;;  %v8968_v42 = vand.u32 4294901760, %v7248_v8  ;;  %v9323_v20 = vand.u32 4294901760, %v9265_v16 }
 0x106   :  { %v7307_v23 = vpack.c.bf16 %v9319_v5, %v9318_v55  ;;  %1754 = vmatprep.mubr.f32.mxu1 %v9321_v43  ;;  %4968 = vmatpush3.bf16.msra.mxu1 %v6700_v1  ;;  %v8969_v55 = vand.u32 4294901760, %v7270_v6  ;;  %v9322_v1 = vand.u32 4294901760, %v9264_v32  ;;  %v7334_v43 = vsub.f32 %v7232_v53, %v8972_v59 }
 0x107   :  { %v7295_v31 = vsub.f32 %v7201_v54, %v9315_v49  ;;  %4896 = vmatpush3.bf16.msra.mxu0 %v4895_v63  ;;  %4970 = vmatprep.subr.bf16.mxu1 %v6885_v61  ;;  %v8970_v5 = vand.u32 4294901760, %v7275_v28  ;;  %v8974_v63 = vand.u32 4294901760, %v7290_v60  ;;  %v9327_v32 = vand.u32 4294901760, %v7253_v29 }
 0x108   :  { %9320 = vst [vmem:[#allocation35_spill] sm:$0xff] %v7307_v23  ;;  %4898 = vmatprep.subr.bf16.mxu0 %v4897_v3  ;;  %v4933_v49 = vpack.c.bf16 %v9323_v20, %v9322_v1  ;;  %9325 = vst [vmem:[#allocation10_spill] sm:$0xff] %v7334_v43  ;;  %v7340_v3 = vpack.c.bf16 %v8968_v42, %v8971_v30  ;;  %v9331_v1 = vand.u32 4294901760, %v7237_v45  ;;  %v9338_v30 = vand.u32 4294901760, %v7264_v19 }
 0x109   :  { %9316 = vst [vmem:[#allocation34_spill] sm:$0xff] %v7295_v31  ;;  %v8973_v61 = vand.u32 4294901760, %v7295_v31  ;;  %1758 = vmatmul.mubr.f32.gmra.mrb[18].mxu1 %v9324_v26  ;;  %v7346_v16 = vpack.c.bf16 %v8969_v55, %v9327_v32  ;;  %v9329_v26 = vand.u32 4294901760, %v7280_v34  ;;  %v9333_v32 = vand.u32 4294901760, %v7259_v35 }
 0x10a   :  { %9326 = vst [vmem:[#allocation11_spill] sm:$0xff] %v7340_v3  ;;  %4972 = vmatpush3.bf16.msra.mxu1 %v6915_v0  ;;  %3901 = vmatprep.mubr.msk.f32.mxu1 %vm35_vm4, %v9109_v14  ;;  %v7362_v42 = vsub.f32 %v7237_v45, %v9331_v1  ;;  %v7383_v59 = vsub.f32 %v7264_v19, %v9338_v30  ;;  %v8975_v30 = vand.u32 4294901760, %v7334_v43 }
 0x10b   :  { %9328 = vst [vmem:[#allocation46_spill] sm:$0xff] %v7346_v16  ;;  %v7352_v20 = vpack.c.bf16 %v9329_v26, %v8970_v5  ;;  %v7367_v55 = vsub.f32 %v7259_v35, %v9333_v32  ;;  %v7373_v0 = vpack.c.bf16 %v8973_v61, %v8974_v63  ;;  %4900 = vmatpush3.bf16.msra.mxu0 %v4899_v40  ;;  %v9336_v26 = vand.u32 4294901760, %v9267_v22  ;;  %v7388_v32 = vld [vmem:[%s8796_s1 + $0x290] sm:$0xff]  ;;  %v7397_v22 = vld [vmem:[%s8796_s1 + $0x298] sm:$0xff] }
 0x10c   :  { %9332 = vst [vmem:[#allocation48_spill] sm:$0xff] %v7362_v42  ;;  %4974 = vmatprep.subr.bf16.mxu1 %v6928_v13  ;;  %v9337_v5 = vand.u32 4294901760, %v9268_v36  ;;  %9339 = vst [vmem:[#allocation51_spill] sm:$0xff] %v7383_v59  ;;  %4934 = vmatprep.subr.bf16.mxu0 %v4933_v49  ;;  %v9340_v40 = vand.u32 4294901760, %v9269_v44  ;;  %v9341_v13 = vand.u32 4294901760, %v9270_v27  ;;  %v3870_v36 = vsel %vm37_vm8, 1.0, %v9186_v12 }
 0x10d   :  { %9330 = vst [vmem:[#allocation47_spill] sm:$0xff] %v7352_v20  ;;  %9334 = vst [vmem:[#allocation49_spill] sm:$0xff] %v7367_v55  ;;  %v7426_v49 = vsub.f32 %v3870_v36, %v3870_v36  ;;  %v9344_v27 = vand.u32 4294901760, %v9273_v9  ;;  %v9345_v44 = vand.u32 4294901760, %v9274_v52  ;;  %v7449_v9 = vld [vmem:[%s8796_s1 + $0x2a8] sm:$0xff]  ;;  %v9350_v52 = vand.u32 4294901760, %v9282_v57 }
 0x10e   :  { %9335 = vst [vmem:[#allocation50_spill] sm:$0xff] %v7373_v0  ;;  %v4935_v1 = vpack.c.bf16 %v9337_v5, %v9336_v26  ;;  %v4937_v61 = vpack.c.bf16 %v9341_v13, %v9340_v40  ;;  %1630 = vmatmul.mubr.f32.vlgmr.msra.gmra.mrb[16].mxu0 %v7019_v15  ;;  %4976 = vmatpush3.bf16.msra.mxu1 %v6934_v33  ;;  %v7412_v5 = vld [vmem:[%s8796_s1 + $0x210] sm:$0xff]  ;;  %v7417_v26 = vld [vmem:[%s8796_s1 + $0x218] sm:$0xff]  ;;  %v9342_v33 = vand.u32 4294901760, %v9271_v7  ;;  %v9343_v15 = vand.u32 4294901760, %v9272_v48 }
 0x10f   :  { %1636 = vmatprep.mubr.f32.mxu0 %v7027_v21  ;;  %v8976_v13 = vand.u32 4294901760, %v7383_v59  ;;  %4978 = vmatprep.subr.bf16.mxu1 %v6958_v38  ;;  %v4941_v21 = vpack.c.bf16 %v9345_v44, %v9344_v27  ;;  %v9347_v7 = vand.u32 4294901760, %v9278_v18  ;;  %v7444_v38 = vld [vmem:[%s8796_s1 + $0x2a0] sm:$0xff]  ;;  %v9353_v44 = vld [vmem:[#allocation18_spill] sm:$0xff]  ;;  %v9354_v27 = vand.u32 4294901760, %v7362_v42  ;;  %v9363_v36 = vld [vmem:[#allocation13_spill] sm:$0xff] }
 0x110   :  { %4936 = vmatpush3.bf16.msra.mxu0 %v4935_v1  ;;  %v4939_v40 = vpack.c.bf16 %v9343_v15, %v9342_v33  ;;  %v9346_v1 = vand.u32 4294901760, %v9277_v56  ;;  %v9348_v33 = vand.u32 4294901760, %v9279_v50  ;;  %v9349_v15 = vand.u32 4294901760, %v9280_v46  ;;  %v9351_v56 = vld [vmem:[#allocation36_spill] sm:$0xff]  ;;  %v9365_v20 = vld [vmem:[#allocation14_spill] sm:$0xff] }
 0x111   :  { %4938 = vmatprep.subr.bf16.mxu0 %v4937_v61  ;;  %v9352_v18 = vand.u32 4294901760, %v9351_v56  ;;  %v2292_v50 = vsub.f32 %v7334_v43, %v8975_v30  ;;  %v9355_v57 = vand.u32 4294901760, %v7367_v55  ;;  %v2187_v56 = vsub.f32 %v7383_v59, %v8976_v13  ;;  %v9367_v13 = vld [vmem:[#allocation37_spill] sm:$0xff]  ;;  %v9369_v59 = vld [vmem:[#allocation39_spill] sm:$0xff]  ;;  %v9395_v12 = vld [vmem:[#allocation38_spill] sm:$0xff] }
 0x112   :  { %v4943_v48 = vpack.c.bf16 %v9347_v7, %v9346_v1  ;;  %v4945_v63 = vpack.c.bf16 %v9349_v15, %v9348_v33  ;;  %1639 = vmatmul.mubr.f32.gmra.mrb[18].mxu0 %v7042_v37  ;;  %4980 = vmatpush3.bf16.msra.mxu1 %v9353_v44  ;;  %v2299_v1 = vsub.f32 %v7362_v42, %v9354_v27  ;;  %v9356_v33 = vand.u32 4294901760, %v7388_v32  ;;  %v7481_v37 = vld [vmem:[%s8796_s1 + $0x228] sm:$0xff] }
 0x113   :  { %v4947_v61 = vpack.c.bf16 %v9352_v18, %v9350_v52  ;;  %v2180_v7 = vsub.f32 %v7367_v55, %v9355_v57  ;;  %v7476_v52 = vld [vmem:[%s8796_s1 + $0x220] sm:$0xff]  ;;  %3897 = vmatprep.mubr.msk.f32.mxu0 %vm35_vm4, %v9109_v14  ;;  %v9358_v18 = vand.u32 4294901760, %v7397_v22  ;;  %v9364_v46 = vand.u32 4294901760, %v9363_v36  ;;  %v9371_v55 = vld [vmem:[#allocation40_spill] sm:$0xff] }
 0x114   :  { %v7471_v15 = vsub.f32 %v7388_v32, %v9356_v33  ;;  %4940 = vmatpush3.bf16.msra.mxu0 %v4939_v40  ;;  %v9360_v33 = vld [vmem:[#allocation19_spill] sm:$0xff]  ;;  %v9361_v40 = vld [vmem:[#allocation12_spill] sm:$0xff]  ;;  %v9366_v16 = vand.u32 4294901760, %v9365_v20  ;;  %v9368_v3 = vand.u32 4294901760, %v9367_v13  ;;  %v9372_v42 = vand.u32 4294901760, %v9371_v55 }
 0x115   :  { %v7493_v44 = vsub.f32 %v7397_v22, %v9358_v18  ;;  %4982 = vmatprep.subr.bf16.mxu1 %v9360_v33  ;;  %4942 = vmatprep.subr.bf16.mxu0 %v4941_v21  ;;  %v9362_v30 = vand.u32 4294901760, %v9361_v40  ;;  %v9370_v18 = vand.u32 4294901760, %v9369_v59  ;;  %v9373_v57 = vand.u32 4294901760, %v7412_v5  ;;  %v7527_v59 = vld [vmem:[%s8796_s1 + $0x2b0] sm:$0xff]  ;;  %v9377_v55 = vld [vmem:[#allocation43_spill] sm:$0xff] }
 0x116   :  { %9357 = vst [vmem:[#allocation36_spill] sm:$0xff] %v7471_v15  ;;  %v4951_v23 = vpack.c.bf16 %v9368_v3, %v9366_v16  ;;  %v9375_v33 = vand.u32 4294901760, %v7417_v26  ;;  %4984 = vmatpush3.bf16.msra.mxu1 %v9377_v55  ;;  %v2293_v16 = vand.u32 4294901760, %v2292_v50  ;;  %v2300_v13 = vand.u32 4294901760, %v2299_v1  ;;  %v7551_v50 = vld [vmem:[%s8796_s1 + $0x230] sm:$0xff]  ;;  %v9383_v1 = vld [vmem:[#allocation16_spill] sm:$0xff] }
 0x117   :  { %9359 = vst [vmem:[#allocation18_spill] sm:$0xff] %v7493_v44  ;;  %v4949_v0 = vpack.c.bf16 %v9364_v46, %v9362_v30  ;;  %v7510_v27 = vpack.c.bf16 %v9372_v42, %v9370_v18  ;;  %v7515_v21 = vsub.f32 %v7412_v5, %v9373_v57  ;;  %v7532_v42 = vld [vmem:[%s8796_s1 + $0x2b8] sm:$0xff]  ;;  %v2181_v46 = vand.u32 4294901760, %v2180_v7  ;;  %v9378_v57 = vld [vmem:[#allocation44_spill] sm:$0xff] }
 0x118   :  { %v7520_v30 = vsub.f32 %v7417_v26, %v9375_v33  ;;  %4944 = vmatpush3.bf16.msra.mxu0 %v4943_v48  ;;  %4986 = vmatprep.subr.bf16.mxu1 %v9378_v57  ;;  %v2188_v40 = vand.u32 4294901760, %v2187_v56  ;;  %v9379_v33 = vand.u32 4294901760, %v7444_v38  ;;  %v9381_v20 = vand.u32 4294901760, %v7449_v9  ;;  %v7556_v48 = vld [vmem:[%s8796_s1 + $0x238] sm:$0xff] }
 0x119   :  { %9374 = vst [vmem:[#allocation19_spill] sm:$0xff] %v7515_v21  ;;  %4946 = vmatprep.subr.bf16.mxu0 %v4945_v63  ;;  %v9384_v7 = vand.u32 4294901760, %v9383_v1  ;;  %v9385_v56 = vld [vmem:[#allocation42_spill] sm:$0xff]  ;;  %v9387_v18 = vand.u32 4294901760, %v6830_v62  ;;  %v9389_v63 = vand.u32 4294901760, %v7476_v52  ;;  %v9396_v43 = vand.u32 4294901760, %v7493_v44 }
 0x11a   :  { %9376 = vst [vmem:[#allocation12_spill] sm:$0xff] %v7520_v30  ;;  %v7541_v3 = vsub.f32 %v7444_v38, %v9379_v33  ;;  %v7546_v55 = vsub.f32 %v7449_v9, %v9381_v20  ;;  %v9386_v57 = vand.u32 4294901760, %v9385_v56  ;;  %v9388_v20 = vand.u32 4294901760, %v6835_v2  ;;  %v7583_v2 = vld [vmem:[%s8796_s1 + $0x2c0] sm:$0xff]  ;;  %v9393_v56 = vld [vmem:[#allocation45_spill] sm:$0xff] }
 0x11b   :  { %v7573_v1 = vsub.f32 %v7476_v52, %v9389_v63  ;;  %4988 = vmatpush3.bf16.msra.mxu1 %v9393_v56  ;;  %v5031_v54 = vpack.c.bf16 %v2188_v40, %v2181_v46  ;;  %v2313_v60 = vsub.f32 %v7493_v44, %v9396_v43  ;;  %v9398_v43 = vand.u32 4294901760, %v7532_v42 }
 0x11c   :  { %9380 = vst [vmem:[#allocation13_spill] sm:$0xff] %v7541_v3  ;;  %9382 = vst [vmem:[#allocation14_spill] sm:$0xff] %v7546_v55  ;;  %v4955_v33 = vpack.c.bf16 %v9386_v57, %v9384_v7  ;;  %v4957_v36 = vpack.c.bf16 %v9388_v20, %v9387_v18  ;;  %v9391_v7 = vand.u32 4294901760, %v7481_v37  ;;  %v7588_v18 = vld [vmem:[%s8796_s1 + $0x2c8] sm:$0xff]  ;;  %v5029_v57 = vpack.c.bf16 %v2300_v13, %v2293_v16  ;;  %v7605_v13 = vld [vmem:[%s8796_s1 + $0x2d0] sm:$0xff] }
 0x11d   :  { %9390 = vst [vmem:[#allocation37_spill] sm:$0xff] %v7573_v1  ;;  %v9394_v20 = vand.u32 4294901760, %v7471_v15  ;;  %4948 = vmatpush3.bf16.msra.mxu0 %v4947_v61  ;;  %4990 = vmatprep.subr.bf16.mxu1 %v9395_v12  ;;  %v7610_v61 = vld [vmem:[%s8796_s1 + $0x2d8] sm:$0xff]  ;;  %v9397_v12 = vand.u32 4294901760, %v7527_v59  ;;  %v7620_v40 = vsub.f32 %v7532_v42, %v9398_v43  ;;  %v9399_v16 = vand.u32 4294901760, %v7515_v21 }
 0x11e   :  { %v7578_v62 = vsub.f32 %v7481_v37, %v9391_v7  ;;  %4950 = vmatprep.subr.bf16.mxu0 %v4949_v0  ;;  %v9400_v0 = vand.u32 4294901760, %v7520_v30  ;;  %v9401_v43 = vand.u32 4294901760, %v7551_v50 }
 0x11f   :  { %v2306_v63 = vsub.f32 %v7471_v15, %v9394_v20  ;;  %v7615_v46 = vsub.f32 %v7527_v59, %v9397_v12  ;;  %v2194_v34 = vsub.f32 %v7515_v21, %v9399_v16  ;;  %4992 = vmatpush3.bf16.msra.mxu1 %v7039_v41  ;;  %v9403_v20 = vand.u32 4294901760, %v7556_v48 }
 0x120   :  { %9392 = vst [vmem:[#allocation39_spill] sm:$0xff] %v7578_v62  ;;  %v2201_v31 = vsub.f32 %v7520_v30, %v9400_v0  ;;  %v7636_v56 = vsub.f32 %v7551_v50, %v9401_v43  ;;  %4994 = vmatprep.subr.bf16.mxu1 %v7048_v25  ;;  %v2314_v12 = vand.u32 4294901760, %v2313_v60  ;;  %v9405_v41 = vand.u32 4294901760, %v7541_v3 }
 0x121   :  { %v7641_v44 = vsub.f32 %v7556_v48, %v9403_v20  ;;  %4952 = vmatpush3.bf16.msra.mxu0 %v4951_v23  ;;  %v2307_v7 = vand.u32 4294901760, %v2306_v63  ;;  %v9406_v43 = vand.u32 4294901760, %v7546_v55  ;;  %v9407_v23 = vand.u32 4294901760, %v7583_v2 }
 0x122   :  { %9402 = vst [vmem:[#allocation40_spill] sm:$0xff] %v7636_v56  ;;  %v2320_v30 = vsub.f32 %v7541_v3, %v9405_v41  ;;  %4954 = vmatprep.subr.bf16.mxu0 %v7510_v27  ;;  %v9408_v60 = vand.u32 4294901760, %v7588_v18  ;;  %v2195_v41 = vand.u32 4294901760, %v2194_v34  ;;  %v2202_v0 = vand.u32 4294901760, %v2201_v31 }
 0x123   :  { %9404 = vst [vmem:[#allocation43_spill] sm:$0xff] %v7641_v44  ;;  %v2327_v21 = vsub.f32 %v7546_v55, %v9406_v43  ;;  %v7658_v25 = vsub.f32 %v7583_v2, %v9407_v23  ;;  %v9409_v43 = vand.u32 4294901760, %v7573_v1  ;;  %v9410_v20 = vand.u32 4294901760, %v7578_v62  ;;  %4996 = vmatpush3.bf16.msra.mxu1 %v7067_v58 }
 0x124   :  { %v7663_v63 = vsub.f32 %v7588_v18, %v9408_v60  ;;  %v9411_v3 = vand.u32 4294901760, %v7605_v13  ;;  %v9413_v34 = vand.u32 4294901760, %v7610_v61  ;;  %5030 = vmatprep.subr.bf16.mxu1 %v5029_v57  ;;  %v9416_v58 = vand.u32 4294901760, %v6876_v51 }
 0x125   :  { %v2208_v27 = vsub.f32 %v7573_v1, %v9409_v43  ;;  %v2215_v16 = vsub.f32 %v7578_v62, %v9410_v20  ;;  %4956 = vmatpush3.bf16.msra.mxu0 %v4955_v33  ;;  %v9415_v20 = vand.u32 4294901760, %v6871_v47  ;;  %v5033_v23 = vpack.c.bf16 %v2314_v12, %v2307_v7 }
 0x126   :  { %v7677_v60 = vsub.f32 %v7605_v13, %v9411_v3  ;;  %v7682_v31 = vsub.f32 %v7610_v61, %v9413_v34  ;;  %v2321_v62 = vand.u32 4294901760, %v2320_v30  ;;  %v2328_v55 = vand.u32 4294901760, %v2327_v21  ;;  %4958 = vmatprep.subr.bf16.mxu0 %v4957_v36  ;;  %3902 = vmatmul.mubr.msk.f32.vlgmr.msra.gmra.mrb[20].mxu1 %vm34_vm5, %v9109_v14  ;;  %v9420_v36 = vld [vmem:[#allocation21_spill] sm:$0xff] }
 0x127   :  { %v4959_v43 = vpack.c.bf16 %v9416_v58, %v9415_v20  ;;  %v9417_v1 = vand.u32 4294901760, %v7615_v46  ;;  %v9418_v15 = vand.u32 4294901760, %v7620_v40  ;;  %v5035_v51 = vpack.c.bf16 %v2202_v0, %v2195_v41  ;;  %3903 = vmatprep.mubr.msk.f32.mxu1 %vm43_vm6, %v9109_v14  ;;  %5032 = vmatpush3.bf16.msra.mxu1 %v5031_v54 }
 0x128   :  { %9412 = vst [vmem:[#allocation44_spill] sm:$0xff] %v7677_v60  ;;  %9414 = vst [vmem:[#allocation16_spill] sm:$0xff] %v7682_v31  ;;  %v2209_v21 = vand.u32 4294901760, %v2208_v27  ;;  %v2216_v30 = vand.u32 4294901760, %v2215_v16  ;;  %v9422_v7 = vand.u32 4294901760, %v7641_v44  ;;  %v9009_v0 = vand.u32 4294901760, %v7682_v31  ;;  %5034 = vmatprep.subr.bf16.mxu1 %v5033_v23 }
 0x129   :  { %v2334_v3 = vsub.f32 %v7615_v46, %v9417_v1  ;;  %v2341_v34 = vsub.f32 %v7620_v40, %v9418_v15  ;;  %v9421_v15 = vand.u32 4294901760, %v7636_v56  ;;  %4960 = vmatpush3.bf16.msra.mxu0 %v4959_v43  ;;  %v5037_v16 = vpack.c.bf16 %v2328_v55, %v2321_v62 }
 0x12a   :  { %v2229_v12 = vsub.f32 %v7641_v44, %v9422_v7  ;;  %v9423_v41 = vand.u32 4294901760, %v7232_v53  ;;  %v9424_v27 = vand.u32 4294901760, %v7237_v45  ;;  %v9014_v58 = vand.u32 4294901760, %v7426_v49  ;;  %3904 = vmatmul.mubr.msk.f32.gmra.mrb[22].mxu1 %vm42_vm7, %v9109_v14  ;;  %v9428_v45 = vld [vmem:[#allocation6_spill] sm:$0xff] }
 0x12b   :  { %v2222_v1 = vsub.f32 %v7636_v56, %v9421_v15  ;;  %v9425_v15 = vld [vmem:[#allocation29_spill] sm:$0xff]  ;;  %v2335_v57 = vand.u32 4294901760, %v2334_v3  ;;  %v2342_v33 = vand.u32 4294901760, %v2341_v34  ;;  %v9426_v7 = vand.u32 4294901760, %v7658_v25  ;;  %v9430_v3 = vld [vmem:[#allocation7_spill] sm:$0xff]  ;;  %5036 = vmatpush3.bf16.msra.mxu1 %v5035_v51  ;;  %3905 = vmatprep.mubr.msk.f32.mxu1 %vm37_vm8, %v9109_v14 }
 0x12c   :  { %v7716_v54 = vpack.c.bf16 %v9424_v27, %v9423_v41  ;;  %4962 = vmatprep.subr.bf16.mxu0 %v9425_v15  ;;  %v9427_v43 = vand.u32 4294901760, %v7663_v63  ;;  %v5039_v53 = vpack.c.bf16 %v2216_v30, %v2209_v21  ;;  %v9429_v62 = vand.u32 4294901760, %v9428_v45  ;;  %5038 = vmatprep.subr.bf16.mxu1 %v5037_v16 }
 0x12d   :  { %v2348_v20 = vsub.f32 %v7658_v25, %v9426_v7  ;;  %v9431_v34 = vand.u32 4294901760, %v9430_v3  ;;  %v2223_v27 = vand.u32 4294901760, %v2222_v1  ;;  %v2230_v15 = vand.u32 4294901760, %v2229_v12 }
 0x12e   :  { %v2355_v55 = vsub.f32 %v7663_v63, %v9427_v43  ;;  %v2236_v23 = vsub.f32 %v9428_v45, %v9429_v62  ;;  %v9432_v7 = vand.u32 4294901760, %v7677_v60  ;;  %v2369_v30 = vsub.f32 %v7682_v31, %v9009_v0  ;;  %v9433_v43 = vld [vmem:[#allocation30_spill] sm:$0xff] }
 0x12f   :  { %v2243_v41 = vsub.f32 %v9430_v3, %v9431_v34  ;;  %4964 = vmatpush3.bf16.msra.mxu0 %v9433_v43  ;;  %v9434_v51 = vand.u32 4294901760, %v7259_v35  ;;  %v9435_v62 = vand.u32 4294901760, %v7264_v19  ;;  %v2148_v1 = vsub.f32 %v7426_v49, %v9014_v58  ;;  %5040 = vmatpush3.bf16.msra.mxu1 %v5039_v53 }
 0x130   :  { %v2362_v21 = vsub.f32 %v7677_v60, %v9432_v7  ;;  %4998 = vmatprep.subr.bf16.mxu0 %v7716_v54  ;;  %v5041_v12 = vpack.c.bf16 %v2342_v33, %v2335_v57  ;;  %v9436_v7 = vand.u32 4294901760, %v7388_v32  ;;  %v9437_v0 = vand.u32 4294901760, %v7397_v22 }
 0x131   :  { %v7751_v34 = vpack.c.bf16 %v9435_v62, %v9434_v51  ;;  %v2349_v16 = vand.u32 4294901760, %v2348_v20  ;;  %v2356_v43 = vand.u32 4294901760, %v2355_v55  ;;  %v2237_v35 = vand.u32 4294901760, %v2236_v23 }
 0x132   :  { %v7761_v31 = vpack.c.bf16 %v9437_v0, %v9436_v7  ;;  %v2244_v60 = vand.u32 4294901760, %v2243_v41  ;;  %v9438_v19 = vand.u32 4294901760, %v7191_v4  ;;  %v9439_v62 = vand.u32 4294901760, %v7217_v24  ;;  %3898 = vmatmul.mubr.msk.f32.vlgmr.msra.gmra.mrb[20].mxu0 %vm34_vm5, %v9109_v14  ;;  %5042 = vmatprep.subr.bf16.mxu1 %v5041_v12 }
 0x133   :  { %v5043_v32 = vpack.c.bf16 %v2230_v15, %v2223_v27  ;;  %v2363_v22 = vand.u32 4294901760, %v2362_v21  ;;  %v2370_v33 = vand.u32 4294901760, %v2369_v30  ;;  %3899 = vmatprep.mubr.msk.f32.mxu0 %vm43_vm6, %v9109_v14  ;;  %5000 = vmatpush3.bf16.msra.mxu0 %v7751_v34  ;;  %v9440_v57 = vand.u32 4294901760, %v7412_v5 }
 0x134   :  { %v2250_v51 = vsub.f32 %v7191_v4, %v9438_v19  ;;  %v2257_v58 = vsub.f32 %v7217_v24, %v9439_v62  ;;  %v9441_v20 = vand.u32 4294901760, %v7417_v26  ;;  %v9442_v55 = vand.u32 4294901760, %v7243_v39  ;;  %5002 = vmatprep.subr.bf16.mxu0 %v7761_v31 }
 0x135   :  { %v9443_v23 = vand.u32 4294901760, %v7248_v8  ;;  %v2149_v11 = vand.u32 4294901760, %v2148_v1  ;;  %v5045_v27 = vpack.c.bf16 %v2356_v43, %v2349_v16  ;;  %v9444_v15 = vand.u32 4294901760, %v7444_v38  ;;  %5044 = vmatpush3.bf16.msra.mxu1 %v5043_v32  ;;  %v9451_v16 = vld [vmem:[#allocation32_spill] sm:$0xff] }
 0x136   :  { %v7782_v0 = vpack.c.bf16 %v9441_v20, %v9440_v57  ;;  %v2376_v53 = vsub.f32 %v7243_v39, %v9442_v55  ;;  %v9445_v5 = vand.u32 4294901760, %v7449_v9  ;;  %v5047_v21 = vpack.c.bf16 %v2244_v60, %v2237_v35  ;;  %3900 = vmatmul.mubr.msk.f32.gmra.mrb[22].mxu0 %vm42_vm7, %v9109_v14  ;;  %v9455_v20 = vld [vmem:[#allocation20_spill] sm:$0xff] }
 0x137   :  { %v2383_v41 = vsub.f32 %v7248_v8, %v9443_v23  ;;  %v9446_v30 = vand.u32 4294901760, %v7476_v52  ;;  %v9447_v7 = vand.u32 4294901760, %v7481_v37  ;;  %v2251_v62 = vand.u32 4294901760, %v2250_v51  ;;  %2150 = vmatprep.mubr.f32.mxu0 %v2149_v11  ;;  %5046 = vmatprep.subr.bf16.mxu1 %v5045_v27  ;;  %v9459_v27 = vld [vmem:[#allocation34_spill] sm:$0xff] }
 0x138   :  { %v7795_v26 = vpack.c.bf16 %v9445_v5, %v9444_v15  ;;  %v2258_v57 = vand.u32 4294901760, %v2257_v58  ;;  %v5049_v38 = vpack.c.bf16 %v2370_v33, %v2363_v22  ;;  %v9448_v9 = vand.u32 4294901760, %v7253_v29  ;;  %5004 = vmatpush3.bf16.msra.mxu0 %v7782_v0 }
 0x139   :  { %v7801_v19 = vpack.c.bf16 %v9447_v7, %v9446_v30  ;;  %v9449_v60 = vand.u32 4294901760, %v7270_v6  ;;  %v2377_v37 = vand.u32 4294901760, %v2376_v53  ;;  %v2384_v58 = vand.u32 4294901760, %v2383_v41  ;;  %5048 = vmatpush3.bf16.msra.mxu1 %v5047_v21  ;;  %v9457_v41 = vld [vmem:[#allocation33_spill] sm:$0xff] }
 0x13a   :  { %v2264_v1 = vsub.f32 %v7253_v29, %v9448_v9  ;;  %v9450_v12 = vand.u32 4294901760, %v7275_v28  ;;  %v9452_v43 = vand.u32 4294901760, %v9451_v16  ;;  %5006 = vmatprep.subr.bf16.mxu0 %v7795_v26  ;;  %v9453_v51 = vand.u32 4294901760, %v7527_v59  ;;  %5050 = vmatprep.subr.bf16.mxu1 %v5049_v38 }
 0x13b   :  { %v2271_v52 = vsub.f32 %v7270_v6, %v9449_v60  ;;  %v9454_v32 = vand.u32 4294901760, %v7532_v42  ;;  %v5051_v33 = vpack.c.bf16 %v2258_v57, %v2251_v62  ;;  %v7828_v55 = vadd.s32 512, %v9455_v20 }
 0x13c   :  { %v2390_v47 = vsub.f32 %v7275_v28, %v9450_v12  ;;  %v2397_v35 = vsub.f32 %v9451_v16, %v9452_v43  ;;  %v2265_v53 = vand.u32 4294901760, %v2264_v1  ;;  %v9458_v11 = vand.u32 4294901760, %v9457_v41  ;;  %5008 = vmatpush3.bf16.msra.mxu0 %v7801_v19 }
 0x13d   :  { %v7825_v22 = vpack.c.bf16 %v9454_v32, %v9453_v51  ;;  %9456 = vst [vmem:[#allocation42_spill] sm:$0xff] %v7828_v55  ;;  %v2272_v23 = vand.u32 4294901760, %v2271_v52  ;;  %v9460_v5 = vand.u32 4294901760, %v9459_v27  ;;  %v9461_v59 = vand.u32 4294901760, %v7551_v50  ;;  %5052 = vmatpush3.bf16.msra.mxu1 %v5051_v33  ;;  %v9465_v50 = vld [vmem:[#allocation15_spill] sm:$0xff] }
 0x13e   :  { %v2278_v15 = vsub.f32 %v9457_v41, %v9458_v11  ;;  %v9462_v42 = vand.u32 4294901760, %v7556_v48  ;;  %v5053_v21 = vpack.c.bf16 %v2384_v58, %v2377_v37  ;;  %v2391_v62 = vand.u32 4294901760, %v2390_v47  ;;  %v9467_v37 = vld [vmem:[#allocation41_spill] sm:$0xff] }
 0x13f   :  { %v2285_v30 = vsub.f32 %v9459_v27, %v9460_v5  ;;  %v2398_v57 = vand.u32 4294901760, %v2397_v35  ;;  %5010 = vmatprep.subr.bf16.mxu0 %v7825_v22  ;;  %v9463_v9 = vand.u32 4294901760, %v7583_v2  ;;  %v9464_v1 = vand.u32 4294901760, %v7588_v18 }
 0x140   :  { %v7841_v7 = vpack.c.bf16 %v9462_v42, %v9461_v59  ;;  %v5055_v52 = vpack.c.bf16 %v2272_v23, %v2265_v53  ;;  %v2279_v38 = vand.u32 4294901760, %v2278_v15  ;;  %vm36_vm9 = vcmp.eq.s32.totalorder %v7828_v55, %v6196_v17  ;;  %5054 = vmatprep.subr.bf16.mxu1 %v5053_v21  ;;  %v9474_v23 = vld [vmem:[#allocation8_spill] sm:$0xff]  ;;  %v9478_v42 = vld [vmem:[#allocation22_spill] sm:$0xff] }
 0x141   :  { %v7848_v60 = vpack.c.bf16 %v9464_v1, %v9463_v9  ;;  %v2286_v12 = vand.u32 4294901760, %v2285_v30  ;;  %v9466_v48 = vand.u32 4294901760, %v9465_v50  ;;  %v9468_v58 = vand.u32 4294901760, %v9467_v37  ;;  %v9476_v30 = vld [vmem:[#allocation9_spill] sm:$0xff]  ;;  %v9480_v1 = vld [vmem:[#allocation23_spill] sm:$0xff] }
 0x142   :  { %5012 = vmatpush3.bf16.msra.mxu0 %v7841_v7  ;;  %v5057_v2 = vpack.c.bf16 %v2398_v57, %v2391_v62  ;;  %vm45_vm10 = vcmp.eq.s32.totalorder %v7285_v10, %v9420_v36  ;;  %v9469_v18 = vand.u32 4294901760, %v7605_v13  ;;  %v9470_v43 = vand.u32 4294901760, %v7610_v61  ;;  %5056 = vmatpush3.bf16.msra.mxu1 %v5055_v52  ;;  %v9472_v13 = vld [vmem:[#allocation5_spill] sm:$0xff] }
 0x143   :  { %v7857_v47 = vpack.c.bf16 %v9468_v58, %v9466_v48  ;;  %5014 = vmatprep.subr.bf16.mxu0 %v7848_v60  ;;  %v9471_v51 = vmov 0.0   ;;  %v5059_v33 = vpack.c.bf16 %v2286_v12, %v2279_v38  ;;  %vm44_vm11 = vcmp.eq.s32.totalorder %v7828_v55, %v9420_v36  ;;  %v9482_v38 = vld [vmem:[#allocation24_spill] sm:$0xff]  ;;  %v9484_v37 = vld [vmem:[#allocation25_spill] sm:$0xff] }
 0x144   :  { %v7866_v35 = vpack.c.bf16 %v9470_v43, %v9469_v18  ;;  %v3869_v32 = vsel %vm36_vm9, 1.0, %v9471_v51  ;;  %v3878_v53 = vsel %vm45_vm10, 1.0, %v9471_v51  ;;  %5058 = vmatprep.subr.bf16.mxu1 %v5057_v2  ;;  %v9473_v61 = vand.u32 4294901760, %v9472_v13  ;;  %v9486_v2 = vld [vmem:[#allocation26_spill] sm:$0xff]  ;;  %v9506_v55 = vld [vmem:[#allocation16_spill] sm:$0xff] }
 0x145   :  { %v9475_v11 = vand.u32 4294901760, %v9474_v23  ;;  %v7886_v5 = vsub.f32 %v3869_v32, %v3869_v32  ;;  %v9477_v59 = vand.u32 4294901760, %v9476_v30  ;;  %v9479_v21 = vand.u32 4294901760, %v9478_v42  ;;  %v9493_v42 = vld [vmem:[#allocation48_spill] sm:$0xff] }
 0x146   :  { %5016 = vmatpush3.bf16.msra.mxu0 %v7857_v47  ;;  %v7894_v57 = vsub.f32 %v3878_v53, %v3878_v53  ;;  %v3877_v9 = vsel %vm44_vm11, 1.0, %v9471_v51  ;;  %5060 = vmatpush3.bf16.msra.mxu1 %v5059_v33  ;;  %v9481_v52 = vand.u32 4294901760, %v9480_v1  ;;  %v9483_v12 = vand.u32 4294901760, %v9482_v38  ;;  %v9488_v53 = vld [vmem:[#allocation27_spill] sm:$0xff]  ;;  %v9495_v38 = vld [vmem:[#allocation49_spill] sm:$0xff] }
 0x147   :  { %v7883_v15 = vpack.c.bf16 %v9475_v11, %v9473_v61  ;;  %5018 = vmatprep.subr.bf16.mxu0 %v7866_v35  ;;  %v7892_v62 = vpack.c.bf16 %v9479_v21, %v9477_v59  ;;  %5094 = vmatprep.subr.bf16.mxu1 %v7716_v54  ;;  %v7909_v48 = vsub.f32 %v3877_v9, %v3877_v9  ;;  %v9485_v58 = vand.u32 4294901760, %v9484_v37  ;;  %v9490_v61 = vld [vmem:[#allocation28_spill] sm:$0xff]  ;;  %v9492_v59 = vld [vmem:[#allocation10_spill] sm:$0xff] }
 0x148   :  { %v7906_v50 = vpack.c.bf16 %v9483_v12, %v9481_v52  ;;  %v9487_v18 = vand.u32 4294901760, %v9486_v2  ;;  %v9016_v32 = vand.u32 4294901760, %v7886_v5  ;;  %v9015_v33 = vand.u32 4294901760, %v7894_v57  ;;  %v9496_v12 = vld [vmem:[#allocation51_spill] sm:$0xff] }
 0x149   :  { %3906 = vmatmul.mubr.msk.f32.vlgmr.msra.gmra.mrb[24].mxu1 %vm36_vm9, %v9109_v14  ;;  %v9489_v13 = vand.u32 4294901760, %v9488_v53  ;;  %v9491_v23 = vand.u32 4294901760, %v9490_v61  ;;  %v5061_v21 = vpack.c.bf16 %v9493_v42, %v9492_v59  ;;  %v9018_v9 = vand.u32 4294901760, %v7909_v48  ;;  %v9498_v53 = vld [vmem:[#allocation18_spill] sm:$0xff] }
 0x14a   :  { %5020 = vmatpush3.bf16.msra.mxu0 %v7883_v15  ;;  %v7915_v43 = vpack.c.bf16 %v9487_v18, %v9485_v58  ;;  %3907 = vmatprep.mubr.msk.f32.mxu1 %vm45_vm10, %v9109_v14  ;;  %v2154_v30 = vsub.f32 %v7886_v5, %v9016_v32  ;;  %v2163_v1 = vsub.f32 %v7894_v57, %v9015_v33  ;;  %v9494_v52 = vand.u32 4294901760, %v7426_v49  ;;  %v9497_v18 = vld [vmem:[#allocation36_spill] sm:$0xff]  ;;  %v9502_v32 = vld [vmem:[#allocation14_spill] sm:$0xff] }
 0x14b   :  { %5022 = vmatprep.subr.bf16.mxu0 %v7892_v62  ;;  %5096 = vmatpush3.bf16.msra.mxu1 %v7751_v34  ;;  %v7934_v11 = vpack.c.bf16 %v9491_v23, %v9489_v13  ;;  %v5063_v37 = vpack.c.bf16 %v9496_v12, %v9495_v38  ;;  %v2169_v2 = vsub.f32 %v7909_v48, %v9018_v9  ;;  %v9499_v23 = vld [vmem:[#allocation19_spill] sm:$0xff]  ;;  %v9505_v9 = vld [vmem:[#allocation44_spill] sm:$0xff] }
 0x14c   :  { %5098 = vmatprep.subr.bf16.mxu1 %v7761_v31  ;;  %v2155_v58 = vand.u32 4294901760, %v2154_v30  ;;  %v5065_v13 = vpack.c.bf16 %v9498_v53, %v9497_v18  ;;  %v2164_v61 = vand.u32 4294901760, %v2163_v1  ;;  %v9503_v1 = vld [vmem:[#allocation37_spill] sm:$0xff] }
 0x14d   :  { %3908 = vmatmul.mubr.msk.f32.gmra.mrb[26].mxu1 %vm44_vm11, %v9109_v14  ;;  %v2170_v30 = vand.u32 4294901760, %v2169_v2  ;;  %v5075_v2 = vpack.c.bf16 %v7641_v44, %v7636_v56  ;;  %v5081_v44 = vpack.c.bf16 %v9506_v55, %v9505_v9 }
 0x14e   :  { %5024 = vmatpush3.bf16.msra.mxu0 %v7906_v50  ;;  %2661 = vmatprep.mubr.f32.mxu1 %v9494_v52  ;;  %v9500_v52 = vld [vmem:[#allocation12_spill] sm:$0xff] }
 0x14f   :  { %5026 = vmatprep.subr.bf16.mxu0 %v7915_v43  ;;  %5100 = vmatpush3.bf16.msra.mxu1 %v7782_v0  ;;  %v5067_v33 = vpack.c.bf16 %v9500_v52, %v9499_v23 }
 0x150   :  { %5102 = vmatprep.subr.bf16.mxu1 %v7795_v26 }
 0x152   :  { %5028 = vmatpush3.bf16.msra.mxu0 %v7934_v11 }
 0x153   :  { %5062 = vmatprep.subr.bf16.mxu0 %v5061_v21  ;;  %5104 = vmatpush3.bf16.msra.mxu1 %v7801_v19  ;;  %v9501_v21 = vld [vmem:[#allocation13_spill] sm:$0xff] }
 0x154   :  { %5106 = vmatprep.subr.bf16.mxu1 %v7825_v22  ;;  %v5069_v36 = vpack.c.bf16 %v9502_v32, %v9501_v21 }
 0x155   :  { %2156 = vmatmul.mubr.f32.vlgmr.msra.gmra.mrb[24].mxu0 %v2155_v58  ;;  %v9504_v58 = vld [vmem:[#allocation39_spill] sm:$0xff] }
 0x156   :  { %2165 = vmatprep.mubr.f32.mxu0 %v2164_v61  ;;  %5064 = vmatpush3.bf16.msra.mxu0 %v5063_v37  ;;  %v5071_v61 = vpack.c.bf16 %v9504_v58, %v9503_v1  ;;  %v5073_v37 = vpack.c.bf16 %v7620_v40, %v7615_v46 }
 0x157   :  { %5066 = vmatprep.subr.bf16.mxu0 %v5065_v13  ;;  %5108 = vmatpush3.bf16.msra.mxu1 %v7841_v7 }
 0x158   :  { %5110 = vmatprep.subr.bf16.mxu1 %v7848_v60 }
 0x159   :  { %2171 = vmatmul.mubr.f32.gmra.mrb[26].mxu0 %v2170_v30 }
 0x15a   :  { %5068 = vmatpush3.bf16.msra.mxu0 %v5067_v33  ;;  %2545 = vmatprep.mubr.f32.mxu0 %v7426_v49  ;;  %v3999_v33 = vpop.f32.mrb[0].mxu1  ;;  %v5077_v49 = vpack.c.bf16 %v7663_v63, %v7658_v25 }
 0x15b   :  { %5070 = vmatprep.subr.bf16.mxu0 %v5069_v36  ;;  %5112 = vmatpush3.bf16.msra.mxu1 %v7857_v47  ;;  %v4000_v13 = vpop.f32.mrb[1].mxu1  ;;  %v5079_v36 = vpack.c.bf16 %v9430_v3, %v9428_v45  ;;  %v205_v3 = vld [vmem:[%s8797_s2] sm:$0xff] }
 0x15c   :  { %5114 = vmatprep.subr.bf16.mxu1 %v7866_v35  ;;  %v4001_v30 = vadd.f32 %v4000_v13, %v3999_v33  ;;  %v5085_v33 = vpack.c.bf16 %v7248_v8, %v7243_v39  ;;  %v5087_v13 = vpack.c.bf16 %v7270_v6, %v7253_v29  ;;  %v5091_v29 = vpack.c.bf16 %v9459_v27, %v9457_v41 }
 0x15e   :  { %5072 = vmatpush3.bf16.msra.mxu0 %v5071_v61  ;;  %v4002_v61 = vpop.f32.mrb[2].mxu1 }
 0x15f   :  { %5074 = vmatprep.subr.bf16.mxu0 %v5073_v37  ;;  %5116 = vmatpush3.bf16.msra.mxu1 %v7883_v15  ;;  %v4003_v56 = vpop.f32.mrb[3].mxu1 }
 0x160   :  { %5118 = vmatprep.subr.bf16.mxu1 %v7892_v62  ;;  %v4004_v37 = vadd.f32 %v4003_v56, %v4002_v61  ;;  %v3961_v45 = vpop.f32.mrb[0].mxu0 }
 0x161   :  { %v3962_v56 = vpop.f32.mrb[1].mxu0 }
 0x162   :  { %5076 = vmatpush3.bf16.msra.mxu0 %v5075_v2  ;;  %v5083_v2 = vpack.c.bf16 %v7217_v24, %v7191_v4  ;;  %v5089_v4 = vpack.c.bf16 %v9451_v16, %v7275_v28  ;;  %v9507_v24 = vand.u32 4294901760, %v7886_v5  ;;  %v9509_v28 = vand.u32 4294901760, %v9492_v59 }
 0x163   :  { %5078 = vmatprep.subr.bf16.mxu0 %v5077_v49  ;;  %5120 = vmatpush3.bf16.msra.mxu1 %v7906_v50  ;;  %v3963_v49 = vadd.f32 %v3962_v56, %v3961_v45  ;;  %v9514_v59 = vand.u32 4294901760, %v9497_v18  ;;  %v9518_v18 = vand.u32 4294901760, %v9501_v21  ;;  %v9528_v56 = vand.u32 4294901760, %v7658_v25 }
 0x164   :  { %5122 = vmatprep.subr.bf16.mxu1 %v7915_v43  ;;  %v3964_v39 = vpop.f32.mrb[2].mxu0 }
 0x165   :  { %v322_v8 = vadd.f32 %v3963_v49, %v205_v3 }
 0x166   :  { %5080 = vmatpush3.bf16.msra.mxu0 %v5079_v36  ;;  %v3965_v36 = vpop.f32.mrb[3].mxu0 }
 0x167   :  { %5082 = vmatprep.subr.bf16.mxu0 %v5081_v44  ;;  %5124 = vmatpush3.bf16.msra.mxu1 %v7934_v11  ;;  %v9508_v44 = vand.u32 4294901760, %v7894_v57  ;;  %v3966_v61 = vadd.f32 %v3965_v36, %v3964_v39  ;;  %v8010_v6 = vadd.f32 %v4001_v30, %v322_v8  ;;  %v8042_v30 = vadd.s32 896, %v9455_v20 }
 0x168   :  { %5158 = vmatprep.subr.bf16.mxu1 %v7716_v54  ;;  %v9510_v54 = vand.u32 4294901760, %v9493_v42 }
 0x169   :  { %vm39_vm12 = vcmp.eq.s32.totalorder %v8042_v30, %v6196_v17 }
 0x16a   :  { %5084 = vmatpush3.bf16.msra.mxu0 %v5083_v2  ;;  %2665 = vmatmul.mubr.f32.vlgmr.msra.gmra.mrb[28].mxu1 %v9507_v24  ;;  %v5125_v16 = vpack.c.bf16 %v9510_v54, %v9509_v28  ;;  %v337_v2 = vadd.f32 %v3966_v61, %v205_v3  ;;  %v8074_v21 = vsel %vm39_vm12, 1.0, %v9471_v51  ;;  %v9531_v28 = vand.u32 4294901760, %v9506_v55  ;;  %v181_v55 = vld [vmem:[%s8796_s1 + $0x328] sm:$0xff] }
 0x16b   :  { %5086 = vmatprep.subr.bf16.mxu0 %v5085_v33  ;;  %2672 = vmatprep.mubr.f32.mxu1 %v9508_v44  ;;  %v9511_v33 = vand.u32 4294901760, %v7909_v48  ;;  %v208_v39 = vsel %vm206_vm13, %v8074_v21, 0 }
 0x16c   :  { %5160 = vmatpush3.bf16.msra.mxu1 %v7751_v34  ;;  %v9513_v34 = vand.u32 4294901760, %v9496_v12  ;;  %v8028_v27 = vadd.f32 %v4004_v37, %v337_v2 }
 0x16d   :  { %5162 = vmatprep.subr.bf16.mxu1 %v7761_v31  ;;  %v9512_v31 = vand.u32 4294901760, %v9495_v38  ;;  %v9517_v38 = vand.u32 4294901760, %v9500_v52  ;;  %v177_v52 = vld [vmem:[%s8796_s1 + $0x308] sm:$0xff] }
 0x16e   :  { %5088 = vmatpush3.bf16.msra.mxu0 %v5087_v13  ;;  %2676 = vmatmul.mubr.f32.gmra.mrb[30].mxu1 %v9511_v33  ;;  %v2971_v45 = vand.u32 4294901760, %v177_v52  ;;  %v178_v13 = vld [vmem:[%s8796_s1 + $0x310] sm:$0xff] }
 0x16f   :  { %5090 = vmatprep.subr.bf16.mxu0 %v5089_v4  ;;  %3913 = vmatprep.mubr.msk.f32.mxu1 %vm37_vm8, %v9109_v14  ;;  %v5127_v41 = vpack.c.bf16 %v9513_v34, %v9512_v31  ;;  %v180_v31 = vld [vmem:[%s8796_s1 + $0x320] sm:$0xff] }
 0x170   :  { %5164 = vmatpush3.bf16.msra.mxu1 %v7782_v0  ;;  %v9515_v0 = vand.u32 4294901760, %v9498_v53  ;;  %v8093_v24 = vsub.f32 %v177_v52, %v2971_v45 }
 0x171   :  { %5166 = vmatprep.subr.bf16.mxu1 %v7795_v26  ;;  %v9516_v26 = vand.u32 4294901760, %v9499_v23  ;;  %v176_v23 = vld [vmem:[%s8796_s1 + $0x300] sm:$0xff] }
 0x172   :  { %5092 = vmatpush3.bf16.msra.mxu0 %v5091_v29  ;;  %v5129_v42 = vpack.c.bf16 %v9515_v0, %v9514_v59  ;;  %v2968_v37 = vand.u32 4294901760, %v176_v23  ;;  %v9530_v29 = vand.u32 4294901760, %v9505_v9  ;;  %v9533_v9 = vld [vmem:[#allocation31_spill] sm:$0xff]  ;;  %v2983_v0 = vand.u32 4294901760, %v181_v55 }
 0x173   :  { %5126 = vmatprep.subr.bf16.mxu0 %v5125_v16  ;;  %v5131_v12 = vpack.c.bf16 %v9517_v38, %v9516_v26  ;;  %v8105_v16 = vsub.f32 %v208_v39, %v208_v39 }
 0x174   :  { %5168 = vmatpush3.bf16.msra.mxu1 %v7801_v19  ;;  %v9520_v19 = vand.u32 4294901760, %v9503_v1  ;;  %v8091_v8 = vsub.f32 %v176_v23, %v2968_v37  ;;  %v5145_v54 = vpack.c.bf16 %v9531_v28, %v9530_v29  ;;  %v8129_v38 = vpack.c.bf16 %v2971_v45, %v2968_v37 }
 0x175   :  { %2548 = vmatmul.mubr.f32.vlgmr.msra.gmra.mrb[28].mxu0 %v7886_v5  ;;  %5170 = vmatprep.subr.bf16.mxu1 %v7825_v22  ;;  %v9519_v5 = vand.u32 4294901760, %v9502_v32  ;;  %v9521_v22 = vand.u32 4294901760, %v9504_v58  ;;  %9532 = vst [vmem:[#allocation45_spill] sm:$0xff] %v8105_v16 }
 0x176   :  { %2554 = vmatprep.mubr.f32.mxu0 %v7894_v57  ;;  %5128 = vmatpush3.bf16.msra.mxu0 %v5127_v41  ;;  %v3062_v41 = vand.u32 4294901760, %v8105_v16  ;;  %9534 = vst [vmem:[#allocation38_spill] sm:$0xff] %v8129_v38 }
 0x177   :  { %5130 = vmatprep.subr.bf16.mxu0 %v5129_v42  ;;  %v5133_v53 = vpack.c.bf16 %v9519_v5, %v9518_v18  ;;  %v5135_v57 = vpack.c.bf16 %v9521_v22, %v9520_v19  ;;  %v4075_v3 = vpop.f32.mrb[4].mxu1  ;;  %v182_v42 = vld [vmem:[%s8796_s1 + $0x330] sm:$0xff]  ;;  %v9535_v18 = vld [vmem:[#allocation35_spill] sm:$0xff]  ;;  %v9023_v5 = vmov 0.0|0.0   ;;  %v8138_v19 = vsub.f32 %v181_v55, %v2983_v0  ;;  %v185_v22 = vld [vmem:[%s8796_s1 + $0x348] sm:$0xff] }
 0x178   :  { %5172 = vmatpush3.bf16.msra.mxu1 %v7841_v7  ;;  %v9523_v7 = vand.u32 4294901760, %v7620_v40  ;;  %v4076_v4 = vpop.f32.mrb[5].mxu1  ;;  %v2995_v45 = vand.u32 4294901760, %v185_v22  ;;  %v189_v55 = vld [vmem:[%s8796_s1 + $0x368] sm:$0xff] }
 0x179   :  { %2557 = vmatmul.mubr.f32.gmra.mrb[30].mxu0 %v7909_v48  ;;  %5174 = vmatprep.subr.bf16.mxu1 %v7848_v60  ;;  %v9522_v48 = vand.u32 4294901760, %v7615_v46  ;;  %v9524_v46 = vld [vmem:[#allocation40_spill] sm:$0xff]  ;;  %v9526_v60 = vld [vmem:[#allocation43_spill] sm:$0xff]  ;;  %v4077_v25 = vadd.f32 %v4076_v4, %v4075_v3 }
 0x17a   :  { %5132 = vmatpush3.bf16.msra.mxu0 %v5131_v12  ;;  %3909 = vmatprep.mubr.msk.f32.mxu0 %vm37_vm8, %v9109_v14  ;;  %v9525_v40 = vand.u32 4294901760, %v9524_v46  ;;  %v9527_v1 = vand.u32 4294901760, %v9526_v60  ;;  %v9541_v4 = vld [vmem:[#allocation47_spill] sm:$0xff] }
 0x17b   :  { %5134 = vmatprep.subr.bf16.mxu0 %v5133_v53  ;;  %v5137_v32 = vpack.c.bf16 %v9523_v7, %v9522_v48  ;;  %v4078_v61 = vpop.f32.mrb[6].mxu1  ;;  %v3063_v48 = vsub.f32 %v8105_v16, %v3062_v41  ;;  %v2986_v7 = vand.u32 4294901760, %v182_v42 }
 0x17c   :  { %5176 = vmatpush3.bf16.msra.mxu1 %v7857_v47  ;;  %v5139_v58 = vpack.c.bf16 %v9527_v1, %v9525_v40  ;;  %v9529_v47 = vand.u32 4294901760, %v7663_v63  ;;  %v2974_v63 = vand.u32 4294901760, %v178_v13  ;;  %v4079_v2 = vpop.f32.mrb[7].mxu1  ;;  %v9538_v1 = vld [vmem:[#allocation21_spill] sm:$0xff] }
 0x17d   :  { %5178 = vmatprep.subr.bf16.mxu1 %v7866_v35  ;;  %v179_v35 = vld [vmem:[%s8796_s1 + $0x318] sm:$0xff]  ;;  %v3064_v39 = vand.u32 4294901760, %v3063_v48  ;;  %v200_v48 = vld [vmem:[%s8796_s1 + $0x3c0] sm:$0xff]  ;;  %vm47_vm15 = vcmp.eq.s32.totalorder %v8042_v30, %v9538_v1 }
 0x17e   :  { %5136 = vmatpush3.bf16.msra.mxu0 %v5135_v57  ;;  %v5141_v49 = vpack.c.bf16 %v9529_v47, %v9528_v56  ;;  %v2977_v44 = vand.u32 4294901760, %v179_v35  ;;  %v8107_v33 = vsub.f32 %v178_v13, %v2974_v63  ;;  %v9536_v57 = vld [vmem:[#allocation11_spill] sm:$0xff]  ;;  %v9540_v56 = vld [vmem:[#allocation46_spill] sm:$0xff]  ;;  %v3040_v34 = vand.u32 4294901760, %v200_v48 }
 0x17f   :  { %5138 = vmatprep.subr.bf16.mxu0 %v5137_v32  ;;  %v187_v13 = vld [vmem:[%s8796_s1 + $0x358] sm:$0xff] }
 0x180   :  { %5180 = vmatpush3.bf16.msra.mxu1 %v7883_v15  ;;  %v8109_v15 = vsub.f32 %v179_v35, %v2977_v44  ;;  %v4037_v59 = vpop.f32.mrb[4].mxu0 }
 0x181   :  { %5182 = vmatprep.subr.bf16.mxu1 %v7892_v62  ;;  %v8111_v62 = vadd.f32 %v4079_v2, %v4078_v61  ;;  %v4038_v26 = vpop.f32.mrb[5].mxu0 }
 0x182   :  { %5140 = vmatpush3.bf16.msra.mxu0 %v5139_v58  ;;  %v4039_v12 = vadd.f32 %v4038_v26, %v4037_v59  ;;  %v8162_v58 = vpack.c.bf16 %v2977_v44, %v2974_v63  ;;  %v8181_v44 = vsub.f32 %v185_v22, %v2995_v45  ;;  %v3007_v26 = vand.u32 4294901760, %v189_v55 }
 0x183   :  { %5142 = vmatprep.subr.bf16.mxu0 %v5141_v49  ;;  %v186_v49 = vld [vmem:[%s8796_s1 + $0x350] sm:$0xff] }
 0x184   :  { %5184 = vmatpush3.bf16.msra.mxu1 %v7906_v50  ;;  %v2980_v50 = vand.u32 4294901760, %v180_v31  ;;  %v714_v32 = vadd.f32 %v4039_v12, %v8010_v6  ;;  %v4040_v23 = vpop.f32.mrb[6].mxu0  ;;  %9539 = vst [vmem:[#allocation17_spill] sm:$0xff] %v8162_v58  ;;  %v8164_v6 = vsub.f32 %v182_v42, %v2986_v7  ;;  %v2998_v28 = vand.u32 4294901760, %v186_v49  ;;  %v191_v12 = vld [vmem:[%s8796_s1 + $0x378] sm:$0xff] }
 0x185   :  { %5186 = vmatprep.subr.bf16.mxu1 %v7915_v43  ;;  %v183_v43 = vld [vmem:[%s8796_s1 + $0x338] sm:$0xff]  ;;  %v4041_v60 = vpop.f32.mrb[7].mxu0 }
 0x186   :  { %5144 = vmatpush3.bf16.msra.mxu0 %v9533_v9  ;;  %v8136_v53 = vsub.f32 %v180_v31, %v2980_v50  ;;  %v2989_v46 = vand.u32 4294901760, %v183_v43  ;;  %v4042_v3 = vadd.f32 %v4041_v60, %v4040_v23  ;;  %v8176_v35 = vadd.f32 %v4077_v25, %v714_v32  ;;  %v9543_v31 = vld [vmem:[#allocation50_spill] sm:$0xff]  ;;  %v193_v32 = vld [vmem:[%s8796_s1 + $0x388] sm:$0xff] }
 0x187   :  { %5146 = vmatprep.subr.bf16.mxu0 %v5145_v54  ;;  %v8191_v25 = vpack.c.bf16 %v2983_v0, %v2980_v50  ;;  %v3001_v54 = vand.u32 4294901760, %v187_v13  ;;  %v8207_v59 = vsub.f32 %v186_v49, %v2998_v28  ;;  %v3019_v60 = vand.u32 4294901760, %v193_v32 }
 0x188   :  { %5188 = vmatpush3.bf16.msra.mxu1 %v7934_v11  ;;  %v184_v11 = vld [vmem:[%s8796_s1 + $0x340] sm:$0xff]  ;;  %v8168_v47 = vsub.f32 %v183_v43, %v2989_v46  ;;  %v723_v61 = vadd.f32 %v4042_v3, %v8028_v27  ;;  %v8216_v0 = vpack.c.bf16 %v2989_v46, %v2986_v7  ;;  %v190_v43 = vld [vmem:[%s8796_s1 + $0x370] sm:$0xff]  ;;  %v195_v3 = vld [vmem:[%s8796_s1 + $0x398] sm:$0xff] }
 0x189   :  { %5189 = vmatprep.subr.bf16.mxu1 %v9023_v5  ;;  %v2992_v37 = vand.u32 4294901760, %v184_v11  ;;  %9542 = vst [vmem:[#allocation29_spill] sm:$0xff] %v8191_v25  ;;  %v188_v27 = vld [vmem:[%s8796_s1 + $0x360] sm:$0xff]  ;;  %v8209_v50 = vsub.f32 %v187_v13, %v3001_v54  ;;  %v3010_v22 = vand.u32 4294901760, %v190_v43  ;;  %v8262_v46 = vpack.c.bf16 %v3001_v54, %v2998_v28 }
 0x18a   :  { %5148 = vmatpush3.bf16.msra.mxu0 %v9535_v18  ;;  %v8204_v9 = vadd.f32 %v8111_v62, %v723_v61  ;;  %9544 = vst [vmem:[#allocation6_spill] sm:$0xff] %v8216_v0  ;;  %v3004_v42 = vand.u32 4294901760, %v188_v27  ;;  %v192_v7 = vld [vmem:[%s8796_s1 + $0x380] sm:$0xff]  ;;  %v8277_v13 = vsub.f32 %v193_v32, %v3019_v60  ;;  %v3025_v54 = vand.u32 4294901760, %v195_v3  ;;  %v197_v32 = vld [vmem:[%s8796_s1 + $0x3a8] sm:$0xff] }
 0x18b   :  { %5150 = vmatprep.subr.bf16.mxu0 %v9536_v57  ;;  %3914 = vmatmul.mubr.msk.f32.vlgmr.msra.gmra.mrb[32].mxu1 %vm36_vm9, %v9109_v14  ;;  %v8179_v63 = vsub.f32 %v184_v11, %v2992_v37  ;;  %v8235_v11 = vsub.f32 %v189_v55, %v3007_v26  ;;  %v8242_v10 = vpack.c.bf16 %v2995_v45, %v2992_v37  ;;  %v3013_v57 = vand.u32 4294901760, %v191_v12  ;;  %v194_v45 = vld [vmem:[%s8796_s1 + $0x390] sm:$0xff] }
 0x18c   :  { %3915 = vmatprep.mubr.msk.f32.mxu1 %vm45_vm10, %v9109_v14  ;;  %5191 = vmatpush1.bf16.msra.mxu1 %v8129_v38  ;;  %v8233_v18 = vsub.f32 %v188_v27, %v3004_v42  ;;  %v8257_v23 = vsub.f32 %v190_v43, %v3010_v22  ;;  %9546 = vst [vmem:[#allocation30_spill] sm:$0xff] %v8262_v46  ;;  %v3022_v28 = vand.u32 4294901760, %v194_v45 }
 0x18d   :  { %5192 = vmatprep.subr.bf16.mxu1 %v9023_v5  ;;  %9545 = vst [vmem:[#allocation7_spill] sm:$0xff] %v8242_v10  ;;  %v8259_v52 = vsub.f32 %v191_v12, %v3013_v57  ;;  %v8289_v43 = vsub.f32 %v195_v3, %v3025_v54  ;;  %v8292_v12 = vpack.c.bf16 %v3013_v57, %v3010_v22  ;;  %v3031_v57 = vand.u32 4294901760, %v197_v32 }
 0x18e   :  { %5152 = vmatpush3.bf16.msra.mxu0 %v9540_v56  ;;  %v8287_v55 = vsub.f32 %v194_v45, %v3022_v28  ;;  %v8334_v29 = vpack.c.bf16 %v3025_v54, %v3022_v28  ;;  %v203_v28 = vld [vmem:[%s8796_s1 + $0x3d8] sm:$0xff] }
 0x18f   :  { %5154 = vmatprep.subr.bf16.mxu0 %v9541_v4  ;;  %3916 = vmatmul.mubr.msk.f32.gmra.mrb[34].mxu1 %vm44_vm11, %v9109_v14  ;;  %9548 = vst [vmem:[#allocation20_spill] sm:$0xff] %v8292_v12  ;;  %v8318_v37 = vsub.f32 %v197_v32, %v3031_v57 }
 0x190   :  { %5194 = vmatpush1.bf16.msra.mxu1 %v8162_v58  ;;  %3065 = vmatprep.mubr.f32.mxu1 %v3064_v39  ;;  %v8279_v39 = vpack.c.bf16 %v3007_v26, %v3004_v42  ;;  %9550 = vst [vmem:[#allocation34_spill] sm:$0xff] %v8334_v29 }
 0x191   :  { %5195 = vmatprep.subr.bf16.mxu1 %v9023_v5 }
 0x192   :  { %5156 = vmatpush3.bf16.msra.mxu0 %v9543_v31  ;;  %9547 = vst [vmem:[#allocation32_spill] sm:$0xff] %v8279_v39 }
 0x193   :  { %5315 = vmatprep.subr.bf16.mxu0 %v9023_v5 }
 0x194   :  { %5197 = vmatpush1.bf16.msra.mxu1 %v8191_v25 }
 0x195   :  { %3910 = vmatmul.mubr.msk.f32.vlgmr.msra.gmra.mrb[32].mxu0 %vm36_vm9, %v9109_v14  ;;  %5198 = vmatprep.subr.bf16.mxu1 %v9023_v5 }
 0x196   :  { %3911 = vmatprep.mubr.msk.f32.mxu0 %vm45_vm10, %v9109_v14  ;;  %5317 = vmatpush1.bf16.msra.mxu0 %v8129_v38 }
 0x197   :  { %5318 = vmatprep.subr.bf16.mxu0 %v9023_v5  ;;  %v4151_v56 = vpop.f32.mrb[8].mxu1 }
 0x198   :  { %5200 = vmatpush1.bf16.msra.mxu1 %v8216_v0  ;;  %v4152_v4 = vpop.f32.mrb[9].mxu1 }
 0x199   :  { %3912 = vmatmul.mubr.msk.f32.gmra.mrb[34].mxu0 %vm44_vm11, %v9109_v14  ;;  %5201 = vmatprep.subr.bf16.mxu1 %v9023_v5  ;;  %v4153_v61 = vadd.f32 %v4152_v4, %v4151_v56  ;;  %v198_v56 = vld [vmem:[%s8796_s1 + $0x3b0] sm:$0xff] }
 0x19a   :  { %5320 = vmatpush1.bf16.msra.mxu0 %v8162_v58  ;;  %3552 = vmatprep.mubr.f32.mxu0 %v3062_v41  ;;  %v3016_v41 = vand.u32 4294901760, %v192_v7 }
 0x19b   :  { %5321 = vmatprep.subr.bf16.mxu0 %v9023_v5  ;;  %v4154_v27 = vpop.f32.mrb[10].mxu1 }
 0x19c   :  { %5203 = vmatpush1.bf16.msra.mxu1 %v8242_v10  ;;  %v8275_v49 = vsub.f32 %v192_v7, %v3016_v41  ;;  %v4155_v42 = vpop.f32.mrb[11].mxu1  ;;  %v196_v7 = vld [vmem:[%s8796_s1 + $0x3a0] sm:$0xff] }
 0x19d   :  { %5204 = vmatprep.subr.bf16.mxu1 %v9023_v5  ;;  %v4156_v26 = vadd.f32 %v4155_v42, %v4154_v27  ;;  %v3028_v22 = vand.u32 4294901760, %v196_v7  ;;  %v8309_v27 = vpack.c.bf16 %v3019_v60, %v3016_v41  ;;  %v199_v42 = vld [vmem:[%s8796_s1 + $0x3b8] sm:$0xff]  ;;  %v201_v41 = vld [vmem:[%s8796_s1 + $0x3c8] sm:$0xff]  ;;  %v3034_v60 = vand.u32 4294901760, %v198_v56 }
 0x19e   :  { %5323 = vmatpush1.bf16.msra.mxu0 %v8191_v25  ;;  %v3037_v62 = vand.u32 4294901760, %v199_v42  ;;  %v3043_v36 = vand.u32 4294901760, %v201_v41  ;;  %v9044_v25 = vand.u32 4294901760, %v8164_v6 }
 0x19f   :  { %5324 = vmatprep.subr.bf16.mxu0 %v9023_v5  ;;  %9549 = vst [vmem:[#allocation33_spill] sm:$0xff] %v8309_v27  ;;  %v8316_v31 = vsub.f32 %v196_v7, %v3028_v22  ;;  %v8336_v40 = vsub.f32 %v198_v56, %v3034_v60  ;;  %v8351_v56 = vsub.f32 %v200_v48, %v3040_v34  ;;  %v3049_v48 = vand.u32 4294901760, %v203_v28 }
 0x1a0   :  { %5206 = vmatpush1.bf16.msra.mxu1 %v8262_v46  ;;  %v4113_v3 = vpop.f32.mrb[8].mxu0 }
 0x1a1   :  { %5207 = vmatprep.subr.bf16.mxu1 %v9023_v5  ;;  %v4114_v4 = vpop.f32.mrb[9].mxu0 }
 0x1a2   :  { %5326 = vmatpush1.bf16.msra.mxu0 %v8216_v0  ;;  %v4115_v45 = vadd.f32 %v4114_v4, %v4113_v3  ;;  %v8328_v3 = vadd.s32 768, %v9455_v20  ;;  %v9551_v20 = vmov 0.0|0.0  }
 0x1a3   :  { %5327 = vmatprep.subr.bf16.mxu0 %v9023_v5 }
 0x1a4   :  { %5209 = vmatpush1.bf16.msra.mxu1 %v8279_v39  ;;  %v1010_v4 = vadd.f32 %v4115_v45, %v8176_v35  ;;  %v4116_v7 = vpop.f32.mrb[10].mxu0  ;;  %v8340_v35 = vsub.f32 %v199_v42, %v3037_v62  ;;  %v202_v45 = vld [vmem:[%s8796_s1 + $0x3d0] sm:$0xff]  ;;  %vm38_vm14 = vcmp.eq.s32.totalorder %v8328_v3, %v6196_v17  ;;  %vm46_vm0 = vcmp.eq.s32.totalorder %v8328_v3, %v9538_v1 }
 0x1a5   :  { %5210 = vmatprep.subr.bf16.mxu1 %v9023_v5  ;;  %v4117_v2 = vpop.f32.mrb[11].mxu0 }
 0x1a6   :  { %5329 = vmatpush1.bf16.msra.mxu0 %v8242_v10  ;;  %v8348_v54 = vadd.f32 %v4153_v61, %v1010_v4  ;;  %v8363_v61 = vpack.c.bf16 %v3031_v57, %v3028_v22  ;;  %v3046_v4 = vand.u32 4294901760, %v202_v45  ;;  %v8377_v22 = vsel %vm47_vm15, 1.0, %v9471_v51 }
 0x1a7   :  { %5330 = vmatprep.subr.bf16.mxu0 %v9023_v5  ;;  %9553 = vst [vmem:[#allocation41_spill] sm:$0xff] %v8377_v22  ;;  %v3871_v57 = vsel %vm38_vm14, 1.0, %v9471_v51 }
 0x1a8   :  { %5212 = vmatpush1.bf16.msra.mxu1 %v8292_v12  ;;  %9552 = vst [vmem:[#allocation15_spill] sm:$0xff] %v8363_v61  ;;  %v8372_v30 = vsub.f32 %v202_v45, %v3046_v4  ;;  %v211_v45 = vsel %vm206_vm13, %v8377_v22, 0 }
 0x1a9   :  { %5213 = vmatprep.subr.bf16.mxu1 %v9023_v5 }
 0x1aa   :  { %5332 = vmatpush1.bf16.msra.mxu0 %v8262_v46 }
 0x1ab   :  { %5333 = vmatprep.subr.bf16.mxu0 %v9023_v5  ;;  %v4118_v5 = vadd.f32 %v4117_v2, %v4116_v7  ;;  %v8353_v2 = vsub.f32 %v201_v41, %v3043_v36  ;;  %v8384_v41 = vpack.c.bf16 %v3037_v62, %v3034_v60  ;;  %v9027_v62 = vand.u32 4294901760, %v8091_v8 }
 0x1ac   :  { %5215 = vmatpush1.bf16.msra.mxu1 %v8309_v27  ;;  %v8406_v7 = vsub.f32 %v211_v45, %v211_v45 }
 0x1ad   :  { %5216 = vmatprep.subr.bf16.mxu1 %v9551_v20  ;;  %v1017_v42 = vadd.f32 %v4118_v5, %v8204_v9  ;;  %v8374_v9 = vsub.f32 %v203_v28, %v3049_v48  ;;  %9554 = vst [vmem:[#allocation5_spill] sm:$0xff] %v8384_v41  ;;  %v8395_v28 = vsub.f32 %v3871_v57, %v3871_v57 }
 0x1ae   :  { %5335 = vmatpush1.bf16.msra.mxu0 %v8279_v39  ;;  %v3095_v60 = vsub.f32 %v8091_v8, %v9027_v62  ;;  %v9559_v39 = vand.u32 4294901760, %v8107_v33 }
 0x1af   :  { %5336 = vmatprep.subr.bf16.mxu0 %v9551_v20  ;;  %v8369_v5 = vadd.f32 %v4156_v26, %v1017_v42  ;;  %v3879_v42 = vsel %vm46_vm0, 1.0, %v9471_v51  ;;  %v8404_v26 = vpack.c.bf16 %v3043_v36, %v3040_v34  ;;  %v9558_v45 = vand.u32 4294901760, %v8395_v28 }
 0x1b0   :  { %5218 = vmatpush1.bf16.msra.mxu1 %v8334_v29  ;;  %v8412_v32 = vsub.f32 %v3879_v42, %v3879_v42  ;;  %v8431_v42 = vld [vmem:[%s8796_s1 + $0x3e0] sm:$0xff]  ;;  %v3109_v46 = vsub.f32 %v8107_v33, %v9559_v39  ;;  %v9562_v39 = vand.u32 4294901760, %v8136_v53  ;;  %s5497_s1 = smov [#allocation2]  }
 0x1b1   :  { %5219 = vmatprep.subr.bf16.mxu1 %v9551_v20  ;;  %s3854_s2 = sshll.u32 %s5497_s1, 4  ;;  %s3855_s2 = int_to_ptr.vmem [resolvable:$true] %s3854_s2 }
 0x1b2   :  { %5338 = vmatpush1.bf16.msra.mxu0 %v8292_v12  ;;  %9555 = vst [vmem:[#allocation8_spill] sm:$0xff] %v8412_v32  ;;  %v9564_v38 = vand.u32 4294901760, %v8412_v32  ;;  %v3110_v1 = vand.u32 4294901760, %v3109_v46  ;;  %s5469_s14 = scalar_lea.vmem %s3855_s2, 256  ;;  %p5474_p1 = scmp.lt.s32.totalorder %s3855_s2, %s3855_s2 }
 0x1b3   :  { %5339 = vmatprep.subr.bf16.mxu0 %v9551_v20  ;;  %p5470_p0 = scmp.ne.s32.totalorder %s3855_s2, %s5469_s14  ;;  %p5475_p2 = scmp.lt.s32.totalorder %s5469_s14, %s5469_s14 }
 0x1b4   :  { %5221 = vmatpush1.bf16.msra.mxu1 %v8363_v61  ;;  %v3084_v16 = vsub.f32 %v8412_v32, %v9564_v38  ;;  %v9565_v38 = vand.u32 4294901760, %v8168_v47 }
 0x1b5   :  { %5222 = vmatprep.subr.bf16.mxu1 %v9551_v20  ;;  %p5476_p3 = por %p5475_p2, %p5474_p1 }
 0x1b6   :  { %5341 = vmatpush1.bf16.msra.mxu0 %v8309_v27  ;;  %v9556_v27 = vand.u32 4294901760, %v8093_v24 }
 0x1b7   :  { %5342 = vmatprep.subr.bf16.mxu0 %v9551_v20  ;;  %v4227_v62 = vpop.f32.mrb[12].mxu1  ;;  %p5477_p4 = pnand %p5476_p3, %p5470_p0 }
 0x1b8   :  { %5224 = vmatpush1.bf16.msra.mxu1 %v8384_v41  ;;  %v3102_v36 = vsub.f32 %v8093_v24, %v9556_v27  ;;  %v4228_v34 = vpop.f32.mrb[13].mxu1  ;;  %v9560_v27 = vand.u32 4294901760, %v8109_v15 }
 0x1b9   :  { %5225 = vmatprep.subr.bf16.mxu1 %v9551_v20  ;;  %v4229_v0 = vadd.f32 %v4228_v34, %v4227_v62  ;;  %v9563_v34 = vand.u32 4294901760, %v8138_v19 }
 0x1ba   :  { %5344 = vmatpush1.bf16.msra.mxu0 %v8334_v29  ;;  %v8423_v29 = vpack.c.bf16 %v3049_v48, %v3046_v4  ;;  %v3069_v4 = vsub.f32 %v8395_v28, %v9558_v45  ;;  %v3103_v12 = vand.u32 4294901760, %v3102_v36  ;;  %v3116_v10 = vsub.f32 %v8109_v15, %v9560_v27 }
 0x1bb   :  { %5345 = vmatprep.subr.bf16.mxu0 %v9551_v20  ;;  %v8448_v45 = vand.u32 4294901760, %v8431_v42  ;;  %v9561_v48 = vand.u32 4294901760, %v8406_v7  ;;  %v4230_v36 = vpop.f32.mrb[14].mxu1  ;;  %v3130_v27 = vsub.f32 %v8138_v19, %v9563_v34 }
 0x1bc   :  { %5227 = vmatpush1.bf16.msra.mxu1 %v8404_v26  ;;  %9557 = vst [vmem:[#allocation9_spill] sm:$0xff] %v8423_v29  ;;  %v3070_v62 = vand.u32 4294901760, %v3069_v4  ;;  %v4231_v58 = vpop.f32.mrb[15].mxu1 }
 0x1bd   :  { %5228 = vmatprep.subr.bf16.mxu1 %v9551_v20  ;;  %v3078_v57 = vsub.f32 %v8406_v7, %v9561_v48  ;;  %v4232_v22 = vadd.f32 %v4231_v58, %v4230_v36  ;;  %v3131_v48 = vand.u32 4294901760, %v3130_v27  ;;  %v9043_v58 = vand.u32 4294901760, %v8179_v63 }
 0x1be   :  { %5347 = vmatpush1.bf16.msra.mxu0 %v8363_v61  ;;  %v3096_v61 = vand.u32 4294901760, %v3095_v60  ;;  %v3123_v60 = vsub.f32 %v8136_v53, %v9562_v39  ;;  %v3117_v39 = vand.u32 4294901760, %v3116_v10  ;;  %v3144_v10 = vsub.f32 %v8168_v47, %v9565_v38 }
 0x1bf   :  { %5348 = vmatprep.subr.bf16.mxu0 %v9551_v20  ;;  %v3079_v4 = vand.u32 4294901760, %v3078_v57 }
 0x1c0   :  { %5230 = vmatpush1.bf16.msra.mxu1 %v8423_v29  ;;  %v3124_v34 = vand.u32 4294901760, %v3123_v60  ;;  %v5235_v57 = vpack.c.bf16 %v3117_v39, %v3110_v1  ;;  %v9042_v60 = vand.u32 4294901760, %v8181_v44 }
 0x1c1   :  { %3051 = vmatprep.subr.mxu1 %v9471_v51  ;;  %v4189_v46 = vpop.f32.mrb[12].mxu0 }
 0x1c2   :  { %5350 = vmatpush1.bf16.msra.mxu0 %v8384_v41  ;;  %v5232_v41 = vpack.c.bf16 %v3103_v12, %v3096_v61  ;;  %v3137_v12 = vsub.f32 %v8164_v6, %v9044_v25  ;;  %v3085_v61 = vand.u32 4294901760, %v3084_v16  ;;  %v4190_v36 = vpop.f32.mrb[13].mxu0  ;;  %v5238_v27 = vpack.c.bf16 %v3131_v48, %v3124_v34 }
 0x1c3   :  { %5351 = vmatprep.subr.bf16.mxu0 %v9551_v20  ;;  %v3151_v16 = vsub.f32 %v8179_v63, %v9043_v58  ;;  %v3158_v38 = vsub.f32 %v8181_v44, %v9042_v60  ;;  %v3171_v48 = vand.u32 4294901760, %v8209_v50  ;;  %v3178_v60 = vand.u32 4294901760, %v8233_v18 }
 0x1c4   :  { %3053 = vmatpush1.msra.mxu1 %v8448_v45  ;;  %v9045_v58 = vand.u32 4294901760, %v8235_v11 }
 0x1c5   :  { %3071 = vmatmul.mubr.f32.vlgmr.msra.gmra.mrb[36].mxu1 %v3070_v62  ;;  %5231 = vmatprep.subr.bf16.mxu1 %v9551_v20  ;;  %v4191_v62 = vadd.f32 %v4190_v36, %v4189_v46  ;;  %v4192_v39 = vpop.f32.mrb[14].mxu0  ;;  %v3164_v46 = vand.u32 4294901760, %v8207_v59 }
 0x1c6   :  { %5353 = vmatpush1.bf16.msra.mxu0 %v8404_v26  ;;  %3080 = vmatprep.mubr.f32.mxu1 %v3079_v4  ;;  %v3138_v4 = vand.u32 4294901760, %v3137_v12  ;;  %v4193_v34 = vpop.f32.mrb[15].mxu0 }
 0x1c7   :  { %5233 = vmatpush1.bf16.msra.mxu1 %v5232_v41  ;;  %5354 = vmatprep.subr.bf16.mxu0 %v9551_v20  ;;  %v3145_v41 = vand.u32 4294901760, %v3144_v10  ;;  %v1240_v1 = vadd.f32 %v4191_v62, %v8348_v54  ;;  %v4194_v12 = vadd.f32 %v4193_v34, %v4192_v39  ;;  %v9566_v10 = vand.u32 4294901760, %v8091_v8 }
 0x1c8   :  { %5234 = vmatprep.subr.bf16.mxu1 %v9551_v20  ;;  %v9567_v54 = vand.u32 4294901760, %v8093_v24  ;;  %v3152_v62 = vand.u32 4294901760, %v3151_v16  ;;  %v9568_v39 = vand.u32 4294901760, %v8395_v28  ;;  %v3159_v34 = vand.u32 4294901760, %v3158_v38 }
 0x1c9   :  { %3086 = vmatmul.mubr.f32.gmra.mrb[38].mxu1 %v3085_v61  ;;  %v5241_v36 = vpack.c.bf16 %v3145_v41, %v3138_v4  ;;  %v1255_v25 = vadd.f32 %v4194_v12, %v8369_v5  ;;  %v3172_v4 = vsub.f32 %v8209_v50, %v3171_v48  ;;  %v9569_v41 = vand.u32 4294901760, %v8406_v7 }
 0x1ca   :  { %5356 = vmatpush1.bf16.msra.mxu0 %v8423_v29  ;;  %3917 = vmatprep.mubr.msk.f32.mxu1 %vm206_vm13, %v8074_v21  ;;  %v5358_v61 = vpack.c.bf16 %v9567_v54, %v9566_v10  ;;  %v9570_v5 = vand.u32 4294901760, %v8107_v33  ;;  %v3179_v38 = vsub.f32 %v8233_v18, %v3178_v60  ;;  %v3186_v12 = vsub.f32 %v8235_v11, %v9045_v58 }
 0x1cb   :  { %5236 = vmatpush1.bf16.msra.mxu1 %v5235_v57  ;;  %3540 = vmatprep.subr.mxu0 %v9471_v51  ;;  %v8498_v57 = vadd.f32 %v4229_v0, %v1240_v1  ;;  %v3165_v0 = vsub.f32 %v8207_v59, %v3164_v46  ;;  %v8520_v1 = vadd.f32 %v4232_v22, %v1255_v25  ;;  %v9046_v10 = vand.u32 4294901760, %v8257_v23 }
 0x1cc   :  { %5237 = vmatprep.subr.bf16.mxu1 %v9551_v20  ;;  %v9049_v54 = vand.u32 4294901760, %v8259_v52  ;;  %v5244_v25 = vpack.c.bf16 %v3159_v34, %v3152_v62  ;;  %v3187_v58 = vand.u32 4294901760, %v3186_v12  ;;  %v9576_v12 = vand.u32 4294901760, %v8168_v47 }
 0x1cd   :  { %v3166_v22 = vand.u32 4294901760, %v3165_v0  ;;  %v3193_v62 = vsub.f32 %v8257_v23, %v9046_v10 }
 0x1ce   :  { %3542 = vmatpush1.msra.mxu0 %v8448_v45  ;;  %v3200_v34 = vsub.f32 %v8259_v52, %v9049_v54 }
 0x1cf   :  { %5239 = vmatpush1.bf16.msra.mxu1 %v5238_v27  ;;  %3556 = vmatmul.mubr.f32.vlgmr.msra.gmra.mrb[36].mxu0 %v9568_v39  ;;  %v9571_v27 = vand.u32 4294901760, %v8109_v15  ;;  %v3173_v39 = vand.u32 4294901760, %v3172_v4  ;;  %v9048_v4 = vand.u32 4294901760, %v8275_v49 }
 0x1d0   :  { %5357 = vmatprep.subr.bf16.mxu0 %v9551_v20  ;;  %3563 = vmatprep.mubr.f32.mxu0 %v9569_v41  ;;  %v9573_v41 = vand.u32 4294901760, %v8136_v53  ;;  %v3201_v10 = vand.u32 4294901760, %v3200_v34  ;;  %v9051_v34 = vand.u32 4294901760, %v8316_v31 }
 0x1d1   :  { %5359 = vmatpush1.bf16.msra.mxu0 %v5358_v61  ;;  %5240 = vmatprep.subr.bf16.mxu1 %v9551_v20  ;;  %v5361_v16 = vpack.c.bf16 %v9571_v27, %v9570_v5  ;;  %v9572_v61 = vand.u32 4294901760, %v8412_v32  ;;  %v9574_v5 = vand.u32 4294901760, %v8138_v19  ;;  %v5247_v0 = vpack.c.bf16 %v3173_v39, %v3166_v22 }
 0x1d2   :  { %5360 = vmatprep.subr.bf16.mxu0 %v9551_v20  ;;  %v9052_v39 = vand.u32 4294901760, %v8287_v55 }
 0x1d3   :  { %5242 = vmatpush1.bf16.msra.mxu1 %v5241_v36  ;;  %3567 = vmatmul.mubr.f32.gmra.mrb[38].mxu0 %v9572_v61  ;;  %v5364_v27 = vpack.c.bf16 %v9574_v5, %v9573_v41  ;;  %v3180_v36 = vand.u32 4294901760, %v3179_v38  ;;  %v9575_v38 = vand.u32 4294901760, %v8164_v6  ;;  %v3194_v5 = vand.u32 4294901760, %v3193_v62 }
 0x1d4   :  { %3921 = vmatprep.mubr.msk.f32.mxu0 %vm206_vm13, %v8074_v21  ;;  %5243 = vmatprep.subr.bf16.mxu1 %v9551_v20 }
 0x1d5   :  { %5362 = vmatpush1.bf16.msra.mxu0 %v5361_v16  ;;  %v9047_v16 = vand.u32 4294901760, %v8277_v13  ;;  %v5367_v61 = vpack.c.bf16 %v9576_v12, %v9575_v38  ;;  %v5250_v41 = vpack.c.bf16 %v3187_v58, %v3180_v36  ;;  %v9577_v58 = vand.u32 4294901760, %v8179_v63 }
 0x1d6   :  { %5363 = vmatprep.subr.bf16.mxu0 %v9551_v20  ;;  %v9578_v36 = vand.u32 4294901760, %v8181_v44  ;;  %v5253_v38 = vpack.c.bf16 %v3201_v10, %v3194_v5  ;;  %v9054_v12 = vand.u32 4294901760, %v8318_v37  ;;  %v5373_v10 = vpack.c.bf16 %v3171_v48, %v3164_v46 }
 0x1d7   :  { %5245 = vmatpush1.bf16.msra.mxu1 %v5244_v25  ;;  %v3207_v25 = vsub.f32 %v8275_v49, %v9048_v4  ;;  %v3214_v22 = vsub.f32 %v8277_v13, %v9047_v16 }
 0x1d8   :  { %5246 = vmatprep.subr.bf16.mxu1 %v9551_v20  ;;  %v5370_v62 = vpack.c.bf16 %v9578_v36, %v9577_v58 }
 0x1d9   :  { %5365 = vmatpush1.bf16.msra.mxu0 %v5364_v27  ;;  %v9050_v27 = vand.u32 4294901760, %v8289_v43  ;;  %v3208_v4 = vand.u32 4294901760, %v3207_v25  ;;  %v3215_v54 = vand.u32 4294901760, %v3214_v22  ;;  %v3242_v25 = vsub.f32 %v8318_v37, %v9054_v12 }
 0x1da   :  { %5366 = vmatprep.subr.bf16.mxu0 %v9551_v20  ;;  %v9055_v22 = vand.u32 4294901760, %v8340_v35 }
 0x1db   :  { %5248 = vmatpush1.bf16.msra.mxu1 %v5247_v0  ;;  %v4303_v0 = vpop.f32.mrb[16].mxu1  ;;  %v3228_v58 = vsub.f32 %v8289_v43, %v9050_v27  ;;  %v3243_v12 = vand.u32 4294901760, %v3242_v25 }
 0x1dc   :  { %5249 = vmatprep.subr.bf16.mxu1 %v9551_v20  ;;  %v4304_v16 = vpop.f32.mrb[17].mxu1 }
 0x1dd   :  { %5368 = vmatpush1.bf16.msra.mxu0 %v5367_v61  ;;  %v3221_v61 = vsub.f32 %v8287_v55, %v9052_v39  ;;  %v4305_v36 = vadd.f32 %v4304_v16, %v4303_v0  ;;  %v4306_v5 = vpop.f32.mrb[18].mxu1  ;;  %v9056_v16 = vand.u32 4294901760, %v8336_v40  ;;  %v5256_v0 = vpack.c.bf16 %v3215_v54, %v3208_v4 }
 0x1de   :  { %5369 = vmatprep.subr.bf16.mxu0 %v9551_v20  ;;  %v3229_v46 = vand.u32 4294901760, %v3228_v58  ;;  %v3256_v54 = vsub.f32 %v8340_v35, %v9055_v22  ;;  %v3262_v4 = vand.u32 4294901760, %v8351_v56 }
 0x1df   :  { %5251 = vmatpush1.bf16.msra.mxu1 %v5250_v41  ;;  %v3235_v41 = vsub.f32 %v8316_v31, %v9051_v34  ;;  %v3222_v27 = vand.u32 4294901760, %v3221_v61  ;;  %v9579_v34 = vand.u32 4294901760, %v8235_v11 }
 0x1e0   :  { %5252 = vmatprep.subr.bf16.mxu1 %v9551_v20 }
 0x1e1   :  { %5371 = vmatpush1.bf16.msra.mxu0 %v5370_v62  ;;  %v4307_v62 = vpop.f32.mrb[19].mxu1  ;;  %v5376_v39 = vpack.c.bf16 %v9579_v34, %v3178_v60  ;;  %v3236_v29 = vand.u32 4294901760, %v3235_v41  ;;  %v4265_v61 = vpop.f32.mrb[16].mxu0  ;;  %v5259_v58 = vpack.c.bf16 %v3229_v46, %v3222_v27  ;;  %v9580_v41 = vand.u32 4294901760, %v8257_v23 }
 0x1e2   :  { %5372 = vmatprep.subr.bf16.mxu0 %v9551_v20  ;;  %v4308_v48 = vadd.f32 %v4307_v62, %v4306_v5  ;;  %v4266_v60 = vpop.f32.mrb[17].mxu0  ;;  %v9581_v5 = vand.u32 4294901760, %v8259_v52 }
 0x1e3   :  { %5254 = vmatpush1.bf16.msra.mxu1 %v5253_v38  ;;  %v3249_v38 = vsub.f32 %v8336_v40, %v9056_v16  ;;  %v4267_v34 = vadd.f32 %v4266_v60, %v4265_v61  ;;  %v5262_v62 = vpack.c.bf16 %v3243_v12, %v3236_v29  ;;  %v3257_v16 = vand.u32 4294901760, %v3256_v54 }
 0x1e4   :  { %5255 = vmatprep.subr.bf16.mxu1 %v9551_v20  ;;  %v5379_v25 = vpack.c.bf16 %v9581_v5, %v9580_v41  ;;  %v3283_v61 = vand.u32 4294901760, %v8374_v9  ;;  %v9582_v29 = vand.u32 4294901760, %v8275_v49  ;;  %v9583_v12 = vand.u32 4294901760, %v8277_v13 }
 0x1e5   :  { %5374 = vmatpush1.bf16.msra.mxu0 %v5373_v10  ;;  %v3269_v10 = vand.u32 4294901760, %v8353_v2  ;;  %v3250_v22 = vand.u32 4294901760, %v3249_v38  ;;  %v1632_v27 = vadd.f32 %v4267_v34, %v8498_v57  ;;  %v4268_v46 = vpop.f32.mrb[18].mxu0  ;;  %v8625_v57 = vsub.f32 %v8431_v42, %v8448_v45 }
 0x1e6   :  { %5375 = vmatprep.subr.bf16.mxu0 %v9551_v20  ;;  %v4269_v60 = vpop.f32.mrb[19].mxu0  ;;  %v5382_v38 = vpack.c.bf16 %v9583_v12, %v9582_v29  ;;  %v9585_v42 = vand.u32 4294901760, %v8289_v43 }
 0x1e7   :  { %5257 = vmatpush1.bf16.msra.mxu1 %v5256_v0  ;;  %v3263_v0 = vsub.f32 %v8351_v56, %v3262_v4  ;;  %v3270_v32 = vsub.f32 %v8353_v2, %v3269_v10  ;;  %v4270_v41 = vadd.f32 %v4269_v60, %v4268_v46  ;;  %v8621_v54 = vadd.f32 %v4305_v36, %v1632_v27 }
 0x1e8   :  { %5258 = vmatprep.subr.bf16.mxu1 %v9551_v20  ;;  %v3284_v60 = vsub.f32 %v8374_v9, %v3283_v61  ;;  %v9584_v36 = vand.u32 4294901760, %v8287_v55 }
 0x1e9   :  { %5377 = vmatpush1.bf16.msra.mxu0 %v5376_v39  ;;  %v3276_v39 = vand.u32 4294901760, %v8372_v30  ;;  %v3264_v34 = vand.u32 4294901760, %v3263_v0  ;;  %v1641_v5 = vadd.f32 %v4270_v41, %v8520_v1  ;;  %v9587_v0 = vand.u32 4294901760, %v8318_v37 }
 0x1ea   :  { %5378 = vmatprep.subr.bf16.mxu0 %v9551_v20  ;;  %v5385_v27 = vpack.c.bf16 %v9585_v42, %v9584_v36  ;;  %v9590_v42 = vld [vmem:[#allocation41_spill] sm:$0xff] }
 0x1eb   :  { %5260 = vmatpush1.bf16.msra.mxu1 %v5259_v58  ;;  %v5265_v58 = vpack.c.bf16 %v3257_v16, %v3250_v22  ;;  %v3277_v46 = vsub.f32 %v8372_v30, %v3276_v39  ;;  %v8636_v29 = vadd.f32 %v4308_v48, %v1641_v5  ;;  %v3290_v22 = vand.u32 4294901760, %v8625_v57 }
 0x1ec   :  { %5261 = vmatprep.subr.bf16.mxu1 %v9551_v20 }
 0x1ed   :  { %5380 = vmatpush1.bf16.msra.mxu0 %v5379_v25  ;;  %v3271_v25 = vand.u32 4294901760, %v3270_v32  ;;  %v3278_v16 = vand.u32 4294901760, %v3277_v46  ;;  %v3285_v32 = vand.u32 4294901760, %v3284_v60  ;;  %v3291_v12 = vsub.f32 %v8625_v57, %v3290_v22 }
 0x1ee   :  { %5381 = vmatprep.subr.bf16.mxu0 %v9551_v20 }
 0x1ef   :  { %5263 = vmatpush1.bf16.msra.mxu1 %v5262_v62  ;;  %v5268_v1 = vpack.c.bf16 %v3271_v25, %v3264_v34  ;;  %v9586_v62 = vand.u32 4294901760, %v8316_v31  ;;  %v5271_v48 = vpack.c.bf16 %v3285_v32, %v3278_v16  ;;  %v3292_v5 = vand.u32 4294901760, %v3291_v12  ;;  %v9598_v12 = vld [vmem:[#allocation17_spill] sm:$0xff] }
 0x1f0   :  { %5264 = vmatprep.subr.bf16.mxu1 %v9551_v20  ;;  %v5394_v25 = vpack.c.bf16 %v3269_v10, %v3262_v4  ;;  %v9591_v4 = vpack.c.bf16 %v8093_v24, %v8091_v8 }
 0x1f1   :  { %5383 = vmatpush1.bf16.msra.mxu0 %v5382_v38  ;;  %v5388_v41 = vpack.c.bf16 %v9587_v0, %v9586_v62  ;;  %v9588_v38 = vand.u32 4294901760, %v8336_v40  ;;  %v9593_v62 = vld [vmem:[#allocation45_spill] sm:$0xff]  ;;  %v9595_v0 = vpack.c.bf16 %v8138_v19, %v8136_v53 }
 0x1f2   :  { %5384 = vmatprep.subr.bf16.mxu0 %v9551_v20 }
 0x1f3   :  { %5266 = vmatpush1.bf16.msra.mxu1 %v5265_v58  ;;  %v9589_v58 = vand.u32 4294901760, %v8340_v35 }
 0x1f4   :  { %5267 = vmatprep.subr.bf16.mxu1 %v9551_v20 }
 0x1f5   :  { %5386 = vmatpush1.bf16.msra.mxu0 %v5385_v27  ;;  %v5391_v34 = vpack.c.bf16 %v9589_v58, %v9588_v38  ;;  %v5397_v27 = vpack.c.bf16 %v3283_v61, %v3276_v39  ;;  %v9594_v39 = vpack.c.bf16 %v8109_v15, %v8107_v33 }
 0x1f6   :  { %5387 = vmatprep.subr.bf16.mxu0 %v9551_v20 }
 0x1f7   :  { %5269 = vmatpush1.bf16.msra.mxu1 %v5268_v1 }
 0x1f8   :  { %5270 = vmatprep.subr.bf16.mxu1 %v9551_v20 }
 0x1f9   :  { %5389 = vmatpush1.bf16.msra.mxu0 %v5388_v41  ;;  %v4379_v46 = vpop.f32.mrb[20].mxu1  ;;  %v9596_v41 = vld [vmem:[#allocation38_spill] sm:$0xff] }
 0x1fa   :  { %5390 = vmatprep.subr.bf16.mxu0 %v9551_v20  ;;  %v4380_v60 = vpop.f32.mrb[21].mxu1 }
 0x1fb   :  { %5272 = vmatpush1.bf16.msra.mxu1 %v5271_v48  ;;  %v4381_v36 = vadd.f32 %v4380_v60, %v4379_v46  ;;  %v9597_v48 = vpack.c.bf16 %v8168_v47, %v8164_v6  ;;  %v9599_v6 = vpack.c.bf16 %v8181_v44, %v8179_v63  ;;  %v9600_v47 = vld [vmem:[#allocation29_spill] sm:$0xff]  ;;  %v9603_v63 = vpack.c.bf16 %v8235_v11, %v8233_v18  ;;  %v9604_v44 = vld [vmem:[#allocation7_spill] sm:$0xff]  ;;  %v9608_v46 = vld [vmem:[#allocation32_spill] sm:$0xff] }
 0x1fc   :  { %3287 = vmatprep.subr.mxu1 %v9471_v51  ;;  %v9607_v18 = vpack.c.bf16 %v8277_v13, %v8275_v49 }
 0x1fd   :  { %5392 = vmatpush1.bf16.msra.mxu0 %v5391_v34  ;;  %v4382_v10 = vpop.f32.mrb[22].mxu1  ;;  %v9606_v34 = vld [vmem:[#allocation30_spill] sm:$0xff] }
 0x1fe   :  { %5393 = vmatprep.subr.bf16.mxu0 %v9551_v20  ;;  %v4383_v1 = vpop.f32.mrb[23].mxu1 }
 0x1ff   :  { %3293 = vmatpush1.msra.mxu1 %v3292_v5  ;;  %v4384_v16 = vadd.f32 %v4383_v1, %v4382_v10  ;;  %v9612_v1 = vld [vmem:[#allocation33_spill] sm:$0xff] }
 0x200   :  { %3918 = vmatmul.mubr.msk.f32.vlgmr.msra.gmra.mrb[36].mxu1 %vm38_vm14, %v9109_v14  ;;  %5273 = vmatprep.subr.bf16.mxu1 %v9551_v20 }
 0x201   :  { %5395 = vmatpush1.bf16.msra.mxu0 %v5394_v25  ;;  %3919 = vmatprep.mubr.msk.f32.mxu1 %vm206_vm13, %v9590_v42 }
 0x202   :  { %5275 = vmatpush1.bf16.msra.mxu1 %v9591_v4  ;;  %5396 = vmatprep.subr.bf16.mxu0 %v9551_v20 }
 0x203   :  { %5276 = vmatprep.subr.bf16.mxu1 %v9551_v20 }
 0x204   :  { %3920 = vmatmul.mubr.msk.f32.gmra.mrb[38].mxu1 %vm46_vm0, %v9109_v14 }
 0x205   :  { %5398 = vmatpush1.bf16.msra.mxu0 %v5397_v27  ;;  %3439 = vmatprep.mubr.f32.mxu1 %v9593_v62  ;;  %v4341_v8 = vpop.f32.mrb[20].mxu0  ;;  %v9611_v27 = vpack.c.bf16 %v8318_v37, %v8316_v31  ;;  %v9613_v62 = vpack.c.bf16 %v8340_v35, %v8336_v40  ;;  %v9614_v37 = vld [vmem:[#allocation34_spill] sm:$0xff]  ;;  %v9617_v40 = vpack.c.bf16 %v8374_v9, %v8372_v30  ;;  %v9618_v35 = vld [vmem:[#allocation5_spill] sm:$0xff] }
 0x206   :  { %5278 = vmatpush1.bf16.msra.mxu1 %v9594_v39  ;;  %3712 = vmatprep.subr.mxu0 %v9471_v51  ;;  %v4342_v24 = vpop.f32.mrb[21].mxu0  ;;  %v9620_v9 = vld [vmem:[#allocation9_spill] sm:$0xff] }
 0x207   :  { %5279 = vmatprep.subr.bf16.mxu1 %v9551_v20  ;;  %v4343_v61 = vadd.f32 %v4342_v24, %v4341_v8  ;;  %v9615_v8 = vpack.c.bf16 %v8353_v2, %v8351_v56  ;;  %v9616_v24 = vld [vmem:[#allocation15_spill] sm:$0xff]  ;;  %v9619_v2 = vld [vmem:[#allocation8_spill] sm:$0xff] }
 0x209   :  { %3716 = vmatpush1.msra.mxu0 %v3290_v22  ;;  %v1928_v33 = vadd.f32 %v4343_v61, %v8621_v54  ;;  %v4344_v15 = vpop.f32.mrb[22].mxu0 }
 0x20a   :  { %5281 = vmatpush1.bf16.msra.mxu1 %v9595_v0  ;;  %3922 = vmatmul.mubr.msk.f32.vlgmr.msra.gmra.mrb[36].mxu0 %vm38_vm14, %v9109_v14  ;;  %v4345_v22 = vpop.f32.mrb[23].mxu0 }
 0x20b   :  { %5399 = vmatprep.subr.bf16.mxu0 %v9551_v20  ;;  %3923 = vmatprep.mubr.msk.f32.mxu0 %vm206_vm13, %v9590_v42  ;;  %v4346_v53 = vadd.f32 %v4345_v22, %v4344_v15  ;;  %v2039_v19 = vadd.f32 %v4381_v36, %v1928_v33  ;;  %v9610_v36 = vld [vmem:[#allocation20_spill] sm:$0xff] }
 0x20c   :  { %5401 = vmatpush1.bf16.msra.mxu0 %v9596_v41  ;;  %5282 = vmatprep.subr.bf16.mxu1 %v9551_v20 }
 0x20d   :  { %5402 = vmatprep.subr.bf16.mxu0 %v9551_v20  ;;  %v1935_v54 = vadd.f32 %v4346_v53, %v8636_v29  ;;  %v9602_v29 = vld [vmem:[#allocation6_spill] sm:$0xff] }
 0x20e   :  { %5284 = vmatpush1.bf16.msra.mxu1 %v9597_v48  ;;  %3924 = vmatmul.mubr.msk.f32.gmra.mrb[38].mxu0 %vm46_vm0, %v9109_v14 }
 0x20f   :  { %3925 = vmatprep.mubr.msk.f32.mxu0 %vm206_vm13, %v8074_v21  ;;  %5285 = vmatprep.subr.bf16.mxu1 %v9551_v20  ;;  %v2046_v38 = vadd.f32 %v4384_v16, %v1935_v54  ;;  %v9601_v21 = vpack.c.bf16 %v8209_v50, %v8207_v59  ;;  %v9605_v59 = vpack.c.bf16 %v8259_v52, %v8257_v23 }
 0x210   :  { %5404 = vmatpush1.bf16.msra.mxu0 %v9598_v12  ;;  %v9609_v52 = vpack.c.bf16 %v8289_v43, %v8287_v55 }
 0x211   :  { %5405 = vmatprep.subr.bf16.mxu0 %v9551_v20 }
 0x212   :  { %5287 = vmatpush1.bf16.msra.mxu1 %v9599_v6 }
 0x213   :  { %5288 = vmatprep.subr.bf16.mxu1 %v9551_v20 }
 0x214   :  { %5407 = vmatpush1.bf16.msra.mxu0 %v9600_v47 }
 0x215   :  { %5408 = vmatprep.subr.bf16.mxu0 %v9551_v20 }
 0x216   :  { %5290 = vmatpush1.bf16.msra.mxu1 %v9601_v21 }
 0x217   :  { %5291 = vmatprep.subr.bf16.mxu1 %v9551_v20 }
 0x218   :  { %5410 = vmatpush1.bf16.msra.mxu0 %v9602_v29 }
 0x219   :  { %5411 = vmatprep.subr.bf16.mxu0 %v9551_v20 }
 0x21a   :  { %5293 = vmatpush1.bf16.msra.mxu1 %v9603_v63 }
 0x21b   :  { %5294 = vmatprep.subr.bf16.mxu1 %v9551_v20 }
 0x21c   :  { %5413 = vmatpush1.bf16.msra.mxu0 %v9604_v44  ;;  %v4455_v50 = vpop.f32.mrb[24].mxu1 }
 0x21d   :  { %5414 = vmatprep.subr.bf16.mxu0 %v9551_v20  ;;  %v4456_v58 = vpop.f32.mrb[25].mxu1 }
 0x21e   :  { %5296 = vmatpush1.bf16.msra.mxu1 %v9605_v59  ;;  %v4457_v5 = vadd.f32 %v4456_v58, %v4455_v50 }
 0x21f   :  { %5297 = vmatprep.subr.bf16.mxu1 %v9551_v20 }
 0x220   :  { %5416 = vmatpush1.bf16.msra.mxu0 %v9606_v34  ;;  %v4458_v11 = vpop.f32.mrb[26].mxu1 }
 0x221   :  { %5417 = vmatprep.subr.bf16.mxu0 %v9551_v20  ;;  %v4459_v25 = vpop.f32.mrb[27].mxu1 }
 0x222   :  { %5299 = vmatpush1.bf16.msra.mxu1 %v9607_v18  ;;  %v4460_v23 = vadd.f32 %v4459_v25, %v4458_v11 }
 0x223   :  { %5300 = vmatprep.subr.bf16.mxu1 %v9551_v20 }
 0x224   :  { %5419 = vmatpush1.bf16.msra.mxu0 %v9608_v46 }
 0x225   :  { %5420 = vmatprep.subr.bf16.mxu0 %v9551_v20 }
 0x226   :  { %5302 = vmatpush1.bf16.msra.mxu1 %v9609_v52 }
 0x227   :  { %5303 = vmatprep.subr.bf16.mxu1 %v9551_v20 }
 0x228   :  { %v4417_v60 = vpop.f32.mrb[24].mxu0  ;;  %5422 = vmatpush1.bf16.msra.mxu0 %v9610_v36 }
 0x229   :  { %v4418_v49 = vpop.f32.mrb[25].mxu0  ;;  %5423 = vmatprep.subr.bf16.mxu0 %v9551_v20 }
 0x22a   :  { %v4419_v13 = vadd.f32 %v4418_v49, %v4417_v60  ;;  %5305 = vmatpush1.bf16.msra.mxu1 %v9611_v27 }
 0x22b   :  { %5306 = vmatprep.subr.bf16.mxu1 %v9551_v20 }
 0x22c   :  { %v2158_v4 = vadd.f32 %v4419_v13, %v2039_v19  ;;  %v4420_v10 = vpop.f32.mrb[26].mxu0  ;;  %5425 = vmatpush1.bf16.msra.mxu0 %v9612_v1 }
 0x22d   :  { %v4421_v55 = vpop.f32.mrb[27].mxu0  ;;  %5426 = vmatprep.subr.bf16.mxu0 %v9551_v20 }
 0x22e   :  { %v4422_v43 = vadd.f32 %v4421_v55, %v4420_v10  ;;  %v2405_v16 = vadd.f32 %v4457_v5, %v2158_v4  ;;  %5308 = vmatpush1.bf16.msra.mxu1 %v9613_v62 }
 0x22f   :  { %5309 = vmatprep.subr.bf16.mxu1 %v9551_v20 }
 0x230   :  { %v2173_v39 = vadd.f32 %v4422_v43, %v2046_v38  ;;  %5428 = vmatpush1.bf16.msra.mxu0 %v9614_v37 }
 0x231   :  { %5429 = vmatprep.subr.bf16.mxu0 %v9551_v20 }
 0x232   :  { %v2412_v31 = vadd.f32 %v4460_v23, %v2173_v39  ;;  %5311 = vmatpush1.bf16.msra.mxu1 %v9615_v8 }
 0x233   :  { %5312 = vmatprep.subr.bf16.mxu1 %v9551_v20 }
 0x234   :  { %5431 = vmatpush1.bf16.msra.mxu0 %v9616_v24 }
 0x235   :  { %5432 = vmatprep.subr.bf16.mxu0 %v9551_v20 }
 0x236   :  { %5314 = vmatpush1.bf16.msra.mxu1 %v9617_v40 }
 0x237   :  { %3427 = vmatprep.subr.mxu1 %v9471_v51 }
 0x238   :  { %5434 = vmatpush1.bf16.msra.mxu0 %v9618_v35 }
 0x239   :  { %5435 = vmatprep.subr.bf16.mxu0 %v9551_v20 }
 0x23a   :  { %3430 = vmatpush1.msra.mxu1 %v8625_v57 }
 0x23b   :  { %3442 = vmatmul.mubr.f32.vlgmr.msra.gmra.mrb[36].mxu1 %v8395_v28 }
 0x23c   :  { %5437 = vmatpush1.bf16.msra.mxu0 %v8404_v26  ;;  %3448 = vmatprep.mubr.f32.mxu1 %v8406_v7 }
 0x23d   :  { %5438 = vmatprep.subr.bf16.mxu0 %v9551_v20  ;;  %v4531_v56 = vpop.f32.mrb[28].mxu1 }
 0x23e   :  { %v4532_v30 = vpop.f32.mrb[29].mxu1 }
 0x23f   :  { %3451 = vmatmul.mubr.f32.gmra.mrb[38].mxu1 %v9619_v2  ;;  %v4533_v61 = vadd.f32 %v4532_v30, %v4531_v56 }
 0x240   :  { %5440 = vmatpush1.bf16.msra.mxu0 %v9620_v9 }
 0x241   :  { %3822 = vmatprep.subr.mxu0 %v9471_v51  ;;  %v4534_v0 = vpop.f32.mrb[30].mxu1 }
 0x242   :  { %v4535_v33 = vpop.f32.mrb[31].mxu1 }
 0x243   :  { %v4536_v28 = vadd.f32 %v4535_v33, %v4534_v0 }
 0x244   :  { %3824 = vmatpush1.msra.mxu0 %v8448_v45 }
 0x245   :  { %3926 = vmatmul.mubr.msk.f32.vlgmr.msra.gmra.mrb[36].mxu0 %vm38_vm14, %v9109_v14 }
 0x246   :  { %3927 = vmatprep.mubr.msk.f32.mxu0 %vm206_vm13, %v9590_v42 }
 0x248   :  { %v4493_v20 = vpop.f32.mrb[28].mxu0 }
 0x249   :  { %v4494_v7 = vpop.f32.mrb[29].mxu0  ;;  %3928 = vmatmul.mubr.msk.f32.gmra.mrb[38].mxu0 %vm46_vm0, %v9109_v14 }
 0x24a   :  { %v4495_v51 = vadd.f32 %v4494_v7, %v4493_v20 }
 0x24c   :  { %v2550_v26 = vadd.f32 %v4495_v51, %v2405_v16  ;;  %v4496_v57 = vpop.f32.mrb[30].mxu0 }
 0x24d   :  { %v4497_v45 = vpop.f32.mrb[31].mxu0 }
 0x24e   :  { %v4498_v15 = vadd.f32 %v4497_v45, %v4496_v57  ;;  %v2667_v41 = vadd.f32 %v4533_v61, %v2550_v26 }
 0x250   :  { %v2559_v22 = vadd.f32 %v4498_v15, %v2412_v31 }
 0x252   :  { %v2678_v53 = vadd.f32 %v4536_v28, %v2559_v22 }
 0x25e   :  { %v4607_v17 = vpop.f32.mrb[32].mxu1 }
 0x25f   :  { %v4608_v19 = vpop.f32.mrb[33].mxu1 }
 0x260   :  { %v4609_v48 = vadd.f32 %v4608_v19, %v4607_v17 }
 0x262   :  { %v4610_v54 = vpop.f32.mrb[34].mxu1 }
 0x263   :  { %v4611_v42 = vpop.f32.mrb[35].mxu1 }
 0x264   :  { %v4612_v12 = vadd.f32 %v4611_v42, %v4610_v54 }
 0x268   :  { %v4569_v38 = vpop.f32.mrb[32].mxu0 }
 0x269   :  { %v4570_v6 = vpop.f32.mrb[33].mxu0 }
 0x26a   :  { %v4571_v47 = vadd.f32 %v4570_v6, %v4569_v38 }
 0x26c   :  { %v2846_v21 = vadd.f32 %v4571_v47, %v2667_v41  ;;  %v4572_v3 = vpop.f32.mrb[34].mxu0 }
 0x26d   :  { %v4573_v14 = vpop.f32.mrb[35].mxu0 }
 0x26e   :  { %v4574_v32 = vadd.f32 %v4573_v14, %v4572_v3  ;;  %v2957_v29 = vadd.f32 %v4609_v48, %v2846_v21 }
 0x270   :  { %v2853_v63 = vadd.f32 %v4574_v32, %v2678_v53 }
 0x272   :  { %v2964_v44 = vadd.f32 %v4612_v12, %v2853_v63 }
 0x30e   :  { %v3443_v59 = vpop.f32.mrb[36].mxu1 }
 0x30f   :  { %v5441_v50 = vadd.f32 %v3443_v59, %v2957_v29  ;;  %v3445_v58 = vpop.f32.mrb[37].mxu1 }
 0x312   :  { %v3452_v34 = vpop.f32.mrb[38].mxu1 }
 0x313   :  { %v5443_v5 = vadd.f32 %v3452_v34, %v2964_v44  ;;  %v3454_v18 = vpop.f32.mrb[39].mxu1 }
 0x318   :  { %v3835_v11 = vpop.f32.mrb[36].mxu0 }
 0x319   :  { %v5442_v25 = vadd.f32 %v5441_v50, %v3835_v11  ;;  %v3837_v46 = vpop.f32.mrb[37].mxu0 }
 0x31b   :  { %3847 = vst.msk [vmem:[#allocation2] sm:$0xff] %vm3846_vm1, %v5442_v25 }
 0x31c   :  { %v3842_v23 = vpop.f32.mrb[38].mxu0 }
 0x31d   :  { %v5444_v52 = vadd.f32 %v5443_v5, %v3842_v23  ;;  %v3844_v60 = vpop.f32.mrb[39].mxu0 }
 0x31f   :  { %3848 = vst.msk [vmem:[#allocation2 + $0x8] sm:$0xff] %vm3846_vm1, %v5444_v52 }
 0x320   :  { %5480 = shalt.err (!%p5477_p4)
}
 0x321   :  { %s5481_s17 = scalar_lea.hbm %s8798_s3, 256 }
 0x322   :  { %p5482_p5 = scmp.ne.s32.totalorder %s8798_s3, %s5481_s17  ;;  %p5485_p6 = scmp.lt.u32.totalorder %s5481_s17, %s8798_s3 }
 0x324   :  { %p5487_p7 = pnand %p5485_p6, %p5482_p5 }
 0x326   :  { %5490 = shalt.err (!%p5487_p7)
}
 0x327   :  { %s5498_s22 = smov 128   ;;  %s5499_s23 = smov 8  }
 0x328   :  { %3860 = dma.vmem_to_hbm [thread:$0]  %s3855_s2, 256, %s8798_s3, [#allocation3], %s5498_s22, %s5498_s22, %s5499_s23  }
 0x329   :  { %5491 = dma.done.wait [#allocation3], 256  }
 0x32a   :  { %5492 = vsyncadd [#allocation3], 4294967040 }
 0x32b   :  { %3864 = vsyncpa [#allocation3], 1 }

</bundles_post_ra>
